<compile_context>
chip_gen: v6e
topology: v6e:2x2x1
jax: 0.10.0
libtpu: 0.0.40
codegen_flags: <defaults>
</compile_context>

<pallas_src>
import functools
import math

import jax
import jax.numpy as jnp
import numpy as np
from jax import lax
from jax.experimental import pallas as pl
from jax.experimental.pallas import tpu as pltpu


def kernel_size(in_channels):
    """ECA-style adaptive kernel size for the 1D channel conv (always odd)."""
    k = int((math.log2(in_channels) + 1) // 2)
    return k if k % 2 == 1 else k + 1


def _channel_gate_kernel(x_ref, wdw_ref, hh_ref, ww_ref, w1_ref, b1_ref, o_ref,
                         *, H, W, C, k):
    HW = H * W
    pad = k // 2

    x = x_ref[0]            # (C, HW) f32: channels on sublanes, pixels on lanes
    hh = hh_ref[...]        # (1, HW) int32: row index h of each flattened pixel
    ww = ww_ref[...]        # (1, HW) int32: col index w of each flattened pixel

    # ---- channel branch: GAP + Conv1d(1,1,k) over channels (ECA) ------------
    m = jnp.mean(x, axis=1, keepdims=True)                       # (C, 1)
    cc = lax.broadcasted_iota(jnp.int32, (C, 1), 0)              # channel index
    xc = jnp.zeros((C, 1), jnp.float32)
    for j in range(k):
        off = j - pad
        shifted = m if off == 0 else pltpu.roll(m, (-off) % C, axis=0)
        valid = jnp.logical_and(cc + off >= 0, cc + off < C)
        xc = xc + w1_ref[j] * jnp.where(valid, shifted, 0.0)
    xc = xc + b1_ref[0]                                          # (C, 1)

    # ---- spatial branch: depthwise 7x7, stride 1, padding 3, no bias --------
    wdw = wdw_ref[...]                                           # (C, 49) hoisted
    wmask = []
    for dj in range(7):
        oj = dj - 3
        wmask.append(jnp.logical_and(ww + oj >= 0, ww + oj < W))

    hw = jnp.zeros((C, HW), jnp.float32)
    for di in range(7):
        oi = di - 3
        hmask = jnp.logical_and(hh + oi >= 0, hh + oi < H)
        for dj in range(7):
            oj = dj - 3
            s = oi * W + oj                                      # flat-pixel shift
            shifted = x if s == 0 else pltpu.roll(x, (-s) % HW, axis=1)
            wtap = wdw[:, di * 7 + dj: di * 7 + dj + 1]          # (C, 1)
            mask = jnp.logical_and(hmask, wmask[dj])             # edges + row-wrap
            hw = hw + jnp.where(mask, shifted, 0.0) * wtap

    gate = jax.nn.sigmoid(xc + hw)                               # (C, HW)
    o_ref[0] = (x * gate + x).astype(o_ref.dtype)


def channel_gate_v2(x_nchw, conv1_w, conv1_b, satt_w):
    """ChannelGatev2 forward.
    x_nchw: (N,C,H,W); conv1_w: (1,1,k); conv1_b: (1,); satt_w: (C,1,7,7)."""
    N, C, H, W = x_nchw.shape
    k = conv1_w.shape[-1]
    HW = H * W

    # Free reshapes only (NCHW is contiguous): no transpose / pad / copy in HBM.
    xf = x_nchw.reshape(N, C, HW).astype(jnp.float32)
    wdw = satt_w.reshape(C, 49).astype(jnp.float32)
    w1 = conv1_w.reshape(k).astype(jnp.float32)
    b1 = conv1_b.reshape(1).astype(jnp.float32)

    flat = jnp.arange(HW, dtype=jnp.int32)
    hh = (flat // W).reshape(1, HW)
    ww = (flat % W).reshape(1, HW)

    kernel = functools.partial(_channel_gate_kernel, H=H, W=W, C=C, k=k)

    out = pl.pallas_call(
        kernel,
        out_shape=jax.ShapeDtypeStruct((N, C, HW), jnp.float32),
        grid_spec=pltpu.PrefetchScalarGridSpec(
            num_scalar_prefetch=0,
            grid=(N,),
            in_specs=[
                pl.BlockSpec((1, C, HW), lambda n: (n, 0, 0)),      # activation
                pl.BlockSpec((C, 49), lambda n: (0, 0)),            # dw weights
                pl.BlockSpec((1, HW), lambda n: (0, 0)),            # row indices
                pl.BlockSpec((1, HW), lambda n: (0, 0)),            # col indices
                pl.BlockSpec(memory_space=pltpu.MemorySpace.SMEM),  # conv1 weight (k,)
                pl.BlockSpec(memory_space=pltpu.MemorySpace.SMEM),  # conv1 bias (1,)
            ],
            out_specs=pl.BlockSpec((1, C, HW), lambda n: (n, 0, 0)),
        ),
        compiler_params=pltpu.CompilerParams(
            dimension_semantics=("parallel",),
            vmem_limit_bytes=32 * 1024 * 1024),
    )(xf, wdw, hh, ww, w1, b1)

    return out.reshape(N, C, H, W)


def reference(x_nchw, conv1_w, conv1_b, satt_w):
    """Pure-JAX reference matching the PyTorch module."""
    N, C, H, W = x_nchw.shape
    k = conv1_w.shape[-1]
    pad = k // 2
    m = jnp.mean(x_nchw, axis=(2, 3))                                  # (N, C)
    mpad = jnp.pad(m, ((0, 0), (pad, pad)))
    xc = conv1_b[0] + sum(conv1_w[0, 0, j] * mpad[:, j:j + C] for j in range(k))
    xhw = lax.conv_general_dilated(
        x_nchw, satt_w, window_strides=(1, 1), padding=((3, 3), (3, 3)),
        feature_group_count=C, dimension_numbers=("NCHW", "OIHW", "NCHW"),
        precision=lax.Precision.HIGHEST)
    gate = jax.nn.sigmoid(xc[:, :, None, None] + xhw)
    return x_nchw * gate + x_nchw


if __name__ == "__main__":
    N, C, H, W = 2, 16, 16, 16
    k = kernel_size(C)            # -> 3 for C=16

    key = jax.random.PRNGKey(0)
    kx, kw1, kb1, kdw = jax.random.split(key, 4)
    x = jax.random.normal(kx, (N, C, H, W), dtype=jnp.float32)

    # deterministic, PyTorch-default-style init: uniform(-1/sqrt(fan_in), +)
    b1_bound = 1.0 / math.sqrt(1 * k)
    conv1_w = jax.random.uniform(kw1, (1, 1, k), jnp.float32, -b1_bound, b1_bound)
    conv1_b = jax.random.uniform(kb1, (1,), jnp.float32, -b1_bound, b1_bound)
    dw_bound = 1.0 / math.sqrt(1 * 7 * 7)
    satt_w = jax.random.uniform(kdw, (C, 1, 7, 7), jnp.float32, -dw_bound, dw_bound)

    out = jax.block_until_ready(channel_gate_v2(x, conv1_w, conv1_b, satt_w))
    ref = jax.block_until_ready(reference(x, conv1_w, conv1_b, satt_w))

    assert out.shape == (N, C, H, W)
    np.testing.assert_allclose(np.asarray(out), np.asarray(ref), rtol=2e-3, atol=2e-4)
    print("KERNEL_OK")
</pallas_src>

<mosaic_0001>
module attributes {stable_mosaic.version = 11 : i64} {
  func.func @_channel_gate_kernel(%arg0: i32, %arg1: memref<1x16x256xf32, #tpu.memory_space<vmem>>, %arg2: memref<16x49xf32, #tpu.memory_space<vmem>>, %arg3: memref<1x256xi32, #tpu.memory_space<vmem>>, %arg4: memref<1x256xi32, #tpu.memory_space<vmem>>, %arg5: memref<3xf32, #tpu.memory_space<smem>>, %arg6: memref<1xf32, #tpu.memory_space<smem>>, %arg7: memref<1x16x256xf32, #tpu.memory_space<vmem>>) attributes {dimension_semantics = [#tpu.dimension_semantics<parallel>], iteration_bounds = array<i64: 2>, scalar_prefetch = 0 : i64, scratch_operands = 0 : i64, tpu.core_type = #tpu.core_type<tc>, window_params = [{transform_indices = @transform_0, window_bounds = array<i64: 1, 16, 256>}, {pipeline_mode = #tpu.pipeline_mode<synchronous>, transform_indices = @transform_1, window_bounds = array<i64: 16, 49>}, {pipeline_mode = #tpu.pipeline_mode<synchronous>, transform_indices = @transform_2, window_bounds = array<i64: 1, 256>}, {pipeline_mode = #tpu.pipeline_mode<synchronous>, transform_indices = @transform_3, window_bounds = array<i64: 1, 256>}, {transform_indices = @transform_4, window_bounds = array<i64: 3>}, {transform_indices = @transform_5, window_bounds = array<i64: 1>}, {transform_indices = @transform_6, window_bounds = array<i64: 1, 16, 256>}]} {
    %c0 = arith.constant 0 : index
    %c0_0 = arith.constant 0 : index
    %c0_1 = arith.constant 0 : index
    %0 = vector.load %arg1[%c0, %c0_0, %c0_1] : memref<1x16x256xf32, #tpu.memory_space<vmem>>, vector<1x16x256xf32>
    %1 = vector.shape_cast %0 : vector<1x16x256xf32> to vector<16x256xf32>
    %c0_2 = arith.constant 0 : index
    %c0_3 = arith.constant 0 : index
    %2 = vector.load %arg3[%c0_2, %c0_3] : memref<1x256xi32, #tpu.memory_space<vmem>>, vector<1x256xi32>
    %c0_4 = arith.constant 0 : index
    %c0_5 = arith.constant 0 : index
    %3 = vector.load %arg4[%c0_4, %c0_5] : memref<1x256xi32, #tpu.memory_space<vmem>>, vector<1x256xi32>
    %cst = arith.constant dense<0.000000e+00> : vector<16xf32>
    %4 = vector.multi_reduction <add>, %1, %cst [1] : vector<16x256xf32> to vector<16xf32>
    %5 = vector.shape_cast %4 : vector<16xf32> to vector<16x1xf32>
    %cst_6 = arith.constant 2.560000e+02 : f32
    %6 = vector.broadcast %cst_6 : f32 to vector<16x1xf32>
    %7 = arith.divf %5, %6 : vector<16x1xf32>
    %8 = tpu.iota {dimensions = array<i32: 0>} : vector<16x1xi32>
    %cst_7 = arith.constant 0.000000e+00 : f32
    %9 = vector.broadcast %cst_7 : f32 to vector<16x1xf32>
    %c1_i32 = arith.constant 1 : i32
    %10 = tpu.dynamic_rotate %7 by %c1_i32 dim 0 : vector<16x1xf32>, i32 -> vector<16x1xf32>
    %c-1_i32 = arith.constant -1 : i32
    %11 = vector.broadcast %c-1_i32 : i32 to vector<16x1xi32>
    %12 = arith.addi %8, %11 : vector<16x1xi32>
    %c0_i32 = arith.constant 0 : i32
    %13 = vector.broadcast %c0_i32 : i32 to vector<16x1xi32>
    %14 = arith.cmpi sge, %12, %13 : vector<16x1xi32>
    %c-1_i32_8 = arith.constant -1 : i32
    %15 = vector.broadcast %c-1_i32_8 : i32 to vector<16x1xi32>
    %16 = arith.addi %8, %15 : vector<16x1xi32>
    %c16_i32 = arith.constant 16 : i32
    %17 = vector.broadcast %c16_i32 : i32 to vector<16x1xi32>
    %18 = arith.cmpi slt, %16, %17 : vector<16x1xi32>
    %19 = arith.andi %14, %18 : vector<16x1xi1>
    %c0_9 = arith.constant 0 : index
    %20 = memref.load %arg5[%c0_9] : memref<3xf32, #tpu.memory_space<smem>>
    %cst_10 = arith.constant 0.000000e+00 : f32
    %21 = vector.broadcast %cst_10 : f32 to vector<16x1xf32>
    %22 = arith.select %19, %10, %21 : vector<16x1xi1>, vector<16x1xf32>
    %23 = vector.broadcast %20 : f32 to vector<16x1xf32>
    %24 = arith.mulf %23, %22 : vector<16x1xf32>
    %25 = arith.addf %9, %24 : vector<16x1xf32>
    %c0_i32_11 = arith.constant 0 : i32
    %26 = vector.broadcast %c0_i32_11 : i32 to vector<16x1xi32>
    %27 = arith.addi %8, %26 : vector<16x1xi32>
    %c0_i32_12 = arith.constant 0 : i32
    %28 = vector.broadcast %c0_i32_12 : i32 to vector<16x1xi32>
    %29 = arith.cmpi sge, %27, %28 : vector<16x1xi32>
    %c0_i32_13 = arith.constant 0 : i32
    %30 = vector.broadcast %c0_i32_13 : i32 to vector<16x1xi32>
    %31 = arith.addi %8, %30 : vector<16x1xi32>
    %c16_i32_14 = arith.constant 16 : i32
    %32 = vector.broadcast %c16_i32_14 : i32 to vector<16x1xi32>
    %33 = arith.cmpi slt, %31, %32 : vector<16x1xi32>
    %34 = arith.andi %29, %33 : vector<16x1xi1>
    %c1 = arith.constant 1 : index
    %35 = memref.load %arg5[%c1] : memref<3xf32, #tpu.memory_space<smem>>
    %cst_15 = arith.constant 0.000000e+00 : f32
    %36 = vector.broadcast %cst_15 : f32 to vector<16x1xf32>
    %37 = arith.select %34, %7, %36 : vector<16x1xi1>, vector<16x1xf32>
    %38 = vector.broadcast %35 : f32 to vector<16x1xf32>
    %39 = arith.mulf %38, %37 : vector<16x1xf32>
    %40 = arith.addf %25, %39 : vector<16x1xf32>
    %c15_i32 = arith.constant 15 : i32
    %41 = tpu.dynamic_rotate %7 by %c15_i32 dim 0 : vector<16x1xf32>, i32 -> vector<16x1xf32>
    %c1_i32_16 = arith.constant 1 : i32
    %42 = vector.broadcast %c1_i32_16 : i32 to vector<16x1xi32>
    %43 = arith.addi %8, %42 : vector<16x1xi32>
    %c0_i32_17 = arith.constant 0 : i32
    %44 = vector.broadcast %c0_i32_17 : i32 to vector<16x1xi32>
    %45 = arith.cmpi sge, %43, %44 : vector<16x1xi32>
    %c1_i32_18 = arith.constant 1 : i32
    %46 = vector.broadcast %c1_i32_18 : i32 to vector<16x1xi32>
    %47 = arith.addi %8, %46 : vector<16x1xi32>
    %c16_i32_19 = arith.constant 16 : i32
    %48 = vector.broadcast %c16_i32_19 : i32 to vector<16x1xi32>
    %49 = arith.cmpi slt, %47, %48 : vector<16x1xi32>
    %50 = arith.andi %45, %49 : vector<16x1xi1>
    %c2 = arith.constant 2 : index
    %51 = memref.load %arg5[%c2] : memref<3xf32, #tpu.memory_space<smem>>
    %cst_20 = arith.constant 0.000000e+00 : f32
    %52 = vector.broadcast %cst_20 : f32 to vector<16x1xf32>
    %53 = arith.select %50, %41, %52 : vector<16x1xi1>, vector<16x1xf32>
    %54 = vector.broadcast %51 : f32 to vector<16x1xf32>
    %55 = arith.mulf %54, %53 : vector<16x1xf32>
    %56 = arith.addf %40, %55 : vector<16x1xf32>
    %c0_21 = arith.constant 0 : index
    %57 = memref.load %arg6[%c0_21] : memref<1xf32, #tpu.memory_space<smem>>
    %58 = vector.broadcast %57 : f32 to vector<16x1xf32>
    %59 = arith.addf %56, %58 : vector<16x1xf32>
    %c0_22 = arith.constant 0 : index
    %c0_23 = arith.constant 0 : index
    %60 = vector.load %arg2[%c0_22, %c0_23] : memref<16x49xf32, #tpu.memory_space<vmem>>, vector<16x49xf32>
    %c-3_i32 = arith.constant -3 : i32
    %61 = vector.broadcast %c-3_i32 : i32 to vector<1x256xi32>
    %62 = arith.addi %3, %61 : vector<1x256xi32>
    %c0_i32_24 = arith.constant 0 : i32
    %63 = vector.broadcast %c0_i32_24 : i32 to vector<1x256xi32>
    %64 = arith.cmpi sge, %62, %63 : vector<1x256xi32>
    %c-3_i32_25 = arith.constant -3 : i32
    %65 = vector.broadcast %c-3_i32_25 : i32 to vector<1x256xi32>
    %66 = arith.addi %3, %65 : vector<1x256xi32>
    %c16_i32_26 = arith.constant 16 : i32
    %67 = vector.broadcast %c16_i32_26 : i32 to vector<1x256xi32>
    %68 = arith.cmpi slt, %66, %67 : vector<1x256xi32>
    %69 = arith.andi %64, %68 : vector<1x256xi1>
    %c-2_i32 = arith.constant -2 : i32
    %70 = vector.broadcast %c-2_i32 : i32 to vector<1x256xi32>
    %71 = arith.addi %3, %70 : vector<1x256xi32>
    %c0_i32_27 = arith.constant 0 : i32
    %72 = vector.broadcast %c0_i32_27 : i32 to vector<1x256xi32>
    %73 = arith.cmpi sge, %71, %72 : vector<1x256xi32>
    %c-2_i32_28 = arith.constant -2 : i32
    %74 = vector.broadcast %c-2_i32_28 : i32 to vector<1x256xi32>
    %75 = arith.addi %3, %74 : vector<1x256xi32>
    %c16_i32_29 = arith.constant 16 : i32
    %76 = vector.broadcast %c16_i32_29 : i32 to vector<1x256xi32>
    %77 = arith.cmpi slt, %75, %76 : vector<1x256xi32>
    %78 = arith.andi %73, %77 : vector<1x256xi1>
    %c-1_i32_30 = arith.constant -1 : i32
    %79 = vector.broadcast %c-1_i32_30 : i32 to vector<1x256xi32>
    %80 = arith.addi %3, %79 : vector<1x256xi32>
    %c0_i32_31 = arith.constant 0 : i32
    %81 = vector.broadcast %c0_i32_31 : i32 to vector<1x256xi32>
    %82 = arith.cmpi sge, %80, %81 : vector<1x256xi32>
    %c-1_i32_32 = arith.constant -1 : i32
    %83 = vector.broadcast %c-1_i32_32 : i32 to vector<1x256xi32>
    %84 = arith.addi %3, %83 : vector<1x256xi32>
    %c16_i32_33 = arith.constant 16 : i32
    %85 = vector.broadcast %c16_i32_33 : i32 to vector<1x256xi32>
    %86 = arith.cmpi slt, %84, %85 : vector<1x256xi32>
    %87 = arith.andi %82, %86 : vector<1x256xi1>
    %c0_i32_34 = arith.constant 0 : i32
    %88 = vector.broadcast %c0_i32_34 : i32 to vector<1x256xi32>
    %89 = arith.addi %3, %88 : vector<1x256xi32>
    %c0_i32_35 = arith.constant 0 : i32
    %90 = vector.broadcast %c0_i32_35 : i32 to vector<1x256xi32>
    %91 = arith.cmpi sge, %89, %90 : vector<1x256xi32>
    %c0_i32_36 = arith.constant 0 : i32
    %92 = vector.broadcast %c0_i32_36 : i32 to vector<1x256xi32>
    %93 = arith.addi %3, %92 : vector<1x256xi32>
    %c16_i32_37 = arith.constant 16 : i32
    %94 = vector.broadcast %c16_i32_37 : i32 to vector<1x256xi32>
    %95 = arith.cmpi slt, %93, %94 : vector<1x256xi32>
    %96 = arith.andi %91, %95 : vector<1x256xi1>
    %c1_i32_38 = arith.constant 1 : i32
    %97 = vector.broadcast %c1_i32_38 : i32 to vector<1x256xi32>
    %98 = arith.addi %3, %97 : vector<1x256xi32>
    %c0_i32_39 = arith.constant 0 : i32
    %99 = vector.broadcast %c0_i32_39 : i32 to vector<1x256xi32>
    %100 = arith.cmpi sge, %98, %99 : vector<1x256xi32>
    %c1_i32_40 = arith.constant 1 : i32
    %101 = vector.broadcast %c1_i32_40 : i32 to vector<1x256xi32>
    %102 = arith.addi %3, %101 : vector<1x256xi32>
    %c16_i32_41 = arith.constant 16 : i32
    %103 = vector.broadcast %c16_i32_41 : i32 to vector<1x256xi32>
    %104 = arith.cmpi slt, %102, %103 : vector<1x256xi32>
    %105 = arith.andi %100, %104 : vector<1x256xi1>
    %c2_i32 = arith.constant 2 : i32
    %106 = vector.broadcast %c2_i32 : i32 to vector<1x256xi32>
    %107 = arith.addi %3, %106 : vector<1x256xi32>
    %c0_i32_42 = arith.constant 0 : i32
    %108 = vector.broadcast %c0_i32_42 : i32 to vector<1x256xi32>
    %109 = arith.cmpi sge, %107, %108 : vector<1x256xi32>
    %c2_i32_43 = arith.constant 2 : i32
    %110 = vector.broadcast %c2_i32_43 : i32 to vector<1x256xi32>
    %111 = arith.addi %3, %110 : vector<1x256xi32>
    %c16_i32_44 = arith.constant 16 : i32
    %112 = vector.broadcast %c16_i32_44 : i32 to vector<1x256xi32>
    %113 = arith.cmpi slt, %111, %112 : vector<1x256xi32>
    %114 = arith.andi %109, %113 : vector<1x256xi1>
    %c3_i32 = arith.constant 3 : i32
    %115 = vector.broadcast %c3_i32 : i32 to vector<1x256xi32>
    %116 = arith.addi %3, %115 : vector<1x256xi32>
    %c0_i32_45 = arith.constant 0 : i32
    %117 = vector.broadcast %c0_i32_45 : i32 to vector<1x256xi32>
    %118 = arith.cmpi sge, %116, %117 : vector<1x256xi32>
    %c3_i32_46 = arith.constant 3 : i32
    %119 = vector.broadcast %c3_i32_46 : i32 to vector<1x256xi32>
    %120 = arith.addi %3, %119 : vector<1x256xi32>
    %c16_i32_47 = arith.constant 16 : i32
    %121 = vector.broadcast %c16_i32_47 : i32 to vector<1x256xi32>
    %122 = arith.cmpi slt, %120, %121 : vector<1x256xi32>
    %123 = arith.andi %118, %122 : vector<1x256xi1>
    %cst_48 = arith.constant 0.000000e+00 : f32
    %124 = vector.broadcast %cst_48 : f32 to vector<16x256xf32>
    %c-3_i32_49 = arith.constant -3 : i32
    %125 = vector.broadcast %c-3_i32_49 : i32 to vector<1x256xi32>
    %126 = arith.addi %2, %125 : vector<1x256xi32>
    %c0_i32_50 = arith.constant 0 : i32
    %127 = vector.broadcast %c0_i32_50 : i32 to vector<1x256xi32>
    %128 = arith.cmpi sge, %126, %127 : vector<1x256xi32>
    %c-3_i32_51 = arith.constant -3 : i32
    %129 = vector.broadcast %c-3_i32_51 : i32 to vector<1x256xi32>
    %130 = arith.addi %2, %129 : vector<1x256xi32>
    %c16_i32_52 = arith.constant 16 : i32
    %131 = vector.broadcast %c16_i32_52 : i32 to vector<1x256xi32>
    %132 = arith.cmpi slt, %130, %131 : vector<1x256xi32>
    %133 = arith.andi %128, %132 : vector<1x256xi1>
    %c51_i32 = arith.constant 51 : i32
    %134 = tpu.dynamic_rotate %1 by %c51_i32 dim 1 : vector<16x256xf32>, i32 -> vector<16x256xf32>
    %135 = vector.extract_strided_slice %60 {offsets = [0, 0], sizes = [16, 1], strides = [1, 1]} : vector<16x49xf32> to vector<16x1xf32>
    %136 = arith.andi %133, %69 : vector<1x256xi1>
    %cst_53 = arith.constant 0.000000e+00 : f32
    %137 = vector.shape_cast %136 : vector<1x256xi1> to vector<1x256xi1>
    %138 = vector.broadcast %137 : vector<1x256xi1> to vector<16x256xi1>
    %139 = vector.broadcast %cst_53 : f32 to vector<16x256xf32>
    %140 = arith.select %138, %134, %139 : vector<16x256xi1>, vector<16x256xf32>
    %141 = vector.broadcast %135 : vector<16x1xf32> to vector<16x256xf32>
    %142 = arith.mulf %140, %141 : vector<16x256xf32>
    %143 = arith.addf %124, %142 : vector<16x256xf32>
    %c50_i32 = arith.constant 50 : i32
    %144 = tpu.dynamic_rotate %1 by %c50_i32 dim 1 : vector<16x256xf32>, i32 -> vector<16x256xf32>
    %145 = vector.extract_strided_slice %60 {offsets = [0, 1], sizes = [16, 1], strides = [1, 1]} : vector<16x49xf32> to vector<16x1xf32>
    %146 = arith.andi %133, %78 : vector<1x256xi1>
    %cst_54 = arith.constant 0.000000e+00 : f32
    %147 = vector.shape_cast %146 : vector<1x256xi1> to vector<1x256xi1>
    %148 = vector.broadcast %147 : vector<1x256xi1> to vector<16x256xi1>
    %149 = vector.broadcast %cst_54 : f32 to vector<16x256xf32>
    %150 = arith.select %148, %144, %149 : vector<16x256xi1>, vector<16x256xf32>
    %151 = vector.broadcast %145 : vector<16x1xf32> to vector<16x256xf32>
    %152 = arith.mulf %150, %151 : vector<16x256xf32>
    %153 = arith.addf %143, %152 : vector<16x256xf32>
    %c49_i32 = arith.constant 49 : i32
    %154 = tpu.dynamic_rotate %1 by %c49_i32 dim 1 : vector<16x256xf32>, i32 -> vector<16x256xf32>
    %155 = vector.extract_strided_slice %60 {offsets = [0, 2], sizes = [16, 1], strides = [1, 1]} : vector<16x49xf32> to vector<16x1xf32>
    %156 = arith.andi %133, %87 : vector<1x256xi1>
    %cst_55 = arith.constant 0.000000e+00 : f32
    %157 = vector.shape_cast %156 : vector<1x256xi1> to vector<1x256xi1>
    %158 = vector.broadcast %157 : vector<1x256xi1> to vector<16x256xi1>
    %159 = vector.broadcast %cst_55 : f32 to vector<16x256xf32>
    %160 = arith.select %158, %154, %159 : vector<16x256xi1>, vector<16x256xf32>
    %161 = vector.broadcast %155 : vector<16x1xf32> to vector<16x256xf32>
    %162 = arith.mulf %160, %161 : vector<16x256xf32>
    %163 = arith.addf %153, %162 : vector<16x256xf32>
    %c48_i32 = arith.constant 48 : i32
    %164 = tpu.dynamic_rotate %1 by %c48_i32 dim 1 : vector<16x256xf32>, i32 -> vector<16x256xf32>
    %165 = vector.extract_strided_slice %60 {offsets = [0, 3], sizes = [16, 1], strides = [1, 1]} : vector<16x49xf32> to vector<16x1xf32>
    %166 = arith.andi %133, %96 : vector<1x256xi1>
    %cst_56 = arith.constant 0.000000e+00 : f32
    %167 = vector.shape_cast %166 : vector<1x256xi1> to vector<1x256xi1>
    %168 = vector.broadcast %167 : vector<1x256xi1> to vector<16x256xi1>
    %169 = vector.broadcast %cst_56 : f32 to vector<16x256xf32>
    %170 = arith.select %168, %164, %169 : vector<16x256xi1>, vector<16x256xf32>
    %171 = vector.broadcast %165 : vector<16x1xf32> to vector<16x256xf32>
    %172 = arith.mulf %170, %171 : vector<16x256xf32>
    %173 = arith.addf %163, %172 : vector<16x256xf32>
    %c47_i32 = arith.constant 47 : i32
    %174 = tpu.dynamic_rotate %1 by %c47_i32 dim 1 : vector<16x256xf32>, i32 -> vector<16x256xf32>
    %175 = vector.extract_strided_slice %60 {offsets = [0, 4], sizes = [16, 1], strides = [1, 1]} : vector<16x49xf32> to vector<16x1xf32>
    %176 = arith.andi %133, %105 : vector<1x256xi1>
    %cst_57 = arith.constant 0.000000e+00 : f32
    %177 = vector.shape_cast %176 : vector<1x256xi1> to vector<1x256xi1>
    %178 = vector.broadcast %177 : vector<1x256xi1> to vector<16x256xi1>
    %179 = vector.broadcast %cst_57 : f32 to vector<16x256xf32>
    %180 = arith.select %178, %174, %179 : vector<16x256xi1>, vector<16x256xf32>
    %181 = vector.broadcast %175 : vector<16x1xf32> to vector<16x256xf32>
    %182 = arith.mulf %180, %181 : vector<16x256xf32>
    %183 = arith.addf %173, %182 : vector<16x256xf32>
    %c46_i32 = arith.constant 46 : i32
    %184 = tpu.dynamic_rotate %1 by %c46_i32 dim 1 : vector<16x256xf32>, i32 -> vector<16x256xf32>
    %185 = vector.extract_strided_slice %60 {offsets = [0, 5], sizes = [16, 1], strides = [1, 1]} : vector<16x49xf32> to vector<16x1xf32>
    %186 = arith.andi %133, %114 : vector<1x256xi1>
    %cst_58 = arith.constant 0.000000e+00 : f32
    %187 = vector.shape_cast %186 : vector<1x256xi1> to vector<1x256xi1>
    %188 = vector.broadcast %187 : vector<1x256xi1> to vector<16x256xi1>
    %189 = vector.broadcast %cst_58 : f32 to vector<16x256xf32>
    %190 = arith.select %188, %184, %189 : vector<16x256xi1>, vector<16x256xf32>
    %191 = vector.broadcast %185 : vector<16x1xf32> to vector<16x256xf32>
    %192 = arith.mulf %190, %191 : vector<16x256xf32>
    %193 = arith.addf %183, %192 : vector<16x256xf32>
    %c45_i32 = arith.constant 45 : i32
    %194 = tpu.dynamic_rotate %1 by %c45_i32 dim 1 : vector<16x256xf32>, i32 -> vector<16x256xf32>
    %195 = vector.extract_strided_slice %60 {offsets = [0, 6], sizes = [16, 1], strides = [1, 1]} : vector<16x49xf32> to vector<16x1xf32>
    %196 = arith.andi %133, %123 : vector<1x256xi1>
    %cst_59 = arith.constant 0.000000e+00 : f32
    %197 = vector.shape_cast %196 : vector<1x256xi1> to vector<1x256xi1>
    %198 = vector.broadcast %197 : vector<1x256xi1> to vector<16x256xi1>
    %199 = vector.broadcast %cst_59 : f32 to vector<16x256xf32>
    %200 = arith.select %198, %194, %199 : vector<16x256xi1>, vector<16x256xf32>
    %201 = vector.broadcast %195 : vector<16x1xf32> to vector<16x256xf32>
    %202 = arith.mulf %200, %201 : vector<16x256xf32>
    %203 = arith.addf %193, %202 : vector<16x256xf32>
    %c-2_i32_60 = arith.constant -2 : i32
    %204 = vector.broadcast %c-2_i32_60 : i32 to vector<1x256xi32>
    %205 = arith.addi %2, %204 : vector<1x256xi32>
    %c0_i32_61 = arith.constant 0 : i32
    %206 = vector.broadcast %c0_i32_61 : i32 to vector<1x256xi32>
    %207 = arith.cmpi sge, %205, %206 : vector<1x256xi32>
    %c-2_i32_62 = arith.constant -2 : i32
    %208 = vector.broadcast %c-2_i32_62 : i32 to vector<1x256xi32>
    %209 = arith.addi %2, %208 : vector<1x256xi32>
    %c16_i32_63 = arith.constant 16 : i32
    %210 = vector.broadcast %c16_i32_63 : i32 to vector<1x256xi32>
    %211 = arith.cmpi slt, %209, %210 : vector<1x256xi32>
    %212 = arith.andi %207, %211 : vector<1x256xi1>
    %c35_i32 = arith.constant 35 : i32
    %213 = tpu.dynamic_rotate %1 by %c35_i32 dim 1 : vector<16x256xf32>, i32 -> vector<16x256xf32>
    %214 = vector.extract_strided_slice %60 {offsets = [0, 7], sizes = [16, 1], strides = [1, 1]} : vector<16x49xf32> to vector<16x1xf32>
    %215 = arith.andi %212, %69 : vector<1x256xi1>
    %cst_64 = arith.constant 0.000000e+00 : f32
    %216 = vector.shape_cast %215 : vector<1x256xi1> to vector<1x256xi1>
    %217 = vector.broadcast %216 : vector<1x256xi1> to vector<16x256xi1>
    %218 = vector.broadcast %cst_64 : f32 to vector<16x256xf32>
    %219 = arith.select %217, %213, %218 : vector<16x256xi1>, vector<16x256xf32>
    %220 = vector.broadcast %214 : vector<16x1xf32> to vector<16x256xf32>
    %221 = arith.mulf %219, %220 : vector<16x256xf32>
    %222 = arith.addf %203, %221 : vector<16x256xf32>
    %c34_i32 = arith.constant 34 : i32
    %223 = tpu.dynamic_rotate %1 by %c34_i32 dim 1 : vector<16x256xf32>, i32 -> vector<16x256xf32>
    %224 = vector.extract_strided_slice %60 {offsets = [0, 8], sizes = [16, 1], strides = [1, 1]} : vector<16x49xf32> to vector<16x1xf32>
    %225 = arith.andi %212, %78 : vector<1x256xi1>
    %cst_65 = arith.constant 0.000000e+00 : f32
    %226 = vector.shape_cast %225 : vector<1x256xi1> to vector<1x256xi1>
    %227 = vector.broadcast %226 : vector<1x256xi1> to vector<16x256xi1>
    %228 = vector.broadcast %cst_65 : f32 to vector<16x256xf32>
    %229 = arith.select %227, %223, %228 : vector<16x256xi1>, vector<16x256xf32>
    %230 = vector.broadcast %224 : vector<16x1xf32> to vector<16x256xf32>
    %231 = arith.mulf %229, %230 : vector<16x256xf32>
    %232 = arith.addf %222, %231 : vector<16x256xf32>
    %c33_i32 = arith.constant 33 : i32
    %233 = tpu.dynamic_rotate %1 by %c33_i32 dim 1 : vector<16x256xf32>, i32 -> vector<16x256xf32>
    %234 = vector.extract_strided_slice %60 {offsets = [0, 9], sizes = [16, 1], strides = [1, 1]} : vector<16x49xf32> to vector<16x1xf32>
    %235 = arith.andi %212, %87 : vector<1x256xi1>
    %cst_66 = arith.constant 0.000000e+00 : f32
    %236 = vector.shape_cast %235 : vector<1x256xi1> to vector<1x256xi1>
    %237 = vector.broadcast %236 : vector<1x256xi1> to vector<16x256xi1>
    %238 = vector.broadcast %cst_66 : f32 to vector<16x256xf32>
    %239 = arith.select %237, %233, %238 : vector<16x256xi1>, vector<16x256xf32>
    %240 = vector.broadcast %234 : vector<16x1xf32> to vector<16x256xf32>
    %241 = arith.mulf %239, %240 : vector<16x256xf32>
    %242 = arith.addf %232, %241 : vector<16x256xf32>
    %c32_i32 = arith.constant 32 : i32
    %243 = tpu.dynamic_rotate %1 by %c32_i32 dim 1 : vector<16x256xf32>, i32 -> vector<16x256xf32>
    %244 = vector.extract_strided_slice %60 {offsets = [0, 10], sizes = [16, 1], strides = [1, 1]} : vector<16x49xf32> to vector<16x1xf32>
    %245 = arith.andi %212, %96 : vector<1x256xi1>
    %cst_67 = arith.constant 0.000000e+00 : f32
    %246 = vector.shape_cast %245 : vector<1x256xi1> to vector<1x256xi1>
    %247 = vector.broadcast %246 : vector<1x256xi1> to vector<16x256xi1>
    %248 = vector.broadcast %cst_67 : f32 to vector<16x256xf32>
    %249 = arith.select %247, %243, %248 : vector<16x256xi1>, vector<16x256xf32>
    %250 = vector.broadcast %244 : vector<16x1xf32> to vector<16x256xf32>
    %251 = arith.mulf %249, %250 : vector<16x256xf32>
    %252 = arith.addf %242, %251 : vector<16x256xf32>
    %c31_i32 = arith.constant 31 : i32
    %253 = tpu.dynamic_rotate %1 by %c31_i32 dim 1 : vector<16x256xf32>, i32 -> vector<16x256xf32>
    %254 = vector.extract_strided_slice %60 {offsets = [0, 11], sizes = [16, 1], strides = [1, 1]} : vector<16x49xf32> to vector<16x1xf32>
    %255 = arith.andi %212, %105 : vector<1x256xi1>
    %cst_68 = arith.constant 0.000000e+00 : f32
    %256 = vector.shape_cast %255 : vector<1x256xi1> to vector<1x256xi1>
    %257 = vector.broadcast %256 : vector<1x256xi1> to vector<16x256xi1>
    %258 = vector.broadcast %cst_68 : f32 to vector<16x256xf32>
    %259 = arith.select %257, %253, %258 : vector<16x256xi1>, vector<16x256xf32>
    %260 = vector.broadcast %254 : vector<16x1xf32> to vector<16x256xf32>
    %261 = arith.mulf %259, %260 : vector<16x256xf32>
    %262 = arith.addf %252, %261 : vector<16x256xf32>
    %c30_i32 = arith.constant 30 : i32
    %263 = tpu.dynamic_rotate %1 by %c30_i32 dim 1 : vector<16x256xf32>, i32 -> vector<16x256xf32>
    %264 = vector.extract_strided_slice %60 {offsets = [0, 12], sizes = [16, 1], strides = [1, 1]} : vector<16x49xf32> to vector<16x1xf32>
    %265 = arith.andi %212, %114 : vector<1x256xi1>
    %cst_69 = arith.constant 0.000000e+00 : f32
    %266 = vector.shape_cast %265 : vector<1x256xi1> to vector<1x256xi1>
    %267 = vector.broadcast %266 : vector<1x256xi1> to vector<16x256xi1>
    %268 = vector.broadcast %cst_69 : f32 to vector<16x256xf32>
    %269 = arith.select %267, %263, %268 : vector<16x256xi1>, vector<16x256xf32>
    %270 = vector.broadcast %264 : vector<16x1xf32> to vector<16x256xf32>
    %271 = arith.mulf %269, %270 : vector<16x256xf32>
    %272 = arith.addf %262, %271 : vector<16x256xf32>
    %c29_i32 = arith.constant 29 : i32
    %273 = tpu.dynamic_rotate %1 by %c29_i32 dim 1 : vector<16x256xf32>, i32 -> vector<16x256xf32>
    %274 = vector.extract_strided_slice %60 {offsets = [0, 13], sizes = [16, 1], strides = [1, 1]} : vector<16x49xf32> to vector<16x1xf32>
    %275 = arith.andi %212, %123 : vector<1x256xi1>
    %cst_70 = arith.constant 0.000000e+00 : f32
    %276 = vector.shape_cast %275 : vector<1x256xi1> to vector<1x256xi1>
    %277 = vector.broadcast %276 : vector<1x256xi1> to vector<16x256xi1>
    %278 = vector.broadcast %cst_70 : f32 to vector<16x256xf32>
    %279 = arith.select %277, %273, %278 : vector<16x256xi1>, vector<16x256xf32>
    %280 = vector.broadcast %274 : vector<16x1xf32> to vector<16x256xf32>
    %281 = arith.mulf %279, %280 : vector<16x256xf32>
    %282 = arith.addf %272, %281 : vector<16x256xf32>
    %c-1_i32_71 = arith.constant -1 : i32
    %283 = vector.broadcast %c-1_i32_71 : i32 to vector<1x256xi32>
    %284 = arith.addi %2, %283 : vector<1x256xi32>
    %c0_i32_72 = arith.constant 0 : i32
    %285 = vector.broadcast %c0_i32_72 : i32 to vector<1x256xi32>
    %286 = arith.cmpi sge, %284, %285 : vector<1x256xi32>
    %c-1_i32_73 = arith.constant -1 : i32
    %287 = vector.broadcast %c-1_i32_73 : i32 to vector<1x256xi32>
    %288 = arith.addi %2, %287 : vector<1x256xi32>
    %c16_i32_74 = arith.constant 16 : i32
    %289 = vector.broadcast %c16_i32_74 : i32 to vector<1x256xi32>
    %290 = arith.cmpi slt, %288, %289 : vector<1x256xi32>
    %291 = arith.andi %286, %290 : vector<1x256xi1>
    %c19_i32 = arith.constant 19 : i32
    %292 = tpu.dynamic_rotate %1 by %c19_i32 dim 1 : vector<16x256xf32>, i32 -> vector<16x256xf32>
    %293 = vector.extract_strided_slice %60 {offsets = [0, 14], sizes = [16, 1], strides = [1, 1]} : vector<16x49xf32> to vector<16x1xf32>
    %294 = arith.andi %291, %69 : vector<1x256xi1>
    %cst_75 = arith.constant 0.000000e+00 : f32
    %295 = vector.shape_cast %294 : vector<1x256xi1> to vector<1x256xi1>
    %296 = vector.broadcast %295 : vector<1x256xi1> to vector<16x256xi1>
    %297 = vector.broadcast %cst_75 : f32 to vector<16x256xf32>
    %298 = arith.select %296, %292, %297 : vector<16x256xi1>, vector<16x256xf32>
    %299 = vector.broadcast %293 : vector<16x1xf32> to vector<16x256xf32>
    %300 = arith.mulf %298, %299 : vector<16x256xf32>
    %301 = arith.addf %282, %300 : vector<16x256xf32>
    %c18_i32 = arith.constant 18 : i32
    %302 = tpu.dynamic_rotate %1 by %c18_i32 dim 1 : vector<16x256xf32>, i32 -> vector<16x256xf32>
    %303 = vector.extract_strided_slice %60 {offsets = [0, 15], sizes = [16, 1], strides = [1, 1]} : vector<16x49xf32> to vector<16x1xf32>
    %304 = arith.andi %291, %78 : vector<1x256xi1>
    %cst_76 = arith.constant 0.000000e+00 : f32
    %305 = vector.shape_cast %304 : vector<1x256xi1> to vector<1x256xi1>
    %306 = vector.broadcast %305 : vector<1x256xi1> to vector<16x256xi1>
    %307 = vector.broadcast %cst_76 : f32 to vector<16x256xf32>
    %308 = arith.select %306, %302, %307 : vector<16x256xi1>, vector<16x256xf32>
    %309 = vector.broadcast %303 : vector<16x1xf32> to vector<16x256xf32>
    %310 = arith.mulf %308, %309 : vector<16x256xf32>
    %311 = arith.addf %301, %310 : vector<16x256xf32>
    %c17_i32 = arith.constant 17 : i32
    %312 = tpu.dynamic_rotate %1 by %c17_i32 dim 1 : vector<16x256xf32>, i32 -> vector<16x256xf32>
    %313 = vector.extract_strided_slice %60 {offsets = [0, 16], sizes = [16, 1], strides = [1, 1]} : vector<16x49xf32> to vector<16x1xf32>
    %314 = arith.andi %291, %87 : vector<1x256xi1>
    %cst_77 = arith.constant 0.000000e+00 : f32
    %315 = vector.shape_cast %314 : vector<1x256xi1> to vector<1x256xi1>
    %316 = vector.broadcast %315 : vector<1x256xi1> to vector<16x256xi1>
    %317 = vector.broadcast %cst_77 : f32 to vector<16x256xf32>
    %318 = arith.select %316, %312, %317 : vector<16x256xi1>, vector<16x256xf32>
    %319 = vector.broadcast %313 : vector<16x1xf32> to vector<16x256xf32>
    %320 = arith.mulf %318, %319 : vector<16x256xf32>
    %321 = arith.addf %311, %320 : vector<16x256xf32>
    %c16_i32_78 = arith.constant 16 : i32
    %322 = tpu.dynamic_rotate %1 by %c16_i32_78 dim 1 : vector<16x256xf32>, i32 -> vector<16x256xf32>
    %323 = vector.extract_strided_slice %60 {offsets = [0, 17], sizes = [16, 1], strides = [1, 1]} : vector<16x49xf32> to vector<16x1xf32>
    %324 = arith.andi %291, %96 : vector<1x256xi1>
    %cst_79 = arith.constant 0.000000e+00 : f32
    %325 = vector.shape_cast %324 : vector<1x256xi1> to vector<1x256xi1>
    %326 = vector.broadcast %325 : vector<1x256xi1> to vector<16x256xi1>
    %327 = vector.broadcast %cst_79 : f32 to vector<16x256xf32>
    %328 = arith.select %326, %322, %327 : vector<16x256xi1>, vector<16x256xf32>
    %329 = vector.broadcast %323 : vector<16x1xf32> to vector<16x256xf32>
    %330 = arith.mulf %328, %329 : vector<16x256xf32>
    %331 = arith.addf %321, %330 : vector<16x256xf32>
    %c15_i32_80 = arith.constant 15 : i32
    %332 = tpu.dynamic_rotate %1 by %c15_i32_80 dim 1 : vector<16x256xf32>, i32 -> vector<16x256xf32>
    %333 = vector.extract_strided_slice %60 {offsets = [0, 18], sizes = [16, 1], strides = [1, 1]} : vector<16x49xf32> to vector<16x1xf32>
    %334 = arith.andi %291, %105 : vector<1x256xi1>
    %cst_81 = arith.constant 0.000000e+00 : f32
    %335 = vector.shape_cast %334 : vector<1x256xi1> to vector<1x256xi1>
    %336 = vector.broadcast %335 : vector<1x256xi1> to vector<16x256xi1>
    %337 = vector.broadcast %cst_81 : f32 to vector<16x256xf32>
    %338 = arith.select %336, %332, %337 : vector<16x256xi1>, vector<16x256xf32>
    %339 = vector.broadcast %333 : vector<16x1xf32> to vector<16x256xf32>
    %340 = arith.mulf %338, %339 : vector<16x256xf32>
    %341 = arith.addf %331, %340 : vector<16x256xf32>
    %c14_i32 = arith.constant 14 : i32
    %342 = tpu.dynamic_rotate %1 by %c14_i32 dim 1 : vector<16x256xf32>, i32 -> vector<16x256xf32>
    %343 = vector.extract_strided_slice %60 {offsets = [0, 19], sizes = [16, 1], strides = [1, 1]} : vector<16x49xf32> to vector<16x1xf32>
    %344 = arith.andi %291, %114 : vector<1x256xi1>
    %cst_82 = arith.constant 0.000000e+00 : f32
    %345 = vector.shape_cast %344 : vector<1x256xi1> to vector<1x256xi1>
    %346 = vector.broadcast %345 : vector<1x256xi1> to vector<16x256xi1>
    %347 = vector.broadcast %cst_82 : f32 to vector<16x256xf32>
    %348 = arith.select %346, %342, %347 : vector<16x256xi1>, vector<16x256xf32>
    %349 = vector.broadcast %343 : vector<16x1xf32> to vector<16x256xf32>
    %350 = arith.mulf %348, %349 : vector<16x256xf32>
    %351 = arith.addf %341, %350 : vector<16x256xf32>
    %c13_i32 = arith.constant 13 : i32
    %352 = tpu.dynamic_rotate %1 by %c13_i32 dim 1 : vector<16x256xf32>, i32 -> vector<16x256xf32>
    %353 = vector.extract_strided_slice %60 {offsets = [0, 20], sizes = [16, 1], strides = [1, 1]} : vector<16x49xf32> to vector<16x1xf32>
    %354 = arith.andi %291, %123 : vector<1x256xi1>
    %cst_83 = arith.constant 0.000000e+00 : f32
    %355 = vector.shape_cast %354 : vector<1x256xi1> to vector<1x256xi1>
    %356 = vector.broadcast %355 : vector<1x256xi1> to vector<16x256xi1>
    %357 = vector.broadcast %cst_83 : f32 to vector<16x256xf32>
    %358 = arith.select %356, %352, %357 : vector<16x256xi1>, vector<16x256xf32>
    %359 = vector.broadcast %353 : vector<16x1xf32> to vector<16x256xf32>
    %360 = arith.mulf %358, %359 : vector<16x256xf32>
    %361 = arith.addf %351, %360 : vector<16x256xf32>
    %c0_i32_84 = arith.constant 0 : i32
    %362 = vector.broadcast %c0_i32_84 : i32 to vector<1x256xi32>
    %363 = arith.addi %2, %362 : vector<1x256xi32>
    %c0_i32_85 = arith.constant 0 : i32
    %364 = vector.broadcast %c0_i32_85 : i32 to vector<1x256xi32>
    %365 = arith.cmpi sge, %363, %364 : vector<1x256xi32>
    %c0_i32_86 = arith.constant 0 : i32
    %366 = vector.broadcast %c0_i32_86 : i32 to vector<1x256xi32>
    %367 = arith.addi %2, %366 : vector<1x256xi32>
    %c16_i32_87 = arith.constant 16 : i32
    %368 = vector.broadcast %c16_i32_87 : i32 to vector<1x256xi32>
    %369 = arith.cmpi slt, %367, %368 : vector<1x256xi32>
    %370 = arith.andi %365, %369 : vector<1x256xi1>
    %c3_i32_88 = arith.constant 3 : i32
    %371 = tpu.dynamic_rotate %1 by %c3_i32_88 dim 1 : vector<16x256xf32>, i32 -> vector<16x256xf32>
    %372 = vector.extract_strided_slice %60 {offsets = [0, 21], sizes = [16, 1], strides = [1, 1]} : vector<16x49xf32> to vector<16x1xf32>
    %373 = arith.andi %370, %69 : vector<1x256xi1>
    %cst_89 = arith.constant 0.000000e+00 : f32
    %374 = vector.shape_cast %373 : vector<1x256xi1> to vector<1x256xi1>
    %375 = vector.broadcast %374 : vector<1x256xi1> to vector<16x256xi1>
    %376 = vector.broadcast %cst_89 : f32 to vector<16x256xf32>
    %377 = arith.select %375, %371, %376 : vector<16x256xi1>, vector<16x256xf32>
    %378 = vector.broadcast %372 : vector<16x1xf32> to vector<16x256xf32>
    %379 = arith.mulf %377, %378 : vector<16x256xf32>
    %380 = arith.addf %361, %379 : vector<16x256xf32>
    %c2_i32_90 = arith.constant 2 : i32
    %381 = tpu.dynamic_rotate %1 by %c2_i32_90 dim 1 : vector<16x256xf32>, i32 -> vector<16x256xf32>
    %382 = vector.extract_strided_slice %60 {offsets = [0, 22], sizes = [16, 1], strides = [1, 1]} : vector<16x49xf32> to vector<16x1xf32>
    %383 = arith.andi %370, %78 : vector<1x256xi1>
    %cst_91 = arith.constant 0.000000e+00 : f32
    %384 = vector.shape_cast %383 : vector<1x256xi1> to vector<1x256xi1>
    %385 = vector.broadcast %384 : vector<1x256xi1> to vector<16x256xi1>
    %386 = vector.broadcast %cst_91 : f32 to vector<16x256xf32>
    %387 = arith.select %385, %381, %386 : vector<16x256xi1>, vector<16x256xf32>
    %388 = vector.broadcast %382 : vector<16x1xf32> to vector<16x256xf32>
    %389 = arith.mulf %387, %388 : vector<16x256xf32>
    %390 = arith.addf %380, %389 : vector<16x256xf32>
    %c1_i32_92 = arith.constant 1 : i32
    %391 = tpu.dynamic_rotate %1 by %c1_i32_92 dim 1 : vector<16x256xf32>, i32 -> vector<16x256xf32>
    %392 = vector.extract_strided_slice %60 {offsets = [0, 23], sizes = [16, 1], strides = [1, 1]} : vector<16x49xf32> to vector<16x1xf32>
    %393 = arith.andi %370, %87 : vector<1x256xi1>
    %cst_93 = arith.constant 0.000000e+00 : f32
    %394 = vector.shape_cast %393 : vector<1x256xi1> to vector<1x256xi1>
    %395 = vector.broadcast %394 : vector<1x256xi1> to vector<16x256xi1>
    %396 = vector.broadcast %cst_93 : f32 to vector<16x256xf32>
    %397 = arith.select %395, %391, %396 : vector<16x256xi1>, vector<16x256xf32>
    %398 = vector.broadcast %392 : vector<16x1xf32> to vector<16x256xf32>
    %399 = arith.mulf %397, %398 : vector<16x256xf32>
    %400 = arith.addf %390, %399 : vector<16x256xf32>
    %401 = vector.extract_strided_slice %60 {offsets = [0, 24], sizes = [16, 1], strides = [1, 1]} : vector<16x49xf32> to vector<16x1xf32>
    %402 = arith.andi %370, %96 : vector<1x256xi1>
    %cst_94 = arith.constant 0.000000e+00 : f32
    %403 = vector.shape_cast %402 : vector<1x256xi1> to vector<1x256xi1>
    %404 = vector.broadcast %403 : vector<1x256xi1> to vector<16x256xi1>
    %405 = vector.broadcast %cst_94 : f32 to vector<16x256xf32>
    %406 = arith.select %404, %1, %405 : vector<16x256xi1>, vector<16x256xf32>
    %407 = vector.broadcast %401 : vector<16x1xf32> to vector<16x256xf32>
    %408 = arith.mulf %406, %407 : vector<16x256xf32>
    %409 = arith.addf %400, %408 : vector<16x256xf32>
    %c255_i32 = arith.constant 255 : i32
    %410 = tpu.dynamic_rotate %1 by %c255_i32 dim 1 : vector<16x256xf32>, i32 -> vector<16x256xf32>
    %411 = vector.extract_strided_slice %60 {offsets = [0, 25], sizes = [16, 1], strides = [1, 1]} : vector<16x49xf32> to vector<16x1xf32>
    %412 = arith.andi %370, %105 : vector<1x256xi1>
    %cst_95 = arith.constant 0.000000e+00 : f32
    %413 = vector.shape_cast %412 : vector<1x256xi1> to vector<1x256xi1>
    %414 = vector.broadcast %413 : vector<1x256xi1> to vector<16x256xi1>
    %415 = vector.broadcast %cst_95 : f32 to vector<16x256xf32>
    %416 = arith.select %414, %410, %415 : vector<16x256xi1>, vector<16x256xf32>
    %417 = vector.broadcast %411 : vector<16x1xf32> to vector<16x256xf32>
    %418 = arith.mulf %416, %417 : vector<16x256xf32>
    %419 = arith.addf %409, %418 : vector<16x256xf32>
    %c254_i32 = arith.constant 254 : i32
    %420 = tpu.dynamic_rotate %1 by %c254_i32 dim 1 : vector<16x256xf32>, i32 -> vector<16x256xf32>
    %421 = vector.extract_strided_slice %60 {offsets = [0, 26], sizes = [16, 1], strides = [1, 1]} : vector<16x49xf32> to vector<16x1xf32>
    %422 = arith.andi %370, %114 : vector<1x256xi1>
    %cst_96 = arith.constant 0.000000e+00 : f32
    %423 = vector.shape_cast %422 : vector<1x256xi1> to vector<1x256xi1>
    %424 = vector.broadcast %423 : vector<1x256xi1> to vector<16x256xi1>
    %425 = vector.broadcast %cst_96 : f32 to vector<16x256xf32>
    %426 = arith.select %424, %420, %425 : vector<16x256xi1>, vector<16x256xf32>
    %427 = vector.broadcast %421 : vector<16x1xf32> to vector<16x256xf32>
    %428 = arith.mulf %426, %427 : vector<16x256xf32>
    %429 = arith.addf %419, %428 : vector<16x256xf32>
    %c253_i32 = arith.constant 253 : i32
    %430 = tpu.dynamic_rotate %1 by %c253_i32 dim 1 : vector<16x256xf32>, i32 -> vector<16x256xf32>
    %431 = vector.extract_strided_slice %60 {offsets = [0, 27], sizes = [16, 1], strides = [1, 1]} : vector<16x49xf32> to vector<16x1xf32>
    %432 = arith.andi %370, %123 : vector<1x256xi1>
    %cst_97 = arith.constant 0.000000e+00 : f32
    %433 = vector.shape_cast %432 : vector<1x256xi1> to vector<1x256xi1>
    %434 = vector.broadcast %433 : vector<1x256xi1> to vector<16x256xi1>
    %435 = vector.broadcast %cst_97 : f32 to vector<16x256xf32>
    %436 = arith.select %434, %430, %435 : vector<16x256xi1>, vector<16x256xf32>
    %437 = vector.broadcast %431 : vector<16x1xf32> to vector<16x256xf32>
    %438 = arith.mulf %436, %437 : vector<16x256xf32>
    %439 = arith.addf %429, %438 : vector<16x256xf32>
    %c1_i32_98 = arith.constant 1 : i32
    %440 = vector.broadcast %c1_i32_98 : i32 to vector<1x256xi32>
    %441 = arith.addi %2, %440 : vector<1x256xi32>
    %c0_i32_99 = arith.constant 0 : i32
    %442 = vector.broadcast %c0_i32_99 : i32 to vector<1x256xi32>
    %443 = arith.cmpi sge, %441, %442 : vector<1x256xi32>
    %c1_i32_100 = arith.constant 1 : i32
    %444 = vector.broadcast %c1_i32_100 : i32 to vector<1x256xi32>
    %445 = arith.addi %2, %444 : vector<1x256xi32>
    %c16_i32_101 = arith.constant 16 : i32
    %446 = vector.broadcast %c16_i32_101 : i32 to vector<1x256xi32>
    %447 = arith.cmpi slt, %445, %446 : vector<1x256xi32>
    %448 = arith.andi %443, %447 : vector<1x256xi1>
    %c243_i32 = arith.constant 243 : i32
    %449 = tpu.dynamic_rotate %1 by %c243_i32 dim 1 : vector<16x256xf32>, i32 -> vector<16x256xf32>
    %450 = vector.extract_strided_slice %60 {offsets = [0, 28], sizes = [16, 1], strides = [1, 1]} : vector<16x49xf32> to vector<16x1xf32>
    %451 = arith.andi %448, %69 : vector<1x256xi1>
    %cst_102 = arith.constant 0.000000e+00 : f32
    %452 = vector.shape_cast %451 : vector<1x256xi1> to vector<1x256xi1>
    %453 = vector.broadcast %452 : vector<1x256xi1> to vector<16x256xi1>
    %454 = vector.broadcast %cst_102 : f32 to vector<16x256xf32>
    %455 = arith.select %453, %449, %454 : vector<16x256xi1>, vector<16x256xf32>
    %456 = vector.broadcast %450 : vector<16x1xf32> to vector<16x256xf32>
    %457 = arith.mulf %455, %456 : vector<16x256xf32>
    %458 = arith.addf %439, %457 : vector<16x256xf32>
    %c242_i32 = arith.constant 242 : i32
    %459 = tpu.dynamic_rotate %1 by %c242_i32 dim 1 : vector<16x256xf32>, i32 -> vector<16x256xf32>
    %460 = vector.extract_strided_slice %60 {offsets = [0, 29], sizes = [16, 1], strides = [1, 1]} : vector<16x49xf32> to vector<16x1xf32>
    %461 = arith.andi %448, %78 : vector<1x256xi1>
    %cst_103 = arith.constant 0.000000e+00 : f32
    %462 = vector.shape_cast %461 : vector<1x256xi1> to vector<1x256xi1>
    %463 = vector.broadcast %462 : vector<1x256xi1> to vector<16x256xi1>
    %464 = vector.broadcast %cst_103 : f32 to vector<16x256xf32>
    %465 = arith.select %463, %459, %464 : vector<16x256xi1>, vector<16x256xf32>
    %466 = vector.broadcast %460 : vector<16x1xf32> to vector<16x256xf32>
    %467 = arith.mulf %465, %466 : vector<16x256xf32>
    %468 = arith.addf %458, %467 : vector<16x256xf32>
    %c241_i32 = arith.constant 241 : i32
    %469 = tpu.dynamic_rotate %1 by %c241_i32 dim 1 : vector<16x256xf32>, i32 -> vector<16x256xf32>
    %470 = vector.extract_strided_slice %60 {offsets = [0, 30], sizes = [16, 1], strides = [1, 1]} : vector<16x49xf32> to vector<16x1xf32>
    %471 = arith.andi %448, %87 : vector<1x256xi1>
    %cst_104 = arith.constant 0.000000e+00 : f32
    %472 = vector.shape_cast %471 : vector<1x256xi1> to vector<1x256xi1>
    %473 = vector.broadcast %472 : vector<1x256xi1> to vector<16x256xi1>
    %474 = vector.broadcast %cst_104 : f32 to vector<16x256xf32>
    %475 = arith.select %473, %469, %474 : vector<16x256xi1>, vector<16x256xf32>
    %476 = vector.broadcast %470 : vector<16x1xf32> to vector<16x256xf32>
    %477 = arith.mulf %475, %476 : vector<16x256xf32>
    %478 = arith.addf %468, %477 : vector<16x256xf32>
    %c240_i32 = arith.constant 240 : i32
    %479 = tpu.dynamic_rotate %1 by %c240_i32 dim 1 : vector<16x256xf32>, i32 -> vector<16x256xf32>
    %480 = vector.extract_strided_slice %60 {offsets = [0, 31], sizes = [16, 1], strides = [1, 1]} : vector<16x49xf32> to vector<16x1xf32>
    %481 = arith.andi %448, %96 : vector<1x256xi1>
    %cst_105 = arith.constant 0.000000e+00 : f32
    %482 = vector.shape_cast %481 : vector<1x256xi1> to vector<1x256xi1>
    %483 = vector.broadcast %482 : vector<1x256xi1> to vector<16x256xi1>
    %484 = vector.broadcast %cst_105 : f32 to vector<16x256xf32>
    %485 = arith.select %483, %479, %484 : vector<16x256xi1>, vector<16x256xf32>
    %486 = vector.broadcast %480 : vector<16x1xf32> to vector<16x256xf32>
    %487 = arith.mulf %485, %486 : vector<16x256xf32>
    %488 = arith.addf %478, %487 : vector<16x256xf32>
    %c239_i32 = arith.constant 239 : i32
    %489 = tpu.dynamic_rotate %1 by %c239_i32 dim 1 : vector<16x256xf32>, i32 -> vector<16x256xf32>
    %490 = vector.extract_strided_slice %60 {offsets = [0, 32], sizes = [16, 1], strides = [1, 1]} : vector<16x49xf32> to vector<16x1xf32>
    %491 = arith.andi %448, %105 : vector<1x256xi1>
    %cst_106 = arith.constant 0.000000e+00 : f32
    %492 = vector.shape_cast %491 : vector<1x256xi1> to vector<1x256xi1>
    %493 = vector.broadcast %492 : vector<1x256xi1> to vector<16x256xi1>
    %494 = vector.broadcast %cst_106 : f32 to vector<16x256xf32>
    %495 = arith.select %493, %489, %494 : vector<16x256xi1>, vector<16x256xf32>
    %496 = vector.broadcast %490 : vector<16x1xf32> to vector<16x256xf32>
    %497 = arith.mulf %495, %496 : vector<16x256xf32>
    %498 = arith.addf %488, %497 : vector<16x256xf32>
    %c238_i32 = arith.constant 238 : i32
    %499 = tpu.dynamic_rotate %1 by %c238_i32 dim 1 : vector<16x256xf32>, i32 -> vector<16x256xf32>
    %500 = vector.extract_strided_slice %60 {offsets = [0, 33], sizes = [16, 1], strides = [1, 1]} : vector<16x49xf32> to vector<16x1xf32>
    %501 = arith.andi %448, %114 : vector<1x256xi1>
    %cst_107 = arith.constant 0.000000e+00 : f32
    %502 = vector.shape_cast %501 : vector<1x256xi1> to vector<1x256xi1>
    %503 = vector.broadcast %502 : vector<1x256xi1> to vector<16x256xi1>
    %504 = vector.broadcast %cst_107 : f32 to vector<16x256xf32>
    %505 = arith.select %503, %499, %504 : vector<16x256xi1>, vector<16x256xf32>
    %506 = vector.broadcast %500 : vector<16x1xf32> to vector<16x256xf32>
    %507 = arith.mulf %505, %506 : vector<16x256xf32>
    %508 = arith.addf %498, %507 : vector<16x256xf32>
    %c237_i32 = arith.constant 237 : i32
    %509 = tpu.dynamic_rotate %1 by %c237_i32 dim 1 : vector<16x256xf32>, i32 -> vector<16x256xf32>
    %510 = vector.extract_strided_slice %60 {offsets = [0, 34], sizes = [16, 1], strides = [1, 1]} : vector<16x49xf32> to vector<16x1xf32>
    %511 = arith.andi %448, %123 : vector<1x256xi1>
    %cst_108 = arith.constant 0.000000e+00 : f32
    %512 = vector.shape_cast %511 : vector<1x256xi1> to vector<1x256xi1>
    %513 = vector.broadcast %512 : vector<1x256xi1> to vector<16x256xi1>
    %514 = vector.broadcast %cst_108 : f32 to vector<16x256xf32>
    %515 = arith.select %513, %509, %514 : vector<16x256xi1>, vector<16x256xf32>
    %516 = vector.broadcast %510 : vector<16x1xf32> to vector<16x256xf32>
    %517 = arith.mulf %515, %516 : vector<16x256xf32>
    %518 = arith.addf %508, %517 : vector<16x256xf32>
    %c2_i32_109 = arith.constant 2 : i32
    %519 = vector.broadcast %c2_i32_109 : i32 to vector<1x256xi32>
    %520 = arith.addi %2, %519 : vector<1x256xi32>
    %c0_i32_110 = arith.constant 0 : i32
    %521 = vector.broadcast %c0_i32_110 : i32 to vector<1x256xi32>
    %522 = arith.cmpi sge, %520, %521 : vector<1x256xi32>
    %c2_i32_111 = arith.constant 2 : i32
    %523 = vector.broadcast %c2_i32_111 : i32 to vector<1x256xi32>
    %524 = arith.addi %2, %523 : vector<1x256xi32>
    %c16_i32_112 = arith.constant 16 : i32
    %525 = vector.broadcast %c16_i32_112 : i32 to vector<1x256xi32>
    %526 = arith.cmpi slt, %524, %525 : vector<1x256xi32>
    %527 = arith.andi %522, %526 : vector<1x256xi1>
    %c227_i32 = arith.constant 227 : i32
    %528 = tpu.dynamic_rotate %1 by %c227_i32 dim 1 : vector<16x256xf32>, i32 -> vector<16x256xf32>
    %529 = vector.extract_strided_slice %60 {offsets = [0, 35], sizes = [16, 1], strides = [1, 1]} : vector<16x49xf32> to vector<16x1xf32>
    %530 = arith.andi %527, %69 : vector<1x256xi1>
    %cst_113 = arith.constant 0.000000e+00 : f32
    %531 = vector.shape_cast %530 : vector<1x256xi1> to vector<1x256xi1>
    %532 = vector.broadcast %531 : vector<1x256xi1> to vector<16x256xi1>
    %533 = vector.broadcast %cst_113 : f32 to vector<16x256xf32>
    %534 = arith.select %532, %528, %533 : vector<16x256xi1>, vector<16x256xf32>
    %535 = vector.broadcast %529 : vector<16x1xf32> to vector<16x256xf32>
    %536 = arith.mulf %534, %535 : vector<16x256xf32>
    %537 = arith.addf %518, %536 : vector<16x256xf32>
    %c226_i32 = arith.constant 226 : i32
    %538 = tpu.dynamic_rotate %1 by %c226_i32 dim 1 : vector<16x256xf32>, i32 -> vector<16x256xf32>
    %539 = vector.extract_strided_slice %60 {offsets = [0, 36], sizes = [16, 1], strides = [1, 1]} : vector<16x49xf32> to vector<16x1xf32>
    %540 = arith.andi %527, %78 : vector<1x256xi1>
    %cst_114 = arith.constant 0.000000e+00 : f32
    %541 = vector.shape_cast %540 : vector<1x256xi1> to vector<1x256xi1>
    %542 = vector.broadcast %541 : vector<1x256xi1> to vector<16x256xi1>
    %543 = vector.broadcast %cst_114 : f32 to vector<16x256xf32>
    %544 = arith.select %542, %538, %543 : vector<16x256xi1>, vector<16x256xf32>
    %545 = vector.broadcast %539 : vector<16x1xf32> to vector<16x256xf32>
    %546 = arith.mulf %544, %545 : vector<16x256xf32>
    %547 = arith.addf %537, %546 : vector<16x256xf32>
    %c225_i32 = arith.constant 225 : i32
    %548 = tpu.dynamic_rotate %1 by %c225_i32 dim 1 : vector<16x256xf32>, i32 -> vector<16x256xf32>
    %549 = vector.extract_strided_slice %60 {offsets = [0, 37], sizes = [16, 1], strides = [1, 1]} : vector<16x49xf32> to vector<16x1xf32>
    %550 = arith.andi %527, %87 : vector<1x256xi1>
    %cst_115 = arith.constant 0.000000e+00 : f32
    %551 = vector.shape_cast %550 : vector<1x256xi1> to vector<1x256xi1>
    %552 = vector.broadcast %551 : vector<1x256xi1> to vector<16x256xi1>
    %553 = vector.broadcast %cst_115 : f32 to vector<16x256xf32>
    %554 = arith.select %552, %548, %553 : vector<16x256xi1>, vector<16x256xf32>
    %555 = vector.broadcast %549 : vector<16x1xf32> to vector<16x256xf32>
    %556 = arith.mulf %554, %555 : vector<16x256xf32>
    %557 = arith.addf %547, %556 : vector<16x256xf32>
    %c224_i32 = arith.constant 224 : i32
    %558 = tpu.dynamic_rotate %1 by %c224_i32 dim 1 : vector<16x256xf32>, i32 -> vector<16x256xf32>
    %559 = vector.extract_strided_slice %60 {offsets = [0, 38], sizes = [16, 1], strides = [1, 1]} : vector<16x49xf32> to vector<16x1xf32>
    %560 = arith.andi %527, %96 : vector<1x256xi1>
    %cst_116 = arith.constant 0.000000e+00 : f32
    %561 = vector.shape_cast %560 : vector<1x256xi1> to vector<1x256xi1>
    %562 = vector.broadcast %561 : vector<1x256xi1> to vector<16x256xi1>
    %563 = vector.broadcast %cst_116 : f32 to vector<16x256xf32>
    %564 = arith.select %562, %558, %563 : vector<16x256xi1>, vector<16x256xf32>
    %565 = vector.broadcast %559 : vector<16x1xf32> to vector<16x256xf32>
    %566 = arith.mulf %564, %565 : vector<16x256xf32>
    %567 = arith.addf %557, %566 : vector<16x256xf32>
    %c223_i32 = arith.constant 223 : i32
    %568 = tpu.dynamic_rotate %1 by %c223_i32 dim 1 : vector<16x256xf32>, i32 -> vector<16x256xf32>
    %569 = vector.extract_strided_slice %60 {offsets = [0, 39], sizes = [16, 1], strides = [1, 1]} : vector<16x49xf32> to vector<16x1xf32>
    %570 = arith.andi %527, %105 : vector<1x256xi1>
    %cst_117 = arith.constant 0.000000e+00 : f32
    %571 = vector.shape_cast %570 : vector<1x256xi1> to vector<1x256xi1>
    %572 = vector.broadcast %571 : vector<1x256xi1> to vector<16x256xi1>
    %573 = vector.broadcast %cst_117 : f32 to vector<16x256xf32>
    %574 = arith.select %572, %568, %573 : vector<16x256xi1>, vector<16x256xf32>
    %575 = vector.broadcast %569 : vector<16x1xf32> to vector<16x256xf32>
    %576 = arith.mulf %574, %575 : vector<16x256xf32>
    %577 = arith.addf %567, %576 : vector<16x256xf32>
    %c222_i32 = arith.constant 222 : i32
    %578 = tpu.dynamic_rotate %1 by %c222_i32 dim 1 : vector<16x256xf32>, i32 -> vector<16x256xf32>
    %579 = vector.extract_strided_slice %60 {offsets = [0, 40], sizes = [16, 1], strides = [1, 1]} : vector<16x49xf32> to vector<16x1xf32>
    %580 = arith.andi %527, %114 : vector<1x256xi1>
    %cst_118 = arith.constant 0.000000e+00 : f32
    %581 = vector.shape_cast %580 : vector<1x256xi1> to vector<1x256xi1>
    %582 = vector.broadcast %581 : vector<1x256xi1> to vector<16x256xi1>
    %583 = vector.broadcast %cst_118 : f32 to vector<16x256xf32>
    %584 = arith.select %582, %578, %583 : vector<16x256xi1>, vector<16x256xf32>
    %585 = vector.broadcast %579 : vector<16x1xf32> to vector<16x256xf32>
    %586 = arith.mulf %584, %585 : vector<16x256xf32>
    %587 = arith.addf %577, %586 : vector<16x256xf32>
    %c221_i32 = arith.constant 221 : i32
    %588 = tpu.dynamic_rotate %1 by %c221_i32 dim 1 : vector<16x256xf32>, i32 -> vector<16x256xf32>
    %589 = vector.extract_strided_slice %60 {offsets = [0, 41], sizes = [16, 1], strides = [1, 1]} : vector<16x49xf32> to vector<16x1xf32>
    %590 = arith.andi %527, %123 : vector<1x256xi1>
    %cst_119 = arith.constant 0.000000e+00 : f32
    %591 = vector.shape_cast %590 : vector<1x256xi1> to vector<1x256xi1>
    %592 = vector.broadcast %591 : vector<1x256xi1> to vector<16x256xi1>
    %593 = vector.broadcast %cst_119 : f32 to vector<16x256xf32>
    %594 = arith.select %592, %588, %593 : vector<16x256xi1>, vector<16x256xf32>
    %595 = vector.broadcast %589 : vector<16x1xf32> to vector<16x256xf32>
    %596 = arith.mulf %594, %595 : vector<16x256xf32>
    %597 = arith.addf %587, %596 : vector<16x256xf32>
    %c3_i32_120 = arith.constant 3 : i32
    %598 = vector.broadcast %c3_i32_120 : i32 to vector<1x256xi32>
    %599 = arith.addi %2, %598 : vector<1x256xi32>
    %c0_i32_121 = arith.constant 0 : i32
    %600 = vector.broadcast %c0_i32_121 : i32 to vector<1x256xi32>
    %601 = arith.cmpi sge, %599, %600 : vector<1x256xi32>
    %c3_i32_122 = arith.constant 3 : i32
    %602 = vector.broadcast %c3_i32_122 : i32 to vector<1x256xi32>
    %603 = arith.addi %2, %602 : vector<1x256xi32>
    %c16_i32_123 = arith.constant 16 : i32
    %604 = vector.broadcast %c16_i32_123 : i32 to vector<1x256xi32>
    %605 = arith.cmpi slt, %603, %604 : vector<1x256xi32>
    %606 = arith.andi %601, %605 : vector<1x256xi1>
    %c211_i32 = arith.constant 211 : i32
    %607 = tpu.dynamic_rotate %1 by %c211_i32 dim 1 : vector<16x256xf32>, i32 -> vector<16x256xf32>
    %608 = vector.extract_strided_slice %60 {offsets = [0, 42], sizes = [16, 1], strides = [1, 1]} : vector<16x49xf32> to vector<16x1xf32>
    %609 = arith.andi %606, %69 : vector<1x256xi1>
    %cst_124 = arith.constant 0.000000e+00 : f32
    %610 = vector.shape_cast %609 : vector<1x256xi1> to vector<1x256xi1>
    %611 = vector.broadcast %610 : vector<1x256xi1> to vector<16x256xi1>
    %612 = vector.broadcast %cst_124 : f32 to vector<16x256xf32>
    %613 = arith.select %611, %607, %612 : vector<16x256xi1>, vector<16x256xf32>
    %614 = vector.broadcast %608 : vector<16x1xf32> to vector<16x256xf32>
    %615 = arith.mulf %613, %614 : vector<16x256xf32>
    %616 = arith.addf %597, %615 : vector<16x256xf32>
    %c210_i32 = arith.constant 210 : i32
    %617 = tpu.dynamic_rotate %1 by %c210_i32 dim 1 : vector<16x256xf32>, i32 -> vector<16x256xf32>
    %618 = vector.extract_strided_slice %60 {offsets = [0, 43], sizes = [16, 1], strides = [1, 1]} : vector<16x49xf32> to vector<16x1xf32>
    %619 = arith.andi %606, %78 : vector<1x256xi1>
    %cst_125 = arith.constant 0.000000e+00 : f32
    %620 = vector.shape_cast %619 : vector<1x256xi1> to vector<1x256xi1>
    %621 = vector.broadcast %620 : vector<1x256xi1> to vector<16x256xi1>
    %622 = vector.broadcast %cst_125 : f32 to vector<16x256xf32>
    %623 = arith.select %621, %617, %622 : vector<16x256xi1>, vector<16x256xf32>
    %624 = vector.broadcast %618 : vector<16x1xf32> to vector<16x256xf32>
    %625 = arith.mulf %623, %624 : vector<16x256xf32>
    %626 = arith.addf %616, %625 : vector<16x256xf32>
    %c209_i32 = arith.constant 209 : i32
    %627 = tpu.dynamic_rotate %1 by %c209_i32 dim 1 : vector<16x256xf32>, i32 -> vector<16x256xf32>
    %628 = vector.extract_strided_slice %60 {offsets = [0, 44], sizes = [16, 1], strides = [1, 1]} : vector<16x49xf32> to vector<16x1xf32>
    %629 = arith.andi %606, %87 : vector<1x256xi1>
    %cst_126 = arith.constant 0.000000e+00 : f32
    %630 = vector.shape_cast %629 : vector<1x256xi1> to vector<1x256xi1>
    %631 = vector.broadcast %630 : vector<1x256xi1> to vector<16x256xi1>
    %632 = vector.broadcast %cst_126 : f32 to vector<16x256xf32>
    %633 = arith.select %631, %627, %632 : vector<16x256xi1>, vector<16x256xf32>
    %634 = vector.broadcast %628 : vector<16x1xf32> to vector<16x256xf32>
    %635 = arith.mulf %633, %634 : vector<16x256xf32>
    %636 = arith.addf %626, %635 : vector<16x256xf32>
    %c208_i32 = arith.constant 208 : i32
    %637 = tpu.dynamic_rotate %1 by %c208_i32 dim 1 : vector<16x256xf32>, i32 -> vector<16x256xf32>
    %638 = vector.extract_strided_slice %60 {offsets = [0, 45], sizes = [16, 1], strides = [1, 1]} : vector<16x49xf32> to vector<16x1xf32>
    %639 = arith.andi %606, %96 : vector<1x256xi1>
    %cst_127 = arith.constant 0.000000e+00 : f32
    %640 = vector.shape_cast %639 : vector<1x256xi1> to vector<1x256xi1>
    %641 = vector.broadcast %640 : vector<1x256xi1> to vector<16x256xi1>
    %642 = vector.broadcast %cst_127 : f32 to vector<16x256xf32>
    %643 = arith.select %641, %637, %642 : vector<16x256xi1>, vector<16x256xf32>
    %644 = vector.broadcast %638 : vector<16x1xf32> to vector<16x256xf32>
    %645 = arith.mulf %643, %644 : vector<16x256xf32>
    %646 = arith.addf %636, %645 : vector<16x256xf32>
    %c207_i32 = arith.constant 207 : i32
    %647 = tpu.dynamic_rotate %1 by %c207_i32 dim 1 : vector<16x256xf32>, i32 -> vector<16x256xf32>
    %648 = vector.extract_strided_slice %60 {offsets = [0, 46], sizes = [16, 1], strides = [1, 1]} : vector<16x49xf32> to vector<16x1xf32>
    %649 = arith.andi %606, %105 : vector<1x256xi1>
    %cst_128 = arith.constant 0.000000e+00 : f32
    %650 = vector.shape_cast %649 : vector<1x256xi1> to vector<1x256xi1>
    %651 = vector.broadcast %650 : vector<1x256xi1> to vector<16x256xi1>
    %652 = vector.broadcast %cst_128 : f32 to vector<16x256xf32>
    %653 = arith.select %651, %647, %652 : vector<16x256xi1>, vector<16x256xf32>
    %654 = vector.broadcast %648 : vector<16x1xf32> to vector<16x256xf32>
    %655 = arith.mulf %653, %654 : vector<16x256xf32>
    %656 = arith.addf %646, %655 : vector<16x256xf32>
    %c206_i32 = arith.constant 206 : i32
    %657 = tpu.dynamic_rotate %1 by %c206_i32 dim 1 : vector<16x256xf32>, i32 -> vector<16x256xf32>
    %658 = vector.extract_strided_slice %60 {offsets = [0, 47], sizes = [16, 1], strides = [1, 1]} : vector<16x49xf32> to vector<16x1xf32>
    %659 = arith.andi %606, %114 : vector<1x256xi1>
    %cst_129 = arith.constant 0.000000e+00 : f32
    %660 = vector.shape_cast %659 : vector<1x256xi1> to vector<1x256xi1>
    %661 = vector.broadcast %660 : vector<1x256xi1> to vector<16x256xi1>
    %662 = vector.broadcast %cst_129 : f32 to vector<16x256xf32>
    %663 = arith.select %661, %657, %662 : vector<16x256xi1>, vector<16x256xf32>
    %664 = vector.broadcast %658 : vector<16x1xf32> to vector<16x256xf32>
    %665 = arith.mulf %663, %664 : vector<16x256xf32>
    %666 = arith.addf %656, %665 : vector<16x256xf32>
    %c205_i32 = arith.constant 205 : i32
    %667 = tpu.dynamic_rotate %1 by %c205_i32 dim 1 : vector<16x256xf32>, i32 -> vector<16x256xf32>
    %668 = vector.extract_strided_slice %60 {offsets = [0, 48], sizes = [16, 1], strides = [1, 1]} : vector<16x49xf32> to vector<16x1xf32>
    %669 = arith.andi %606, %123 : vector<1x256xi1>
    %cst_130 = arith.constant 0.000000e+00 : f32
    %670 = vector.shape_cast %669 : vector<1x256xi1> to vector<1x256xi1>
    %671 = vector.broadcast %670 : vector<1x256xi1> to vector<16x256xi1>
    %672 = vector.broadcast %cst_130 : f32 to vector<16x256xf32>
    %673 = arith.select %671, %667, %672 : vector<16x256xi1>, vector<16x256xf32>
    %674 = vector.broadcast %668 : vector<16x1xf32> to vector<16x256xf32>
    %675 = arith.mulf %673, %674 : vector<16x256xf32>
    %676 = arith.addf %666, %675 : vector<16x256xf32>
    %677 = vector.broadcast %59 : vector<16x1xf32> to vector<16x256xf32>
    %678 = arith.addf %677, %676 : vector<16x256xf32>
    %679 = arith.negf %678 : vector<16x256xf32>
    %680 = math.exp %679 : vector<16x256xf32>
    %cst_131 = arith.constant 1.000000e+00 : f32
    %681 = vector.broadcast %cst_131 : f32 to vector<16x256xf32>
    %682 = arith.addf %681, %680 : vector<16x256xf32>
    %683 = arith.divf %681, %682 : vector<16x256xf32>
    %684 = arith.mulf %1, %683 : vector<16x256xf32>
    %685 = arith.addf %684, %1 : vector<16x256xf32>
    %c0_132 = arith.constant 0 : index
    %c0_133 = arith.constant 0 : index
    %c0_134 = arith.constant 0 : index
    %686 = vector.load %arg7[%c0_132, %c0_133, %c0_134] : memref<1x16x256xf32, #tpu.memory_space<vmem>>, vector<1x16x256xf32>
    %687 = vector.shape_cast %686 : vector<1x16x256xf32> to vector<16x256xf32>
    %688 = vector.shape_cast %685 : vector<16x256xf32> to vector<1x16x256xf32>
    tpu.vector_store %arg7[%c0_132, %c0_133, %c0_134], %688 {strides = array<i32>} : memref<1x16x256xf32, #tpu.memory_space<vmem>>, vector<1x16x256xf32>,
    return
  }
  func.func @transform_0(%arg0: i32) -> (i32, i32, i32) {
    %c0_i32 = arith.constant 0 : i32
    %c0_i32_0 = arith.constant 0 : i32
    %c0_i32_1 = arith.constant 0 : i32
    return %arg0, %c0_i32, %c0_i32_0 : i32, i32, i32
  }
  func.func @transform_1(%arg0: i32) -> (i32, i32) {
    %c0_i32 = arith.constant 0 : i32
    %c0_i32_0 = arith.constant 0 : i32
    %c0_i32_1 = arith.constant 0 : i32
    return %c0_i32, %c0_i32_0 : i32, i32
  }
  func.func @transform_2(%arg0: i32) -> (i32, i32) {
    %c0_i32 = arith.constant 0 : i32
    %c0_i32_0 = arith.constant 0 : i32
    %c0_i32_1 = arith.constant 0 : i32
    return %c0_i32, %c0_i32_0 : i32, i32
  }
  func.func @transform_3(%arg0: i32) -> (i32, i32) {
    %c0_i32 = arith.constant 0 : i32
    %c0_i32_0 = arith.constant 0 : i32
    %c0_i32_1 = arith.constant 0 : i32
    return %c0_i32, %c0_i32_0 : i32, i32
  }
  func.func @transform_4(%arg0: i32) -> i32 {
    %c0_i32 = arith.constant 0 : i32
    %c0_i32_0 = arith.constant 0 : i32
    return %c0_i32 : i32
  }
  func.func @transform_5(%arg0: i32) -> i32 {
    %c0_i32 = arith.constant 0 : i32
    %c0_i32_0 = arith.constant 0 : i32
    return %c0_i32 : i32
  }
  func.func @transform_6(%arg0: i32) -> (i32, i32, i32) {
    %c0_i32 = arith.constant 0 : i32
    %c0_i32_0 = arith.constant 0 : i32
    %c0_i32_1 = arith.constant 0 : i32
    return %arg0, %c0_i32, %c0_i32_0 : i32, i32, i32
  }
}

</mosaic_0001>

<bundles_post_ra>
// kernel: tpu_custom_call.1
= control target key start
LH: loop header
LB: loop body
LE: loop exit
PB: predicated region body
PF: predicated region fallthrough
CT: control target
= control target key end

     0   :  { %s7316_s0 = inlined_call_operand.hbm [shape: f32[2,16,256], index: 0, kind: input, shape index: {}]   ;;  %s7317_s1 = inlined_call_operand.hbm [shape: f32[16,49], index: 1, kind: input, shape index: {}]   ;;  %s7318_s2 = inlined_call_operand.vmem [shape: s32[1,256], index: 2, kind: input, shape index: {}]   ;;  %s7319_s3 = inlined_call_operand.vmem [shape: s32[1,256], index: 3, kind: input, shape index: {}]   ;;  %s7320_s4 = inlined_call_operand.vmem [shape: f32[3], index: 4, kind: input, shape index: {}]   ;;  %s7321_s5 = inlined_call_operand.<no memory space> [shape: f32[1], index: 5, kind: input, shape index: {}]   ;;  %s7322_s6 = inlined_call_operand.hbm [shape: f32[2,16,256], index: 6, kind: output, shape index: {}]  }
   0x1   :  { %11 = sst [smem:[#allocation2]] %s7321_s5 }
   0x2   :  { %12 = vsyncpa [#allocation4], 0 }
   0x3   :  { %14 = vsyncpa [#allocation4 + $0x1], 0 }
   0x4   :  { %15 = vsyncpa [#allocation8], 0 }
   0x5   :  { %16 = vsyncpa [#allocation6], 0 }
   0x6   :  { %17 = vsyncpa [#allocation5], 0 }
   0x7   :  { %19 = vsyncpa [#allocation5 + $0x1], 0  ;;  %s3404_s23 = smov 0   ;;  %s3406_s24 = smov 0  }
   0x8   :  { %s3408_s25 = smov 0   ;;  %s3410_s26 = smov 0  }
   0x9 LB: > { %s3425_s5 = sadd.s32 4294967295, %s3258_s26   ;;  %s2789_s27 = sadd.s32 4294967294, %s3258_s26   ;;  %s3258_s26 = sphi %s3410_s26, %s8712_s26   ;;  %s3254_s25 = sphi %s3408_s25, %s8711_s25   ;;  %s3250_s24 = sphi %s3406_s24, %s8710_s24   ;;  %s3246_s23 = sphi %s3404_s23, %s8709_s23  }
   0xa   : > { %p45_p0 = scmp.ne.s32.totalorder %s3250_s24, %s3246_s23  ;;  %p7323_p1 = scmp.eq.s32.totalorder %s3425_s5, 0 }
   0xb   : > { %p180_p3 = scmp.eq.s32.totalorder %s2789_s27, 1  ;;  %p2790_p5 = scmp.ge.s32.totalorder %s3258_s26, 1 }
   0xc   : > { %p3434_p4 = por %p7323_p1, %p45_p0  ;;  %p187_p7 = scmp.lt.s32.totalorder %s3258_s26, 3 }
   0xd   : > { %p3439_p6 = por %p180_p3, %p45_p0  ;;  %s3260_s7 = smov [#allocation7]  }
   0xe   : > { %s7690_s28 = scalar_select %p3434_p4, 1, 0 }
   0xf   : > { %s7691_s29 = scalar_select %p3439_p6, 1, 0 }
  0x10   : > { %p3444_p8 = pnand %p2790_p5, %p187_p7  ;;  %s199_s8 = sshll.u32 %s3260_s7, 4  ;;  %s200_s8 = int_to_ptr.vmem [resolvable:$true] %s199_s8 }
  0x11   : > { %s219_s11 = sshll.u32 %s7320_s4, 4  ;;  %s3128_s13 = scalar_lea.vmem %s200_s8, 256  ;;  %s220_s11 = int_to_ptr.vmem [resolvable:$true] %s219_s11 }
  0x12   : > { %s7692_s30 = scalar_select %p3444_p8, 1, 0 }
  0x13   : > { %p2827_p9 = pneg %p3444_p8  ;;  %p3129_p13 = scmp.ne.s32.totalorder %s200_s8, %s3128_s13 }
  0x14   : > { %p3136_p5 = scmp.lt.s32.totalorder %s200_s8, %s200_s8  ;;  %p3137_p7 = scmp.lt.s32.totalorder %s3128_s13, %s3128_s13 }
  0x15   : > { %p3456_p11 = pnand %p2827_p9, %p7323_p1 }
  0x16   : > { %p3138_p10 = por %p3137_p7, %p3136_p5 }
  0x17   : > { %p3119_p12 = pneg %p3456_p11 }
  0x19   : > { %p3131_p0 = pnand %p3129_p13, %p3119_p12 }
  0x1b   : > { %p3132_p3 = pneg %p3131_p0 }
  0x1d   : > { %p3139_p2 = pnand %p3138_p10, %p3132_p3 }
  0x1f   : > { %3142 = shalt.err (!%p3139_p2)
}
  0x20   : > { %s3261_s14 = smov 128   ;;  %s3262_s15 = smov 8  }
  0x21   : > { %2830 = dma.hbm_to_vmem [thread:$0]  (!%p3456_p11), %s7317_s1, 256, %s200_s8, [#allocation8], %s3261_s14, %s3261_s14, %s3262_s15  }
  0x22   : > { %s3143_s18 = scalar_lea.vmem %s220_s11, 16  ;;  %p3151_p1 = scmp.lt.s32.totalorder %s220_s11, %s220_s11 }
  0x23   : > { %p3144_p9 = scmp.ne.s32.totalorder %s220_s11, %s3143_s18  ;;  %p3152_p6 = scmp.lt.s32.totalorder %s3143_s18, %s3143_s18 }
  0x25   : > { %p3146_p13 = pnand %p3144_p9, %p3119_p12  ;;  %p3153_p5 = por %p3152_p6, %p3151_p1 }
  0x27   : > { %p3147_p0 = pneg %p3146_p13 }
  0x29   : > { %p3154_p10 = pnand %p3153_p5, %p3147_p0 }
  0x2b   : > { %3157 = shalt.err (!%p3154_p10)
}
  0x2c   : > { %s3263_s19 = smov [#allocation9]   ;;  %s3476_s20 = sadd.s32 1, %s3258_s26  }
  0x2d   : > { %2833 = dma.vmem_to_smem (!%p3456_p11), %s220_s11, 16, %s3263_s19, [#allocation6]  }
  0x2e   : > { %s32_s21 = sadd.s32 1, %s3254_s25  ;;  %s29_s22 = ssub.s32 %s3258_s26, %s3476_s20 }
  0x2f   : > { %p39_p1 = scmp.ne.s32.totalorder %s3254_s25, %s3250_s24  ;;  %p30_p2 = scmp.eq.s32.totalorder %s29_s22, 0 }
  0x30   : > { %p40_p6 = scmp.eq.s32.totalorder %s3258_s26, 0  ;;  %p7694_p12 = scmp.eq.s32.totalorder %s3425_s5, 1 }
  0x31   : > { %p2844_p7 = scmp.lt.s32.totalorder %s3258_s26, 2  ;;  %s233_s8 = sand.u32 1, %s3254_s25  }
  0x32   : > { %p3486_p3 = por %p7694_p12, %p39_p1  ;;  %p41_p9 = por %p40_p6, %p39_p1 }
  0x33   : > { %s3492_s7 = scalar_select %p30_p2, %s3254_s25, %s32_s21  }
  0x34   : > { %s7695_s27 = scalar_select %p3486_p3, 1, 0 }
  0x35   : > { %s2794_s9 = sshll.u32 %s233_s8, 5  ;;  %s2813_s10 = sshll.u32 %s3258_s26, 9 }
  0x36   : > { %s3499_s13 = scalar_lea.hbm %s7316_s0, %s2813_s10  ;;  %s237_s14 = scalar_lea.vmem [#allocation3], %s2794_s9 }
  0x37   : > { %s244_s15 = sshll.u32 %s237_s14, 4  ;;  %p3503_p11 = pnand %p2844_p7, %p41_p9  ;;  %s3501_s15 = int_to_ptr.vmem [resolvable:$true] %s244_s15 }
  0x38   : > { %s3507_s17 = scalar_lea.sflag [#allocation4], %s233_s8  ;;  %s3158_s18 = scalar_lea.hbm %s3499_s13, 512 }
  0x39   : > { %p3159_p13 = scmp.ne.s32.totalorder %s3499_s13, %s3158_s18  ;;  %p3160_p0 = pneg %p3503_p11 }
  0x3a   : > { %s3163_s22 = scalar_lea.hbm %s7316_s0, 1024  ;;  %p3164_p1 = scmp.lt.s32.totalorder %s3499_s13, %s7316_s0 }
  0x3b   : > { %p3161_p5 = pnand %p3160_p0, %p3159_p13  ;;  %p3165_p2 = scmp.lt.s32.totalorder %s3163_s22, %s3158_s18 }
  0x3d   : > { %p3162_p10 = pneg %p3161_p5  ;;  %p3166_p6 = por %p3165_p2, %p3164_p1 }
  0x3f   : > { %p3167_p12 = pnand %p3166_p6, %p3162_p10 }
  0x41   : > { %3170 = shalt.err (!%p3167_p12)
}
  0x42   : > { %s3171_s8 = scalar_lea.vmem %s3501_s15, 512  ;;  %s3264_s11 = smov [#allocation3]  }
  0x43   : > { %p3172_p7 = scmp.ne.s32.totalorder %s3501_s15, %s3171_s8  ;;  %s3176_s12 = sshll.u32 %s3264_s11, 4  ;;  %s3177_s12 = int_to_ptr.vmem [resolvable:$false] %s3176_s12 }
  0x44   : > { %s3178_s14 = scalar_lea.vmem %s3177_s12, 1024  ;;  %p3179_p5 = scmp.lt.s32.totalorder %s3501_s15, %s3177_s12 }
  0x45   : > { %p3174_p9 = pnand %p3172_p7, %p3160_p0  ;;  %p3180_p3 = scmp.lt.s32.totalorder %s3178_s14, %s3171_s8 }
  0x47   : > { %p3175_p13 = pneg %p3174_p9  ;;  %p3181_p4 = por %p3180_p3, %p3179_p5 }
  0x49   : > { %p3182_p8 = pnand %p3181_p4, %p3175_p13 }
  0x4b   : > { %3185 = shalt.err (!%p3182_p8)
}
  0x4c   : > { %s3265_s18 = smov 256   ;;  %s3266_s19 = smov 16  }
  0x4d   : > { %2837 = dma.hbm_to_vmem [thread:$0]  (!%p3503_p11), %s3499_s13, 512, %s3501_s15, %s3507_s17, %s3265_s18, %s3265_s18, %s3266_s19  }
  0x4e   : > { %p7697_p0 = scmp.ne.s32.totalorder %s7692_s30, 0 }
  0x50   : > { %256 = sbr.rel (%p7697_p0) target bundleno = 1032 (0x408), region = 44 }
  0x55   : > { %s3531_s21 = sand.u32 1, %s3250_s24   ;;  %p7698_p4 = scmp.ne.s32.totalorder %s7690_s28, 0 }
  0x56   : > { %s7409_s22 = sshll.u32 %s3531_s21, 5  ;;  %s259_s9 = scalar_lea.sflag [#allocation4], %s3531_s21 }
  0x57   : > { %s3537_s10 = scalar_lea.vmem [#allocation3], %s7409_s22 }
  0x58   : > { %3229 = dma.done.wait (%p7698_p4), %s259_s9, 512  }
  0x59   : > { %3231 = vsyncadd (%p7698_p4), %s259_s9, 4294966784  ;;  %p7699_p8 = scmp.eq.s32.totalorder %s3425_s5, 0 }
  0x5b   : > { %3233 = dma.done.wait (%p7699_p8), [#allocation8], 256   ;;  %p7700_p3 = pmov %p7699_p8 }
  0x5d   : > { %3235 = vsyncadd (%p7700_p3), [#allocation8], 4294967040  ;;  %p7701_p11 = pmov %p7700_p3 }
  0x5e   : > { %p7702_p10 = pmov %p7700_p3 }
  0x5f   : > { %3237 = dma.done.wait (%p7701_p11), [#allocation6], 16  }
  0x60   : > { %3239 = vsyncadd (%p7702_p10), [#allocation6], 4294967280 }
  0x61   : > { %275 = sfence }
  0x62   : > { %v3552_v0 = vld [vmem:[%s3537_s10] sm:$0xff]  ;;  %v3555_v1 = vld [vmem:[%s3537_s10 + $0x8] sm:$0xff]  ;;  %v3558_v2 = vld [vmem:[%s3537_s10 + $0x10] sm:$0xff]  ;;  %s3267_s28 = smov 51   ;;  %v7336_v5 = vmov 0   ;;  %v3269_v6 = vmov 1   ;;  %v7335_v22 = vlaneseq }
  0x63   : > { %411 = vrot.lane.b32.xlu1 %v3552_v0, %s3267_s28  ;;  %v306_v3 = vadd.f32 %v3555_v1, %v3552_v0  ;;  %v3564_v4 = vld [vmem:[%s3537_s10 + $0x18] sm:$0xff]  ;;  %2986 = vset.pattern.permute.xlu0 %v3269_v6  ;;  %v3571_v8 = vld [vmem:[#allocation7] sm:$0xff]  ;;  %v3574_v9 = vld [vmem:[#allocation7 + $0x8] sm:$0xff]  ;;  %s3270_s30 = smov 50   ;;  %s3271_s13 = smov 49   ;;  %v3272_v10 = vmov 2  }
  0x64   : > { %2984 = vset.pattern.permute.xlu1 %v7336_v5  ;;  %v309_v7 = vadd.f32 %v3564_v4, %v3558_v2  ;;  %s3273_s15 = smov 48   ;;  %v3274_v11 = vmov 3   ;;  %s3275_s16 = smov 47   ;;  %v3276_v12 = vmov 4   ;;  %v3278_v13 = vmov 5  }
  0x65   : > { %307 = vadd.xlane.f32.xlu0 %v306_v3  ;;  %s3277_s17 = smov 46   ;;  %s3279_s8 = smov 45   ;;  %v3280_v14 = vmov 6   ;;  %v3282_v15 = vmov 7   ;;  %v3284_v16 = vmov 8   ;;  %v3286_v17 = vmov 9  }
  0x66   : > { %s3281_s11 = smov 35   ;;  %s3283_s12 = smov 34   ;;  %v3288_v19 = vmov 10   ;;  %v3290_v21 = vmov 11   ;;  %v3648_v25 = vshrl.u32 %v7335_v22, 7  ;;  %v3292_v29 = vmov 12  }
  0x67   : > { %413 = vrot.lane.b32.xlu1 %v3558_v2, %s3267_s28  ;;  %s3285_s14 = smov 33   ;;  %s3287_s18 = smov 32   ;;  %v3294_v48 = vmov 13   ;;  %v3296_v55 = vmov 14   ;;  %v3298_v60 = vmov 15  }
  0x68   : > { %s3289_s19 = smov 31   ;;  %s3653_s9 = sld [smem:[#allocation9 + $0x1]]  ;;  %v317_v26 = vadd.s32 8, %v3648_v25  ;;  %vm7474_vm0 = vcmp.lt.s32.totalorder %v3648_v25, 7  ;;  %vm7478_vm2 = vcmp.lt.s32.totalorder %v3648_v25, 1 }
  0x69   : > { %310 = vadd.xlane.f32.xlu0 %v309_v7  ;;  %s3334_s22 = smov 109   ;;  %p8705_p2 = scmp.ne.s32.totalorder %s7695_s27, 0 }
  0x6a   : > { %v359_v30 = vadd.s32 1, %v317_v26 }
  0x6b   : > { %417 = vrot.lane.b32.xlu1 %v3564_v4, %s3267_s28 }
  0x6c   : > { %vm363_vm1 = vcmp.lt.s32.totalorder %v359_v30, 16 }
  0x6e   : > { %v7330_v36 = vstv %s3653_s9 }
  0x6f   : > { %444 = vperm.xlu1 %2984, %v3571_v8  }
  0x73   : > { %449 = vperm.xlu1 %2984, %v3574_v9  }
  0x77   : > { %460 = vrot.lane.b32.xlu1 %v3552_v0, %s3270_s30 }
  0x78   : > { %2985 = vset.pattern.permute.xlu1 %v3269_v6 }
  0x7b   : > { %462 = vrot.lane.b32.xlu1 %v3558_v2, %s3270_s30 }
  0x7f   : > { %464 = vrot.lane.b32.xlu1 %v3555_v1, %s3270_s30  ;;  %415 = vrot.lane.b32.xlu0 %v3555_v1, %s3267_s28  ;;  %s3291_s28 = smov 30  }
  0x83   : > { %490 = vperm.xlu1 %2985, %v3571_v8   ;;  %466 = vrot.lane.b32.xlu0 %v3564_v4, %s3270_s30  ;;  %s3662_s30 = sld [smem:[#allocation9]] }
  0x87   : > { %505 = vrot.lane.b32.xlu1 %v3552_v0, %s3271_s13  ;;  %494 = vperm.xlu0 %2986, %v3574_v9  }
  0x88   : > { %2988 = vset.pattern.permute.xlu1 %v3272_v10 }
  0x89   : > { %v7327_v42 = vstv %s3662_s30 }
  0x8b   : > { %507 = vrot.lane.b32.xlu1 %v3558_v2, %s3271_s13  ;;  %509 = vrot.lane.b32.xlu0 %v3555_v1, %s3271_s13 }
  0x8c   : > { %2987 = vset.pattern.permute.xlu0 %v3272_v10  ;;  %v3300_v10 = vmov 16  }
  0x8f   : > { %511 = vrot.lane.b32.xlu1 %v3564_v4, %s3271_s13  ;;  %535 = vperm.xlu0 %2987, %v3571_v8   ;;  %s3293_s13 = smov 29  }
  0x93   : > { %539 = vperm.xlu1 %2988, %v3574_v9   ;;  %552 = vrot.lane.b32.xlu0 %v3558_v2, %s3273_s15 }
  0x94   : > { %2990 = vset.pattern.permute.xlu0 %v3274_v11 }
  0x97   : > { %550 = vrot.lane.b32.xlu1 %v3552_v0, %s3273_s15  ;;  %556 = vrot.lane.b32.xlu0 %v3564_v4, %s3273_s15 }
  0x98   : > { %2989 = vset.pattern.permute.xlu1 %v3274_v11 }
  0x9b   : > { %554 = vrot.lane.b32.xlu1 %v3555_v1, %s3273_s15  ;;  %584 = vperm.xlu0 %2990, %v3574_v9   ;;  %s3295_s15 = smov 19  }
  0x9f   : > { %580 = vperm.xlu1 %2989, %v3571_v8   ;;  %599 = vrot.lane.b32.xlu0 %v3555_v1, %s3275_s16 }
  0xa0   : > { %2991 = vset.pattern.permute.xlu0 %v3276_v12 }
  0xa3   : > { %595 = vrot.lane.b32.xlu1 %v3552_v0, %s3275_s16  ;;  %625 = vperm.xlu0 %2991, %v3571_v8  }
  0xa4   : > { %2992 = vset.pattern.permute.xlu1 %v3276_v12 }
  0xa7   : > { %597 = vrot.lane.b32.xlu1 %v3558_v2, %s3275_s16  ;;  %642 = vrot.lane.b32.xlu0 %v3558_v2, %s3277_s17 }
  0xa8   : > { %2994 = vset.pattern.permute.xlu0 %v3278_v13 }
  0xab   : > { %601 = vrot.lane.b32.xlu1 %v3564_v4, %s3275_s16  ;;  %646 = vrot.lane.b32.xlu0 %v3564_v4, %s3277_s17  ;;  %s3297_s16 = smov 18  }
  0xaf   : > { %629 = vperm.xlu1 %2992, %v3574_v9   ;;  %674 = vperm.xlu0 %2994, %v3574_v9  }
  0xb3   : > { %640 = vrot.lane.b32.xlu1 %v3552_v0, %s3277_s17  ;;  %689 = vrot.lane.b32.xlu0 %v3555_v1, %s3279_s8 }
  0xb4   : > { %2995 = vset.pattern.permute.xlu0 %v3280_v14  ;;  %2993 = vset.pattern.permute.xlu1 %v3278_v13 }
  0xb7   : > { %644 = vrot.lane.b32.xlu1 %v3555_v1, %s3277_s17  ;;  %715 = vperm.xlu0 %2995, %v3571_v8   ;;  %s3299_s17 = smov 17  }
  0xbb   : > { %670 = vperm.xlu1 %2993, %v3571_v8   ;;  %736 = vrot.lane.b32.xlu0 %v3558_v2, %s3281_s11 }
  0xbc   : > { %2998 = vset.pattern.permute.xlu0 %v3282_v15 }
  0xbf   : > { %685 = vrot.lane.b32.xlu1 %v3552_v0, %s3279_s8  ;;  %740 = vrot.lane.b32.xlu0 %v3564_v4, %s3281_s11 }
  0xc0   : > { %2996 = vset.pattern.permute.xlu1 %v3280_v14 }
  0xc3   : > { %687 = vrot.lane.b32.xlu1 %v3558_v2, %s3279_s8  ;;  %768 = vperm.xlu0 %2998, %v3574_v9  }
  0xc7   : > { %691 = vrot.lane.b32.xlu1 %v3564_v4, %s3279_s8  ;;  %783 = vrot.lane.b32.xlu0 %v3555_v1, %s3283_s12  ;;  %s7385_s8 = smov 16  }
  0xc8   : > { %2999 = vset.pattern.permute.xlu0 %v3284_v16 }
  0xcb   : > { %719 = vperm.xlu1 %2996, %v3574_v9   ;;  %809 = vperm.xlu0 %2999, %v3571_v8  }
  0xcf   : > { %734 = vrot.lane.b32.xlu1 %v3552_v0, %s3281_s11  ;;  %826 = vrot.lane.b32.xlu0 %v3558_v2, %s3285_s14 }
  0xd0   : > { %2997 = vset.pattern.permute.xlu1 %v3282_v15  ;;  %3002 = vset.pattern.permute.xlu0 %v3286_v17  ;;  %v7342_v15 = vmov 17  }
  0xd3   : > { %738 = vrot.lane.b32.xlu1 %v3555_v1, %s3281_s11  ;;  %830 = vrot.lane.b32.xlu0 %v3564_v4, %s3285_s14  ;;  %s3805_s11 = sld [smem:[#allocation9 + $0x2]] }
  0xd5   : > { %v3627_v18 = vpop.permute.xlu1 %411 }
  0xd7   : > { %764 = vperm.xlu1 %2997, %v3571_v8   ;;  %858 = vperm.xlu0 %3002, %v3574_v9  }
  0xd9   : > { %v3634_v20 = vpop.permute.xlu1 %413 }
  0xdb   : > { %779 = vrot.lane.b32.xlu1 %v3552_v0, %s3283_s12  ;;  %873 = vrot.lane.b32.xlu0 %v3555_v1, %s3287_s18 }
  0xdc   : > { %3003 = vset.pattern.permute.xlu0 %v3288_v19  ;;  %3000 = vset.pattern.permute.xlu1 %v3284_v16 }
  0xdd   : > { %v3640_v23 = vpop.permute.xlu1 %417 }
  0xdf   : > { %781 = vrot.lane.b32.xlu1 %v3558_v2, %s3283_s12  ;;  %899 = vperm.xlu0 %3003, %v3571_v8  }
  0xe3   : > { %785 = vrot.lane.b32.xlu1 %v3564_v4, %s3283_s12  ;;  %916 = vrot.lane.b32.xlu0 %v3558_v2, %s3289_s19  ;;  %s3303_s12 = smov 15  }
  0xe4   : > { %3006 = vset.pattern.permute.xlu0 %v3290_v21 }
  0xe7   : > { %813 = vperm.xlu1 %3000, %v3574_v9   ;;  %920 = vrot.lane.b32.xlu0 %v3564_v4, %s3289_s19 }
  0xea   : > { %v3645_v24 = vpop.permute.xlu1 %444 }
  0xeb   : > { %824 = vrot.lane.b32.xlu1 %v3552_v0, %s3285_s14  ;;  %948 = vperm.xlu0 %3006, %v3574_v9  }
  0xec   : > { %3001 = vset.pattern.permute.xlu1 %v3286_v17 }
  0xee   : > { %v3656_v27 = vpop.permute.xlu1 %449  ;;  %v308_v28 = vpop.xlane.xlu0 %307 }
  0xef   : > { %828 = vrot.lane.b32.xlu1 %v3555_v1, %s3285_s14  ;;  %963 = vrot.lane.b32.xlu0 %v3555_v1, %s3291_s28  ;;  %v3665_v31 = vmul.f32 0.00390625, %v308_v28  ;;  %s3815_s14 = sld [smem:[#allocation2]] }
  0xf0   : > { %3007 = vset.pattern.permute.xlu0 %v3292_v29 }
  0xf1   : > { %v7328_v34 = vrot.slane %v3665_v31, 1  ;;  %v7334_v37 = vrot.slane %v3665_v31, 7 }
  0xf2   : > { %v3667_v32 = vpop.permute.xlu1 %460  ;;  %v311_v33 = vpop.xlane.xlu0 %310 }
  0xf3   : > { %v3670_v35 = vmul.f32 0.00390625, %v311_v33  ;;  %854 = vperm.xlu1 %3001, %v3571_v8   ;;  %989 = vperm.xlu0 %3007, %v3571_v8  }
  0xf5   : > { %v7333_v38 = vrot.slane %v3670_v35, 7  ;;  %v350_v39 = vmul.f32 %v7330_v36, %v3670_v35  ;;  %v7329_v40 = vrot.slane %v3670_v35, 1 }
  0xf6   : > { %v3683_v41 = vpop.permute.xlu1 %462  ;;  %v3704_v47 = vpop.permute.xlu0 %415 }
  0xf7   : > { %v321_v43 = vsel %vm7478_vm2, %v7334_v37, %v7333_v38  ;;  %v357_v44 = vsel %vm7474_vm0, %v7329_v40, %v7328_v34  ;;  %869 = vrot.lane.b32.xlu1 %v3552_v0, %s3287_s18  ;;  %1006 = vrot.lane.b32.xlu0 %v3558_v2, %s3293_s13  ;;  %v7332_v40 = vstv %s3815_s14 }
  0xf8   : > { %v336_v45 = vmul.f32 %v7327_v42, %v321_v43  ;;  %v3702_v46 = vsel %vm363_vm1, %v357_v44, 0.0  ;;  %3004 = vset.pattern.permute.xlu1 %v3288_v19  ;;  %3010 = vset.pattern.permute.xlu0 %v3294_v48  ;;  %v7331_v44 = vstv %s3805_s11 }
  0xfa   : > { %v3708_v49 = vadd.f32 %v350_v39, %v336_v45  ;;  %v3710_v50 = vpop.permute.xlu1 %464  ;;  %v3716_v51 = vpop.permute.xlu0 %466  ;;  %v371_v45 = vmul.f32 %v7331_v44, %v3702_v46 }
  0xfb   : > { %871 = vrot.lane.b32.xlu1 %v3558_v2, %s3287_s18  ;;  %1010 = vrot.lane.b32.xlu0 %v3564_v4, %s3293_s13 }
  0xfe   : > { %v3718_v52 = vpop.permute.xlu1 %490 }
  0xff   : > { %875 = vrot.lane.b32.xlu1 %v3564_v4, %s3287_s18  ;;  %1038 = vperm.xlu0 %3010, %v3574_v9   ;;  %s3305_s18 = smov 14  }
 0x102   : > { %v3723_v53 = vpop.permute.xlu1 %505  ;;  %v3725_v54 = vpop.permute.xlu0 %494 }
 0x103   : > { %903 = vperm.xlu1 %3004, %v3574_v9   ;;  %1057 = vrot.lane.b32.xlu0 %v3555_v1, %s3295_s15 }
 0x104   : > { %3011 = vset.pattern.permute.xlu0 %v3296_v55 }
 0x106   : > { %v3730_v56 = vpop.permute.xlu1 %507  ;;  %v3732_v57 = vpop.permute.xlu0 %509 }
 0x107   : > { %914 = vrot.lane.b32.xlu1 %v3552_v0, %s3289_s19  ;;  %1083 = vperm.xlu0 %3011, %v3571_v8  }
 0x108   : > { %3005 = vset.pattern.permute.xlu1 %v3290_v21 }
 0x10a   : > { %v3738_v58 = vpop.permute.xlu1 %511  ;;  %v3740_v59 = vpop.permute.xlu0 %535 }
 0x10b   : > { %918 = vrot.lane.b32.xlu1 %v3555_v1, %s3289_s19  ;;  %1100 = vrot.lane.b32.xlu0 %v3558_v2, %s3297_s16  ;;  %s3307_s19 = smov 13  }
 0x10c   : > { %3014 = vset.pattern.permute.xlu0 %v3298_v60 }
 0x10e   : > { %v3747_v61 = vpop.permute.xlu1 %539  ;;  %v3749_v62 = vpop.permute.xlu0 %552 }
 0x10f   : > { %944 = vperm.xlu1 %3005, %v3571_v8   ;;  %1104 = vrot.lane.b32.xlu0 %v3564_v4, %s3297_s16 }
 0x112   : > { %v3754_v63 = vpop.permute.xlu1 %550  ;;  %v3756_v3 = vpop.permute.xlu0 %556 }
 0x113   : > { %7703 = vst [vmem:[#allocation15_spill] sm:$0xff] %v3754_v63  ;;  %959 = vrot.lane.b32.xlu1 %v3552_v0, %s3291_s28  ;;  %1132 = vperm.xlu0 %3014, %v3574_v9  }
 0x114   : > { %3008 = vset.pattern.permute.xlu1 %v3292_v29  ;;  %v7340_v29 = vmov 18  }
 0x116   : > { %v3762_v6 = vpop.permute.xlu1 %554  ;;  %v3764_v7 = vpop.permute.xlu0 %584 }
 0x117   : > { %7704 = vst [vmem:[#allocation16_spill] sm:$0xff] %v3762_v6  ;;  %7705 = vst [vmem:[#allocation17_spill] sm:$0xff] %v3764_v7  ;;  %961 = vrot.lane.b32.xlu1 %v3558_v2, %s3291_s28  ;;  %1147 = vrot.lane.b32.xlu0 %v3555_v1, %s3299_s17 }
 0x118   : > { %3015 = vset.pattern.permute.xlu0 %v3300_v10 }
 0x11a   : > { %v3771_v11 = vpop.permute.xlu1 %580  ;;  %v3773_v12 = vpop.permute.xlu0 %599 }
 0x11b   : > { %7706 = vst [vmem:[#allocation18_spill] sm:$0xff] %v3771_v11  ;;  %7707 = vst [vmem:[#allocation19_spill] sm:$0xff] %v3773_v12  ;;  %965 = vrot.lane.b32.xlu1 %v3564_v4, %s3291_s28  ;;  %1173 = vperm.xlu0 %3015, %v3571_v8   ;;  %s3309_s28 = smov 3  }
 0x11e   : > { %v3778_v13 = vpop.permute.xlu1 %595  ;;  %v3780_v14 = vpop.permute.xlu0 %625 }
 0x11f   : > { %7708 = vst [vmem:[#allocation20_spill] sm:$0xff] %v3778_v13  ;;  %7709 = vst [vmem:[#allocation21_spill] sm:$0xff] %v3780_v14  ;;  %993 = vperm.xlu1 %3008, %v3574_v9   ;;  %1190 = vrot.lane.b32.xlu0 %v3558_v2, %s7385_s8 }
 0x120   : > { %3018 = vset.pattern.permute.xlu0 %v7342_v15 }
 0x122   : > { %v3786_v16 = vpop.permute.xlu1 %597  ;;  %v3788_v17 = vpop.permute.xlu0 %642 }
 0x123   : > { %7710 = vst [vmem:[#allocation22_spill] sm:$0xff] %v3786_v16  ;;  %7711 = vst [vmem:[#allocation23_spill] sm:$0xff] %v3788_v17  ;;  %1004 = vrot.lane.b32.xlu1 %v3552_v0, %s3293_s13  ;;  %1194 = vrot.lane.b32.xlu0 %v3564_v4, %s7385_s8  ;;  %v7888_v16 = vmov 0 }
 0x124   : > { %3009 = vset.pattern.permute.xlu1 %v3294_v48  ;;  %v7339_v48 = vmov 19  }
 0x126   : > { %v3794_v19 = vpop.permute.xlu1 %601  ;;  %v3796_v21 = vpop.permute.xlu0 %646 }
 0x127   : > { %7712 = vst [vmem:[#allocation24_spill] sm:$0xff] %v3794_v19  ;;  %7713 = vst [vmem:[#allocation25_spill] sm:$0xff] %v3796_v21  ;;  %1008 = vrot.lane.b32.xlu1 %v3555_v1, %s3293_s13  ;;  %1222 = vperm.xlu0 %3018, %v3574_v9   ;;  %s3311_s13 = smov 2   ;;  %v7501_v19 = vmov 43  }
 0x12a   : > { %v3801_v26 = vpop.permute.xlu1 %629  ;;  %v3803_v28 = vpop.permute.xlu0 %674 }
 0x12b   : > { %7714 = vst [vmem:[#allocation26_spill] sm:$0xff] %v3801_v26  ;;  %7715 = vst [vmem:[#allocation27_spill] sm:$0xff] %v3803_v28  ;;  %1034 = vperm.xlu1 %3009, %v3571_v8   ;;  %1237 = vrot.lane.b32.xlu0 %v3555_v1, %s3303_s12 }
 0x12c   : > { %3019 = vset.pattern.permute.xlu0 %v7340_v29 }
 0x12e   : > { %v3811_v30 = vpop.permute.xlu1 %640  ;;  %v3813_v33 = vpop.permute.xlu0 %689 }
 0x12f   : > { %7716 = vst [vmem:[#allocation28_spill] sm:$0xff] %v3811_v30  ;;  %7717 = vst [vmem:[#allocation29_spill] sm:$0xff] %v3813_v33  ;;  %1053 = vrot.lane.b32.xlu1 %v3552_v0, %s3295_s15  ;;  %1263 = vperm.xlu0 %3019, %v3571_v8  }
 0x130   : > { %3012 = vset.pattern.permute.xlu1 %v3296_v55  ;;  %v373_v55 = vadd.f32 %v371_v45, %v3708_v49 }
 0x132   : > { %v3820_v39 = vpop.permute.xlu1 %644  ;;  %v3822_v43 = vpop.permute.xlu0 %715  ;;  %v3843_v36 = vadd.f32 %v7332_v40, %v373_v55  ;;  %v7338_v55 = vmov 20  }
 0x133   : > { %7718 = vst [vmem:[#allocation30_spill] sm:$0xff] %v3820_v39  ;;  %7719 = vst [vmem:[#allocation31_spill] sm:$0xff] %v3822_v43  ;;  %1055 = vrot.lane.b32.xlu1 %v3558_v2, %s3295_s15  ;;  %1280 = vrot.lane.b32.xlu0 %v3558_v2, %s3305_s18  ;;  %v7870_v39 = vmov 31  }
 0x134   : > { %3022 = vset.pattern.permute.xlu0 %v7339_v48  ;;  %7722 = vst [vmem:[#allocation34_spill] sm:$0xff] %v3843_v36 }
 0x136   : > { %v3834_v42 = vpop.permute.xlu1 %670  ;;  %v3836_v34 = vpop.permute.xlu0 %736 }
 0x137   : > { %7720 = vst [vmem:[#allocation32_spill] sm:$0xff] %v3834_v42  ;;  %7721 = vst [vmem:[#allocation33_spill] sm:$0xff] %v3836_v34  ;;  %1059 = vrot.lane.b32.xlu1 %v3564_v4, %s3295_s15  ;;  %1284 = vrot.lane.b32.xlu0 %v3564_v4, %s3305_s18  ;;  %s3313_s15 = smov 1  }
 0x13a   : > { %v3847_v46 = vpop.permute.xlu1 %685  ;;  %v3849_v44 = vpop.permute.xlu0 %740 }
 0x13b   : > { %7723 = vst [vmem:[#allocation35_spill] sm:$0xff] %v3847_v46  ;;  %7724 = vst [vmem:[#allocation36_spill] sm:$0xff] %v3849_v44  ;;  %1087 = vperm.xlu1 %3012, %v3574_v9   ;;  %1312 = vperm.xlu0 %3022, %v3574_v9   ;;  %v7861_v44 = vmov 0  ;;  %v7866_v46 = vlaneseq }
 0x13d   : > { %v4369_v33 = vand.u32 127, %v7866_v46  ;;  %v7867_v46 = vmov 0 }
 0x13e   : > { %v3853_v49 = vpop.permute.xlu1 %687  ;;  %v3855_v45 = vpop.permute.xlu0 %768 }
 0x13f   : > { %7725 = vst [vmem:[#allocation37_spill] sm:$0xff] %v3853_v49  ;;  %7726 = vst [vmem:[#allocation38_spill] sm:$0xff] %v3855_v45  ;;  %1098 = vrot.lane.b32.xlu1 %v3552_v0, %s3297_s16  ;;  %1327 = vrot.lane.b32.xlu0 %v3555_v1, %s3307_s19  ;;  %v4330_v49 = vsub.s32 0, %v3648_v25 }
 0x140   : > { %3013 = vset.pattern.permute.xlu1 %v3298_v60  ;;  %3023 = vset.pattern.permute.xlu0 %v7338_v55  ;;  %v7341_v60 = vmov 21  }
 0x142   : > { %v3863_v40 = vpop.permute.xlu1 %691  ;;  %v3865_v38 = vpop.permute.xlu0 %783 }
 0x143   : > { %7727 = vst [vmem:[#allocation39_spill] sm:$0xff] %v3863_v40  ;;  %7728 = vst [vmem:[#allocation40_spill] sm:$0xff] %v3865_v38  ;;  %1102 = vrot.lane.b32.xlu1 %v3555_v1, %s3297_s16  ;;  %1353 = vperm.xlu0 %3023, %v3571_v8   ;;  %s3315_s16 = smov 127   ;;  %v4333_v40 = vld [vmem:[#allocation7] sm:$0xff] }
 0x146   : > { %v3870_v37 = vpop.permute.xlu1 %719  ;;  %v3872_v22 = vpop.permute.xlu0 %809 }
 0x147   : > { %7729 = vst [vmem:[#allocation41_spill] sm:$0xff] %v3870_v37  ;;  %7730 = vst [vmem:[#allocation42_spill] sm:$0xff] %v3872_v22  ;;  %1128 = vperm.xlu1 %3013, %v3571_v8   ;;  %1373 = vrot.lane.b32.xlu0 %v3558_v2, %s3309_s28  ;;  %v7857_v37 = vmov 0 }
 0x148   : > { %3026 = vset.pattern.permute.xlu0 %v7341_v60 }
 0x14a   : > { %v3878_v5 = vpop.permute.xlu1 %734  ;;  %v3880_v55 = vpop.permute.xlu0 %826 }
 0x14b   : > { %7731 = vst [vmem:[#allocation43_spill] sm:$0xff] %v3878_v5  ;;  %7732 = vst [vmem:[#allocation44_spill] sm:$0xff] %v3880_v55  ;;  %1143 = vrot.lane.b32.xlu1 %v3552_v0, %s3299_s17  ;;  %1377 = vrot.lane.b32.xlu0 %v3564_v4, %s3309_s28 }
 0x14c   : > { %3016 = vset.pattern.permute.xlu1 %v3300_v10  ;;  %v7346_v10 = vmov 22  }
 0x14e   : > { %v3887_v48 = vpop.permute.xlu1 %738  ;;  %v3889_v29 = vpop.permute.xlu0 %830 }
 0x14f   : > { %7733 = vst [vmem:[#allocation45_spill] sm:$0xff] %v3887_v48  ;;  %7734 = vst [vmem:[#allocation46_spill] sm:$0xff] %v3889_v29  ;;  %1145 = vrot.lane.b32.xlu1 %v3558_v2, %s3299_s17  ;;  %1405 = vperm.xlu0 %3026, %v3574_v9  }
 0x152   : > { %v3894_v60 = vpop.permute.xlu1 %764  ;;  %v3896_v15 = vpop.permute.xlu0 %858 }
 0x153   : > { %7735 = vst [vmem:[#allocation47_spill] sm:$0xff] %v3894_v60  ;;  %7736 = vst [vmem:[#allocation48_spill] sm:$0xff] %v3896_v15  ;;  %1149 = vrot.lane.b32.xlu1 %v3564_v4, %s3299_s17  ;;  %1420 = vrot.lane.b32.xlu0 %v3555_v1, %s3311_s13  ;;  %s3317_s17 = smov 126  }
 0x154   : > { %3027 = vset.pattern.permute.xlu0 %v7346_v10  ;;  %v7741_v10 = vmov 17  }
 0x156   : > { %v3903_v36 = vpop.permute.xlu1 %779  ;;  %v3905_v22 = vpop.permute.xlu0 %873 }
 0x157   : > { %7737 = vst [vmem:[#allocation49_spill] sm:$0xff] %v3903_v36  ;;  %7738 = vst [vmem:[#allocation50_spill] sm:$0xff] %v3905_v22  ;;  %1177 = vperm.xlu1 %3016, %v3574_v9   ;;  %1446 = vperm.xlu0 %3027, %v3571_v8   ;;  %v7352_v36 = vmov 23  }
 0x15a   : > { %v3909_v60 = vpop.permute.xlu1 %781  ;;  %v3911_v38 = vpop.permute.xlu0 %899 }
 0x15b   : > { %7739 = vst [vmem:[#allocation51_spill] sm:$0xff] %v3909_v60  ;;  %7740 = vst [vmem:[#allocation52_spill] sm:$0xff] %v3911_v38  ;;  %1188 = vrot.lane.b32.xlu1 %v3552_v0, %s7385_s8  ;;  %1463 = vrot.lane.b32.xlu0 %v3558_v2, %s3313_s15 }
 0x15c   : > { %3017 = vset.pattern.permute.xlu1 %v7741_v10  ;;  %3030 = vset.pattern.permute.xlu0 %v7352_v36 }
 0x15e   : > { %v3919_v22 = vpop.permute.xlu1 %785  ;;  %v3921_v15 = vpop.permute.xlu0 %916 }
 0x15f   : > { %7742 = vst [vmem:[#allocation53_spill] sm:$0xff] %v3919_v22  ;;  %7743 = vst [vmem:[#allocation54_spill] sm:$0xff] %v3921_v15  ;;  %1192 = vrot.lane.b32.xlu1 %v3555_v1, %s7385_s8  ;;  %1467 = vrot.lane.b32.xlu0 %v3564_v4, %s3313_s15  ;;  %v7748_v15 = vmov 18   ;;  %s3325_s8 = smov 113  }
 0x162   : > { %v3927_v38 = vpop.permute.xlu1 %813  ;;  %v3929_v5 = vpop.permute.xlu0 %920 }
 0x163   : > { %7744 = vst [vmem:[#allocation55_spill] sm:$0xff] %v3927_v38  ;;  %7745 = vst [vmem:[#allocation56_spill] sm:$0xff] %v3929_v5  ;;  %1218 = vperm.xlu1 %3017, %v3571_v8   ;;  %1495 = vperm.xlu0 %3030, %v3574_v9   ;;  %v7359_v38 = vmov 25  }
 0x166   : > { %v3933_v10 = vpop.permute.xlu1 %824  ;;  %v3935_v36 = vpop.permute.xlu0 %948 }
 0x167   : > { %7746 = vst [vmem:[#allocation57_spill] sm:$0xff] %v3933_v10  ;;  %7747 = vst [vmem:[#allocation58_spill] sm:$0xff] %v3935_v36  ;;  %1233 = vrot.lane.b32.xlu1 %v3552_v0, %s3303_s12  ;;  %1538 = vrot.lane.b32.xlu0 %v3552_v0, %s3315_s16 }
 0x168   : > { %3020 = vset.pattern.permute.xlu1 %v7748_v15  ;;  %3032 = vset.pattern.permute.xlu0 %v7359_v38 }
 0x16a   : > { %v3943_v5 = vpop.permute.xlu1 %828  ;;  %v3945_v48 = vpop.permute.xlu0 %963 }
 0x16b   : > { %7749 = vst [vmem:[#allocation59_spill] sm:$0xff] %v3943_v5  ;;  %7750 = vst [vmem:[#allocation60_spill] sm:$0xff] %v3945_v48  ;;  %1235 = vrot.lane.b32.xlu1 %v3558_v2, %s3303_s12  ;;  %1542 = vrot.lane.b32.xlu0 %v3555_v1, %s3315_s16  ;;  %v7366_v48 = vmov 26  }
 0x16e   : > { %v3951_v10 = vpop.permute.xlu1 %854  ;;  %v3953_v36 = vpop.permute.xlu0 %989 }
 0x16f   : > { %7751 = vst [vmem:[#allocation61_spill] sm:$0xff] %v3951_v10  ;;  %7752 = vst [vmem:[#allocation62_spill] sm:$0xff] %v3953_v36  ;;  %1239 = vrot.lane.b32.xlu1 %v3564_v4, %s3303_s12  ;;  %1568 = vperm.xlu0 %3032, %v3571_v8   ;;  %s3319_s12 = smov 125  }
 0x172   : > { %v3958_v15 = vpop.permute.xlu1 %869  ;;  %v3960_v38 = vpop.permute.xlu0 %1006 }
 0x173   : > { %7753 = vst [vmem:[#allocation63_spill] sm:$0xff] %v3958_v15  ;;  %7754 = vst [vmem:[#allocation64_spill] sm:$0xff] %v3960_v38  ;;  %1267 = vperm.xlu1 %3020, %v3574_v9   ;;  %1585 = vrot.lane.b32.xlu0 %v3558_v2, %s3317_s17  ;;  %v7757_v15 = vmov 19  }
 0x174   : > { %3035 = vset.pattern.permute.xlu0 %v7366_v48 }
 0x176   : > { %v3966_v10 = vpop.permute.xlu1 %871  ;;  %v3968_v36 = vpop.permute.xlu0 %1010 }
 0x177   : > { %7755 = vst [vmem:[#allocation65_spill] sm:$0xff] %v3966_v10  ;;  %7756 = vst [vmem:[#allocation66_spill] sm:$0xff] %v3968_v36  ;;  %1278 = vrot.lane.b32.xlu1 %v3552_v0, %s3305_s18  ;;  %1589 = vrot.lane.b32.xlu0 %v3564_v4, %s3317_s17 }
 0x178   : > { %3021 = vset.pattern.permute.xlu1 %v7757_v15  ;;  %v7373_v15 = vmov 27  }
 0x17a   : > { %v3975_v5 = vpop.permute.xlu1 %875  ;;  %v3979_v38 = vpop.permute.xlu0 %1038 }
 0x17b   : > { %7758 = vst [vmem:[#allocation67_spill] sm:$0xff] %v3975_v5  ;;  %1282 = vrot.lane.b32.xlu1 %v3555_v1, %s3305_s18  ;;  %7759 = vst [vmem:[#allocation68_spill] sm:$0xff] %v3979_v38  ;;  %1617 = vperm.xlu0 %3035, %v3574_v9   ;;  %s3321_s18 = smov 115  }
 0x17e   : > { %v3982_v48 = vpop.permute.xlu1 %903  ;;  %v3985_v36 = vpop.permute.xlu0 %1057 }
 0x17f   : > { %7760 = vst [vmem:[#allocation69_spill] sm:$0xff] %v3982_v48  ;;  %1308 = vperm.xlu1 %3021, %v3571_v8   ;;  %7761 = vst [vmem:[#allocation70_spill] sm:$0xff] %v3985_v36  ;;  %1632 = vrot.lane.b32.xlu0 %v3555_v1, %s3319_s12  ;;  %v7764_v48 = vmov 20  }
 0x180   : > { %3036 = vset.pattern.permute.xlu0 %v7373_v15  ;;  %v7378_v15 = vmov 28  }
 0x182   : > { %v3990_v5 = vpop.permute.xlu1 %914  ;;  %v3994_v38 = vpop.permute.xlu0 %1083 }
 0x183   : > { %7762 = vst [vmem:[#allocation71_spill] sm:$0xff] %v3990_v5  ;;  %1323 = vrot.lane.b32.xlu1 %v3552_v0, %s3307_s19  ;;  %7763 = vst [vmem:[#allocation72_spill] sm:$0xff] %v3994_v38  ;;  %1658 = vperm.xlu0 %3036, %v3571_v8  }
 0x184   : > { %3024 = vset.pattern.permute.xlu1 %v7764_v48 }
 0x186   : > { %v3998_v10 = vpop.permute.xlu1 %918  ;;  %v4002_v36 = vpop.permute.xlu0 %1100 }
 0x187   : > { %7765 = vst [vmem:[#allocation73_spill] sm:$0xff] %v3998_v10  ;;  %1325 = vrot.lane.b32.xlu1 %v3558_v2, %s3307_s19  ;;  %7766 = vst [vmem:[#allocation74_spill] sm:$0xff] %v4002_v36  ;;  %1679 = vrot.lane.b32.xlu0 %v3558_v2, %s3321_s18 }
 0x188   : > { %3039 = vset.pattern.permute.xlu0 %v7378_v15 }
 0x18a   : > { %v4007_v5 = vpop.permute.xlu1 %944  ;;  %v4011_v48 = vpop.permute.xlu0 %1104 }
 0x18b   : > { %7767 = vst [vmem:[#allocation75_spill] sm:$0xff] %v4007_v5  ;;  %1329 = vrot.lane.b32.xlu1 %v3564_v4, %s3307_s19  ;;  %7768 = vst [vmem:[#allocation76_spill] sm:$0xff] %v4011_v48  ;;  %1683 = vrot.lane.b32.xlu0 %v3564_v4, %s3321_s18  ;;  %s3323_s19 = smov 114   ;;  %v7773_v5 = vmov 21  }
 0x18e   : > { %v4015_v38 = vpop.permute.xlu1 %959  ;;  %v4018_v10 = vpop.permute.xlu0 %1132 }
 0x18f   : > { %7769 = vst [vmem:[#allocation77_spill] sm:$0xff] %v4015_v38  ;;  %1357 = vperm.xlu1 %3024, %v3574_v9   ;;  %7770 = vst [vmem:[#allocation78_spill] sm:$0xff] %v4018_v10  ;;  %1711 = vperm.xlu0 %3039, %v3574_v9   ;;  %v7386_v38 = vmov 29  }
 0x192   : > { %v4021_v36 = vpop.permute.xlu1 %961  ;;  %v4025_v15 = vpop.permute.xlu0 %1147 }
 0x193   : > { %7771 = vst [vmem:[#allocation79_spill] sm:$0xff] %v4021_v36  ;;  %1371 = vrot.lane.b32.xlu1 %v3552_v0, %s3309_s28  ;;  %7772 = vst [vmem:[#allocation80_spill] sm:$0xff] %v4025_v15  ;;  %1726 = vrot.lane.b32.xlu0 %v3555_v1, %s3323_s19 }
 0x194   : > { %3025 = vset.pattern.permute.xlu1 %v7773_v5  ;;  %3040 = vset.pattern.permute.xlu0 %v7386_v38  ;;  %v7391_v5 = vmov 30  }
 0x196   : > { %v4031_v48 = vpop.permute.xlu1 %965  ;;  %v4035_v10 = vpop.permute.xlu0 %1173 }
 0x197   : > { %7774 = vst [vmem:[#allocation81_spill] sm:$0xff] %v4031_v48  ;;  %1375 = vrot.lane.b32.xlu1 %v3555_v1, %s3309_s28  ;;  %7775 = vst [vmem:[#allocation82_spill] sm:$0xff] %v4035_v10  ;;  %1752 = vperm.xlu0 %3040, %v3571_v8   ;;  %s3327_s28 = smov 112  }
 0x19a   : > { %v4038_v36 = vpop.permute.xlu1 %993  ;;  %v4041_v15 = vpop.permute.xlu0 %1190 }
 0x19b   : > { %7776 = vst [vmem:[#allocation83_spill] sm:$0xff] %v4038_v36  ;;  %1401 = vperm.xlu1 %3025, %v3571_v8   ;;  %7777 = vst [vmem:[#allocation84_spill] sm:$0xff] %v4041_v15  ;;  %1769 = vrot.lane.b32.xlu0 %v3558_v2, %s3325_s8  ;;  %v7780_v36 = vmov 22  }
 0x19c   : > { %3043 = vset.pattern.permute.xlu0 %v7391_v5 }
 0x19e   : > { %v4046_v38 = vpop.permute.xlu1 %1004  ;;  %v4050_v10 = vpop.permute.xlu0 %1194 }
 0x19f   : > { %7778 = vst [vmem:[#allocation85_spill] sm:$0xff] %v4046_v38  ;;  %1416 = vrot.lane.b32.xlu1 %v3552_v0, %s3311_s13  ;;  %7779 = vst [vmem:[#allocation86_spill] sm:$0xff] %v4050_v10  ;;  %1773 = vrot.lane.b32.xlu0 %v3564_v4, %s3325_s8 }
 0x1a0   : > { %3028 = vset.pattern.permute.xlu1 %v7780_v36  ;;  %v7397_v36 = vmov 31  }
 0x1a2   : > { %v4055_v15 = vpop.permute.xlu1 %1008  ;;  %v4059_v48 = vpop.permute.xlu0 %1222 }
 0x1a3   : > { %7781 = vst [vmem:[#allocation87_spill] sm:$0xff] %v4055_v15  ;;  %1418 = vrot.lane.b32.xlu1 %v3558_v2, %s3311_s13  ;;  %7782 = vst [vmem:[#allocation88_spill] sm:$0xff] %v4059_v48  ;;  %1801 = vperm.xlu0 %3043, %v3574_v9  }
 0x1a6   : > { %v4062_v5 = vpop.permute.xlu1 %1034  ;;  %v4066_v38 = vpop.permute.xlu0 %1237 }
 0x1a7   : > { %7783 = vst [vmem:[#allocation89_spill] sm:$0xff] %v4062_v5  ;;  %1422 = vrot.lane.b32.xlu1 %v3564_v4, %s3311_s13  ;;  %7784 = vst [vmem:[#allocation90_spill] sm:$0xff] %v4066_v38  ;;  %1816 = vrot.lane.b32.xlu0 %v3555_v1, %s3327_s28  ;;  %s3329_s13 = smov 111  }
 0x1a8   : > { %3044 = vset.pattern.permute.xlu0 %v7397_v36  ;;  %v7789_v36 = vmov 23  }
 0x1aa   : > { %v4071_v15 = vpop.permute.xlu1 %1053  ;;  %v4074_v48 = vpop.permute.xlu0 %1263 }
 0x1ab   : > { %7785 = vst [vmem:[#allocation91_spill] sm:$0xff] %v4071_v15  ;;  %1450 = vperm.xlu1 %3028, %v3574_v9   ;;  %7786 = vst [vmem:[#allocation92_spill] sm:$0xff] %v4074_v48  ;;  %1842 = vperm.xlu0 %3044, %v3571_v8   ;;  %v7403_v15 = vmov 32  }
 0x1ae   : > { %v4077_v5 = vpop.permute.xlu1 %1055  ;;  %v4081_v38 = vpop.permute.xlu0 %1280 }
 0x1af   : > { %7787 = vst [vmem:[#allocation93_spill] sm:$0xff] %v4077_v5  ;;  %1461 = vrot.lane.b32.xlu1 %v3552_v0, %s3313_s15  ;;  %7788 = vst [vmem:[#allocation94_spill] sm:$0xff] %v4081_v38  ;;  %1859 = vrot.lane.b32.xlu0 %v3558_v2, %s3329_s13 }
 0x1b0   : > { %3029 = vset.pattern.permute.xlu1 %v7789_v36  ;;  %3047 = vset.pattern.permute.xlu0 %v7403_v15  ;;  %v3331_v15 = vmov 24  }
 0x1b2   : > { %v4087_v10 = vpop.permute.xlu1 %1059  ;;  %v4091_v48 = vpop.permute.xlu0 %1284 }
 0x1b3   : > { %7790 = vst [vmem:[#allocation95_spill] sm:$0xff] %v4087_v10  ;;  %1465 = vrot.lane.b32.xlu1 %v3555_v1, %s3313_s15  ;;  %7791 = vst [vmem:[#allocation96_spill] sm:$0xff] %v4091_v48  ;;  %1863 = vrot.lane.b32.xlu0 %v3564_v4, %s3329_s13  ;;  %s7417_s15 = smov 110   ;;  %v7410_v48 = vmov 33  }
 0x1b6   : > { %v4095_v38 = vpop.permute.xlu1 %1087  ;;  %v4098_v5 = vpop.permute.xlu0 %1312 }
 0x1b7   : > { %7792 = vst [vmem:[#allocation97_spill] sm:$0xff] %v4095_v38  ;;  %1491 = vperm.xlu1 %3029, %v3571_v8   ;;  %7793 = vst [vmem:[#allocation98_spill] sm:$0xff] %v4098_v5  ;;  %1891 = vperm.xlu0 %3047, %v3574_v9  }
 0x1ba   : > { %v4101_v36 = vpop.permute.xlu1 %1098  ;;  %v4103_v10 = vpop.permute.xlu0 %1327 }
 0x1bb   : > { %7794 = vst [vmem:[#allocation99_spill] sm:$0xff] %v4101_v36  ;;  %3031 = vset.pattern.permute.xlu1 %v3331_v15  ;;  %7795 = vst [vmem:[#allocation100_spill] sm:$0xff] %v4103_v10  ;;  %1906 = vrot.lane.b32.xlu0 %v3555_v1, %s7417_s15  ;;  %s7456_s15 = smov 99  }
 0x1bc   : > { %1523 = vperm.xlu1 %3031, %v3571_v8   ;;  %3048 = vset.pattern.permute.xlu0 %v7410_v48  ;;  %v7416_v48 = vmov 34  }
 0x1be   : > { %v4109_v38 = vpop.permute.xlu1 %1102  ;;  %v4111_v5 = vpop.permute.xlu0 %1353 }
 0x1bf   : > { %7796 = vst [vmem:[#allocation101_spill] sm:$0xff] %v4109_v38  ;;  %7797 = vst [vmem:[#allocation102_spill] sm:$0xff] %v4111_v5  ;;  %1932 = vperm.xlu0 %3048, %v3571_v8   ;;  %v7800_v38 = vmov 25  }
 0x1c0   : > { %1527 = vperm.xlu1 %3031, %v3574_v9  }
 0x1c2   : > { %v4115_v15 = vpop.permute.xlu1 %1128  ;;  %v4117_v10 = vpop.permute.xlu0 %1373 }
 0x1c3   : > { %7798 = vst [vmem:[#allocation103_spill] sm:$0xff] %v4115_v15  ;;  %7799 = vst [vmem:[#allocation104_spill] sm:$0xff] %v4117_v10  ;;  %1949 = vrot.lane.b32.xlu0 %v3558_v2, %s3334_s22 }
 0x1c4   : > { %1540 = vrot.lane.b32.xlu1 %v3558_v2, %s3315_s16  ;;  %3051 = vset.pattern.permute.xlu0 %v7416_v48 }
 0x1c5   : > { %3033 = vset.pattern.permute.xlu1 %v7800_v38 }
 0x1c6   : > { %v4125_v5 = vpop.permute.xlu1 %1143  ;;  %v4127_v36 = vpop.permute.xlu0 %1377 }
 0x1c7   : > { %7801 = vst [vmem:[#allocation105_spill] sm:$0xff] %v4125_v5  ;;  %7802 = vst [vmem:[#allocation106_spill] sm:$0xff] %v4127_v36  ;;  %1953 = vrot.lane.b32.xlu0 %v3564_v4, %s3334_s22  ;;  %v7425_v5 = vmov 35   ;;  %v7807_v36 = vmov 26  }
 0x1c8   : > { %1544 = vrot.lane.b32.xlu1 %v3564_v4, %s3315_s16  ;;  %s7436_s16 = smov 98  }
 0x1ca   : > { %v4133_v15 = vpop.permute.xlu1 %1145  ;;  %v4135_v10 = vpop.permute.xlu0 %1405 }
 0x1cb   : > { %7803 = vst [vmem:[#allocation107_spill] sm:$0xff] %v4133_v15  ;;  %7804 = vst [vmem:[#allocation108_spill] sm:$0xff] %v4135_v10  ;;  %1981 = vperm.xlu0 %3051, %v3574_v9  }
 0x1cc   : > { %1572 = vperm.xlu1 %3033, %v3574_v9  }
 0x1ce   : > { %v4139_v48 = vpop.permute.xlu1 %1149  ;;  %v4141_v38 = vpop.permute.xlu0 %1420 }
 0x1cf   : > { %7805 = vst [vmem:[#allocation109_spill] sm:$0xff] %v4139_v48  ;;  %7806 = vst [vmem:[#allocation110_spill] sm:$0xff] %v4141_v38  ;;  %2000 = vrot.lane.b32.xlu0 %v3555_v1, %s7456_s15  ;;  %s3346_s15 = smov 94  }
 0x1d0   : > { %1583 = vrot.lane.b32.xlu1 %v3552_v0, %s3317_s17  ;;  %3052 = vset.pattern.permute.xlu0 %v7425_v5 }
 0x1d1   : > { %3034 = vset.pattern.permute.xlu1 %v7807_v36  ;;  %v7430_v36 = vmov 36  }
 0x1d2   : > { %v4149_v10 = vpop.permute.xlu1 %1177  ;;  %v4151_v15 = vpop.permute.xlu0 %1446 }
 0x1d3   : > { %7808 = vst [vmem:[#allocation111_spill] sm:$0xff] %v4149_v10  ;;  %7809 = vst [vmem:[#allocation112_spill] sm:$0xff] %v4151_v15  ;;  %2026 = vperm.xlu0 %3052, %v3571_v8  }
 0x1d4   : > { %1587 = vrot.lane.b32.xlu1 %v3555_v1, %s3317_s17  ;;  %s7452_s17 = smov 97  }
 0x1d6   : > { %v4156_v38 = vpop.permute.xlu1 %1188  ;;  %v4158_v48 = vpop.permute.xlu0 %1463 }
 0x1d7   : > { %7810 = vst [vmem:[#allocation113_spill] sm:$0xff] %v4156_v38  ;;  %7811 = vst [vmem:[#allocation114_spill] sm:$0xff] %v4158_v48  ;;  %2043 = vrot.lane.b32.xlu0 %v3558_v2, %s7436_s16  ;;  %v7814_v38 = vmov 27  }
 0x1d8   : > { %1613 = vperm.xlu1 %3034, %v3571_v8   ;;  %3055 = vset.pattern.permute.xlu0 %v7430_v36 }
 0x1da   : > { %v4164_v5 = vpop.permute.xlu1 %1192  ;;  %v4166_v15 = vpop.permute.xlu0 %1467 }
 0x1db   : > { %7812 = vst [vmem:[#allocation115_spill] sm:$0xff] %v4164_v5  ;;  %7813 = vst [vmem:[#allocation116_spill] sm:$0xff] %v4166_v15  ;;  %2047 = vrot.lane.b32.xlu0 %v3564_v4, %s7436_s16  ;;  %s7450_s16 = smov 96  }
 0x1dc   : > { %1628 = vrot.lane.b32.xlu1 %v3552_v0, %s3319_s12 }
 0x1dd   : > { %3037 = vset.pattern.permute.xlu1 %v7814_v38  ;;  %v7438_v38 = vmov 37  }
 0x1de   : > { %v4173_v48 = vpop.permute.xlu1 %1218  ;;  %v4175_v10 = vpop.permute.xlu0 %1495 }
 0x1df   : > { %7815 = vst [vmem:[#allocation117_spill] sm:$0xff] %v4173_v48  ;;  %7816 = vst [vmem:[#allocation118_spill] sm:$0xff] %v4175_v10  ;;  %2075 = vperm.xlu0 %3055, %v3574_v9  }
 0x1e0   : > { %1630 = vrot.lane.b32.xlu1 %v3558_v2, %s3319_s12 }
 0x1e2   : > { %v4180_v36 = vpop.permute.xlu1 %1233  ;;  %v4182_v5 = vpop.permute.xlu0 %1538 }
 0x1e3   : > { %7817 = vst [vmem:[#allocation119_spill] sm:$0xff] %v4180_v36  ;;  %7818 = vst [vmem:[#allocation120_spill] sm:$0xff] %v4182_v5  ;;  %2090 = vrot.lane.b32.xlu0 %v3555_v1, %s7452_s17  ;;  %s8170_s17 = smov 98  }
 0x1e4   : > { %1634 = vrot.lane.b32.xlu1 %v3564_v4, %s3319_s12  ;;  %3056 = vset.pattern.permute.xlu0 %v7438_v38  ;;  %v7443_v38 = vmov 38   ;;  %s7447_s12 = smov 95  }
 0x1e6   : > { %v4189_v48 = vpop.permute.xlu1 %1235  ;;  %v4191_v10 = vpop.permute.xlu0 %1542 }
 0x1e7   : > { %7819 = vst [vmem:[#allocation121_spill] sm:$0xff] %v4189_v48  ;;  %7820 = vst [vmem:[#allocation122_spill] sm:$0xff] %v4191_v10  ;;  %2116 = vperm.xlu0 %3056, %v3571_v8   ;;  %v7823_v10 = vmov 28  }
 0x1e8   : > { %1662 = vperm.xlu1 %3037, %v3574_v9  }
 0x1ea   : > { %v4195_v36 = vpop.permute.xlu1 %1239  ;;  %v4197_v5 = vpop.permute.xlu0 %1568 }
 0x1eb   : > { %7821 = vst [vmem:[#allocation123_spill] sm:$0xff] %v4195_v36  ;;  %7822 = vst [vmem:[#allocation124_spill] sm:$0xff] %v4197_v5  ;;  %2133 = vrot.lane.b32.xlu0 %v3558_v2, %s7450_s16 }
 0x1ec   : > { %1677 = vrot.lane.b32.xlu1 %v3552_v0, %s3321_s18  ;;  %3059 = vset.pattern.permute.xlu0 %v7443_v38  ;;  %v4224_v38 = vld [vmem:[%s3537_s10 + $0x8] sm:$0xff] }
 0x1ed   : > { %3038 = vset.pattern.permute.xlu1 %v7823_v10 }
 0x1ee   : > { %v4205_v15 = vpop.permute.xlu1 %1267  ;;  %v4207_v48 = vpop.permute.xlu0 %1585 }
 0x1ef   : > { %7824 = vst [vmem:[#allocation125_spill] sm:$0xff] %v4205_v15  ;;  %7825 = vst [vmem:[#allocation126_spill] sm:$0xff] %v4207_v48  ;;  %2137 = vrot.lane.b32.xlu0 %v3564_v4, %s7450_s16  ;;  %v7454_v4 = vmov 39   ;;  %v4248_v48 = vld [vmem:[%s7318_s2] sm:$0x3]  ;;  %v7466_v15 = vmov 40  }
 0x1f0   : > { %1681 = vrot.lane.b32.xlu1 %v3555_v1, %s3321_s18  ;;  %v4229_v1 = vld [vmem:[%s3537_s10] sm:$0xff]  ;;  %s3360_s16 = smov 79   ;;  %s8322_s18 = smov 96  }
 0x1f2   : > { %v4213_v2 = vpop.permute.xlu1 %1278  ;;  %v4215_v5 = vpop.permute.xlu0 %1589 }
 0x1f3   : > { %7826 = vst [vmem:[#allocation127_spill] sm:$0xff] %v4213_v2  ;;  %7827 = vst [vmem:[#allocation128_spill] sm:$0xff] %v4215_v5  ;;  %2165 = vperm.xlu0 %3059, %v3574_v9   ;;  %v7830_v9 = vmov 29  }
 0x1f4   : > { %1707 = vperm.xlu1 %3038, %v3571_v8  }
 0x1f6   : > { %v4219_v0 = vpop.permute.xlu1 %1282  ;;  %v4221_v10 = vpop.permute.xlu0 %1617 }
 0x1f7   : > { %7828 = vst [vmem:[#allocation129_spill] sm:$0xff] %v4219_v0  ;;  %7829 = vst [vmem:[#allocation130_spill] sm:$0xff] %v4221_v10  ;;  %2180 = vrot.lane.b32.xlu0 %v4224_v38, %s7447_s12  ;;  %v4241_v10 = vld [vmem:[%s3537_s10 + $0x10] sm:$0xff]  ;;  %s8238_s12 = smov 97  }
 0x1f8   : > { %1722 = vrot.lane.b32.xlu1 %v4229_v1, %s3323_s19  ;;  %3060 = vset.pattern.permute.xlu0 %v7454_v4 }
 0x1f9   : > { %3041 = vset.pattern.permute.xlu1 %v7830_v9  ;;  %v305_v9 = vld [vmem:[%s7319_s3] sm:$0x3] }
 0x1fa   : > { %v4235_v2 = vpop.permute.xlu1 %1308  ;;  %v4237_v0 = vpop.permute.xlu0 %1632  ;;  %v380_v5 = vadd.s32 4294967293, %v305_v9  ;;  %v384_v36 = vadd.s32 4294967294, %v305_v9  ;;  %v388_v29 = vadd.s32 4294967295, %v305_v9  ;;  %vm392_vm15 = vcmp.ge.s32.totalorder %v305_v9, 0 }
 0x1fb   : > { %7831 = vst [vmem:[#allocation131_spill] sm:$0xff] %v4235_v2  ;;  %7832 = vst [vmem:[#allocation132_spill] sm:$0xff] %v4237_v0  ;;  %2206 = vperm.xlu0 %3060, %v3571_v8   ;;  %v407_v8 = vadd.s32 4294967293, %v4248_v48  ;;  %v4261_v0 = vld [vmem:[%s3537_s10 + $0x18] sm:$0xff]  ;;  %vm393_vm1 = vcmp.lt.s32.totalorder %v305_v9, 16  ;;  %v403_v43 = vadd.s32 3, %v305_v9 }
 0x1fc   : > { %1724 = vrot.lane.b32.xlu1 %v4241_v10, %s3323_s19  ;;  %vm381_vm5 = vcmp.ge.s32.totalorder %v380_v5, 0  ;;  %vm382_vm6 = vcmp.lt.s32.totalorder %v380_v5, 16  ;;  %vm385_vm7 = vcmp.ge.s32.totalorder %v384_v36, 0  ;;  %vm386_vm8 = vcmp.lt.s32.totalorder %v384_v36, 16 }
 0x1fd   : > { %vm408_vm3 = vcmp.ge.s32.totalorder %v407_v8, 0  ;;  %vm409_vm4 = vcmp.lt.s32.totalorder %v407_v8, 16  ;;  %vm4283_vm10 = vmand %vm381_vm5, %vm382_vm6  ;;  %v7841_v8 = vmov 0  ;;  %v1673_v5 = vadd.s32 1, %v4248_v48 }
 0x1fe   : > { %v4253_v4 = vpop.permute.xlu1 %1323  ;;  %v4255_v2 = vpop.permute.xlu0 %1658  ;;  %vm4277_vm9 = vmand %vm408_vm3, %vm409_vm4  ;;  %v7842_v8 = vsel %vm4283_vm10, 4294967295, %v7841_v8  ;;  %v7844_v36 = vmov 0  ;;  %vm389_vm12 = vcmp.ge.s32.totalorder %v388_v29, 0  ;;  %vm390_vm13 = vcmp.lt.s32.totalorder %v388_v29, 16 }
 0x1ff   : > { %7833 = vst [vmem:[#allocation133_spill] sm:$0xff] %v4253_v4  ;;  %7834 = vst [vmem:[#allocation134_spill] sm:$0xff] %v4255_v2  ;;  %2223 = vrot.lane.b32.xlu0 %v4241_v10, %s3346_s15  ;;  %v4272_v2 = vld [vmem:[#allocation7 + $0x8] sm:$0xff]  ;;  %vm1674_vm4 = vcmp.ge.s32.totalorder %v1673_v5, 0  ;;  %vm1675_vm5 = vcmp.lt.s32.totalorder %v1673_v5, 16  ;;  %v7850_v29 = vmov 0 }
 0x200   : > { %1728 = vrot.lane.b32.xlu1 %v4261_v0, %s3323_s19  ;;  %3063 = vset.pattern.permute.xlu0 %v7466_v15  ;;  %7843 = vst [vmem:[#allocation139_spill] sm:$0xff] %v7842_v8  ;;  %vm4291_vm11 = vmand %vm385_vm7, %vm386_vm8  ;;  %s3348_s19 = smov 93   ;;  %vm405_vm3 = vcmp.lt.s32.totalorder %v403_v43, 16 }
 0x201   : > { %v7845_v36 = vsel %vm4291_vm11, 4294967295, %v7844_v36  ;;  %vm426_vm14 = vmand %vm4277_vm9, %vm4283_vm10 }
 0x202   : > { %v4266_v55 = vpop.permute.xlu1 %1325  ;;  %v4268_v4 = vpop.permute.xlu0 %1679  ;;  %7846 = vst [vmem:[#allocation140_spill] sm:$0xff] %v7845_v36  ;;  %vm4312_vm6 = vmand %vm389_vm12, %vm390_vm13 }
 0x203   : > { %7835 = vst [vmem:[#allocation135_spill] sm:$0xff] %v4266_v55  ;;  %7836 = vst [vmem:[#allocation136_spill] sm:$0xff] %v4268_v4  ;;  %2227 = vrot.lane.b32.xlu0 %v4261_v0, %s3346_s15  ;;  %v7851_v29 = vsel %vm4312_vm6, 4294967295, %v7850_v29 }
 0x204   : > { %1756 = vperm.xlu1 %3041, %v4272_v2   ;;  %7852 = vst [vmem:[#allocation143_spill] sm:$0xff] %v7851_v29  ;;  %vm4317_vm7 = vmand %vm392_vm15, %vm393_vm1 }
 0x205   : > { %vm4323_vm2 = vmand %vm1674_vm4, %vm1675_vm5  ;;  %vm404_vm5 = vcmp.ge.s32.totalorder %v403_v43, 0 }
 0x206   : > { %v4275_v15 = vpop.permute.xlu1 %1329  ;;  %v4281_v4 = vpop.permute.xlu0 %1683  ;;  %v7858_v37 = vsel %vm4323_vm2, 4294967295, %v7857_v37  ;;  %vm1780_vm12 = vmand %vm4323_vm2, %vm4312_vm6 }
 0x207   : > { %7837 = vst [vmem:[#allocation137_spill] sm:$0xff] %v4275_v15  ;;  %7840 = vst [vmem:[#allocation138_spill] sm:$0xff] %v4281_v4  ;;  %2255 = vperm.xlu0 %3063, %v4272_v2   ;;  %v7847_v15 = vmov 30   ;;  %v395_v4 = vadd.s32 1, %v305_v9 }
 0x208   : > { %1767 = vrot.lane.b32.xlu1 %v4229_v1, %s3325_s8 }
 0x209   : > { %3042 = vset.pattern.permute.xlu1 %v7847_v15  ;;  %v7481_v15 = vmov 41   ;;  %vm396_vm8 = vcmp.ge.s32.totalorder %v395_v4, 0  ;;  %vm397_vm0 = vcmp.lt.s32.totalorder %v395_v4, 16 }
 0x20a   : > { %v4296_v22 = vpop.permute.xlu1 %1357  ;;  %v4302_v60 = vpop.permute.xlu0 %1711  ;;  %vm4351_vm13 = vmand %vm396_vm8, %vm397_vm0 }
 0x20b   : > { %7848 = vst [vmem:[#allocation141_spill] sm:$0xff] %v4296_v22  ;;  %7849 = vst [vmem:[#allocation142_spill] sm:$0xff] %v4302_v60  ;;  %2270 = vrot.lane.b32.xlu0 %v4224_v38, %s3348_s19  ;;  %v7853_v60 = vmov 0  ;;  %v399_v22 = vadd.s32 2, %v305_v9  ;;  %v7860_v9 = vmov 0   ;;  %v7862_v44 = vsel %vm4351_vm13, 4294967295, %v7861_v44 }
 0x20c   : > { %1771 = vrot.lane.b32.xlu1 %v4224_v38, %s3325_s8  ;;  %3064 = vset.pattern.permute.xlu0 %v7481_v15  ;;  %v7854_v60 = vsel %vm4317_vm7, 4294967295, %v7853_v60  ;;  %v730_v15 = vadd.s32 4294967294, %v4248_v48  ;;  %7863 = vst [vmem:[#allocation147_spill] sm:$0xff] %v7862_v44  ;;  %v1781_v42 = vsel %vm1780_vm12, 1, %v7860_v9  ;;  %vm7871_vm0 = vmand %vm4277_vm9, %vm4291_vm11  ;;  %s3352_s8 = smov 83  }
 0x20d   : > { %7855 = vst [vmem:[#allocation144_spill] sm:$0xff] %v7854_v60  ;;  %vm400_vm1 = vcmp.ge.s32.totalorder %v399_v22, 0  ;;  %vm401_vm4 = vcmp.lt.s32.totalorder %v399_v22, 16  ;;  %v1785_v28 = vrot.slane %v1781_v42, %v4330_v49 }
 0x20e   : > { %v4321_v45 = vpop.permute.xlu1 %1371  ;;  %v4327_v5 = vpop.permute.xlu0 %1726  ;;  %vm731_vm8 = vcmp.ge.s32.totalorder %v730_v15, 0  ;;  %vm732_vm15 = vcmp.lt.s32.totalorder %v730_v15, 16  ;;  %vm4382_vm12 = vmand %vm400_vm1, %vm401_vm4 }
 0x20f   : > { %7856 = vst [vmem:[#allocation145_spill] sm:$0xff] %v4321_v45  ;;  %7859 = vst [vmem:[#allocation146_spill] sm:$0xff] %v4327_v5  ;;  %2296 = vperm.xlu0 %3064, %v4333_v40   ;;  %v427_v5 = vsel %vm426_vm14, 1, %v7860_v9  ;;  %v4348_v45 = vsub.s32 1, %v3648_v25  ;;  %v7868_v46 = vsel %vm4382_vm12, 4294967295, %v7867_v46 }
 0x210   : > { %1797 = vperm.xlu1 %3042, %v4333_v40   ;;  %v431_v30 = vrot.slane %v427_v5, %v4330_v49  ;;  %7869 = vst [vmem:[#allocation150_spill] sm:$0xff] %v7868_v46  ;;  %vm4396_vm14 = vmand %vm404_vm5, %vm405_vm3 }
 0x211   : > { %v1789_v26 = vrot.slane %v1781_v42, %v4348_v45  ;;  %vm4408_vm1 = vmand %vm731_vm8, %vm732_vm15 }
 0x212   : > { %v4359_v34 = vpop.permute.xlu1 %1375  ;;  %v4365_v4 = vpop.permute.xlu0 %1752  ;;  %vm4413_vm4 = vcmp.eq.s32.totalorder %v431_v30, 1  ;;  %vm7880_vm5 = vmand %vm4277_vm9, %vm4312_vm6  ;;  %v7881_v30 = vmov 0 }
 0x213   : > { %7864 = vst [vmem:[#allocation148_spill] sm:$0xff] %v4359_v34  ;;  %7865 = vst [vmem:[#allocation149_spill] sm:$0xff] %v4365_v4  ;;  %v7494_v34 = vmov 42   ;;  %v435_v4 = vrot.slane %v427_v5, %v4348_v45  ;;  %v7872_v5 = vmov 0  ;;  %v4423_v42 = vsel %vm7880_vm5, 1, %v7860_v9 }
 0x214   : > { %3066 = vset.pattern.permute.xlu0 %v7494_v34  ;;  %1812 = vrot.lane.b32.xlu1 %v4229_v1, %s3327_s28  ;;  %v474_v34 = vsel %vm7871_vm0, 1, %v7860_v9  ;;  %v7873_v5 = vsel %vm4396_vm14, 4294967295, %v7872_v5  ;;  %vm7883_vm15 = vmand %vm4277_vm9, %vm4317_vm7  ;;  %vm4459_vm5 = vcmp.eq.s32.totalorder %v1785_v28, 1  ;;  %vm4463_vm3 = vcmp.eq.s32.totalorder %v1789_v26, 1 }
 0x215   : > { %2345 = vperm.xlu0 %3066, %v4333_v40   ;;  %3045 = vset.pattern.permute.xlu1 %v7870_v39  ;;  %7874 = vst [vmem:[#allocation151_spill] sm:$0xff] %v7873_v5  ;;  %v4405_v39 = vadd.s32 4294967295, %v3648_v25  ;;  %vm4431_vm0 = vcmp.eq.s32.totalorder %v435_v4, 1  ;;  %v478_v15 = vrot.slane %v474_v34, %v4330_v49  ;;  %v4450_v4 = vsel %vm7883_vm15, 1, %v7860_v9  ;;  %vm7891_vm8 = vmand %vm4277_vm9, %vm4351_vm13 }
 0x216   : > { %v4400_v22 = vpop.permute.xlu1 %1401  ;;  %v1770_v21 = vpop.permute.xlu0 %1769  ;;  %v7882_v30 = vsel %vm4431_vm0, 4294967295, %v7881_v30  ;;  %v7889_v16 = vsel %vm4463_vm3, 4294967295, %v7888_v16  ;;  %v523_v14 = vrot.slane %v4423_v42, %v4330_v49  ;;  %v527_v11 = vrot.slane %v4423_v42, %v4348_v45  ;;  %vm7892_vm15 = vmand %vm4277_vm9, %vm4382_vm12 }
 0x217   : > { %7875 = vst [vmem:[#allocation152_spill] sm:$0xff] %v4400_v22  ;;  %v482_v22 = vrot.slane %v474_v34, %v4348_v45  ;;  %7890 = vst [vmem:[#allocation155_spill] sm:$0xff] %v7889_v16  ;;  %v4478_v28 = vsel %vm7891_vm8, 1, %v7860_v9  ;;  %v4486_v26 = vsel %vm7892_vm15, 1, %v7860_v9  ;;  %vm7894_vm12 = vcmp.lt.s32.totalorder %v4369_v33, 113 }
 0x218   : > { %1814 = vrot.lane.b32.xlu1 %v4241_v10, %s3327_s28  ;;  %vm7893_vm8 = vmand %vm4277_vm9, %vm4396_vm14  ;;  %vm4510_vm0 = vcmp.eq.s32.totalorder %v478_v15, 1  ;;  %v7948_v55 = vrot.slane %v4478_v28, %v4348_v45 }
 0x219   : > { %3069 = vset.pattern.permute.xlu0 %v7501_v19  ;;  %v7885_v19 = vmov 0  ;;  %vm792_vm15 = vmand %vm4408_vm1, %vm4291_vm11  ;;  %vm4514_vm9 = vcmp.eq.s32.totalorder %v482_v22, 1 }
 0x21a   : > { %2394 = vperm.xlu0 %3069, %v4272_v2   ;;  %v4457_v34 = vpop.permute.xlu1 %1416  ;;  %v7886_v19 = vsel %vm4459_vm5, 4294967295, %v7885_v19  ;;  %v1774_v42 = vpop.permute.xlu0 %1773  ;;  %vm7895_vm2 = vmmov %vm7894_vm12  ;;  %v4566_v15 = vsel %vm792_vm15, 1, %v7860_v9 }
 0x21b   : > { %7884 = vst [vmem:[#allocation153_spill] sm:$0xff] %v4457_v34  ;;  %7887 = vst [vmem:[#allocation154_spill] sm:$0xff] %v7886_v19  ;;  %v4498_v34 = vsel %vm7893_vm8, 1, %v7860_v9  ;;  %v1777_v7 = vsel %vm7894_vm12, %v1770_v21, %v1774_v42  ;;  %v1779_v46 = vsel %vm7895_vm2, %v1774_v42, %v1770_v21  ;;  %vm7916_vm12 = vcmp.lt.s32.totalorder %v4369_v33, 51 }
 0x21c   : > { %1818 = vrot.lane.b32.xlu1 %v4261_v0, %s3327_s28  ;;  %v1794_v63 = vsel %vm4459_vm5, %v1777_v7, 0.0  ;;  %v1795_v21 = vsel %vm4463_vm3, %v1779_v46, 0.0  ;;  %vm7900_vm2 = vmand %vm4408_vm1, %vm4283_vm10  ;;  %7903 = vst [vmem:[#allocation157_spill] sm:$0xff] %v4566_v15  ;;  %v7520_v46 = vmov 44   ;;  %vm4640_vm3 = vcmp.eq.s32.totalorder %v523_v14, 1  ;;  %s3354_s28 = smov 82  }
 0x21d   : > { %v4538_v6 = vsel %vm7900_vm2, 1, %v7860_v9  ;;  %vm7902_vm8 = vmand %vm4408_vm1, %vm4312_vm6  ;;  %vm7904_vm2 = vcmp.lt.s32.totalorder %v4369_v33, 51  ;;  %vm4644_vm5 = vcmp.eq.s32.totalorder %v527_v11, 1 }
 0x21e   : > { %2321 = vrot.lane.b32.xlu0 %v4261_v0, %s3352_s8  ;;  %v4546_v7 = vpop.permute.xlu1 %1418  ;;  %v4558_v22 = vsel %vm7902_vm8, 1, %v7860_v9  ;;  %v1802_v42 = vpop.permute.xlu0 %1801  ;;  %v423_v13 = vsel %vm7904_vm2, %v3634_v20, %v3640_v23  ;;  %vm7905_vm8 = vmmov %vm7904_vm2 }
 0x21f   : > { %7901 = vst [vmem:[#allocation156_spill] sm:$0xff] %v4546_v7  ;;  %3071 = vset.pattern.permute.xlu0 %v7520_v46  ;;  %v425_v16 = vsel %vm7905_vm8, %v3640_v23, %v3634_v20  ;;  %vm882_vm15 = vmand %vm4408_vm1, %vm4317_vm7  ;;  %v4582_v19 = vmul.f32 %v1802_v42, %v1794_v63  ;;  %v4584_v46 = vmul.f32 %v1802_v42, %v1795_v21  ;;  %v7912_v63 = vrot.slane %v3665_v31, 7 }
 0x220   : > { %1846 = vperm.xlu1 %3045, %v4272_v2   ;;  %vm7908_vm2 = vmand %vm4408_vm1, %vm4351_vm13  ;;  %v440_v7 = vsel %vm4413_vm4, %v425_v16, 0.0  ;;  %vm7911_vm8 = vnez %v7882_v30  ;;  %v7913_v21 = vrot.slane %v3670_v35, 7  ;;  %v4628_v20 = vsel %vm882_vm15, 1, %v7860_v9 }
 0x221   : > { %7906 = vst [vmem:[#allocation158_spill] sm:$0xff] %v4582_v19  ;;  %7907 = vst [vmem:[#allocation159_spill] sm:$0xff] %v4584_v46  ;;  %v4599_v23 = vsel %vm7908_vm2, 1, %v7860_v9  ;;  %v441_v46 = vsel %vm7911_vm8, %v423_v13, 0.0  ;;  %vm7914_vm2 = vcmp.lt.s32.totalorder %v3648_v25, 1  ;;  %v422_v13 = vsel %vm7916_vm12, %v3627_v18, %v3704_v47 }
 0x222   : > { %7909 = vst [vmem:[#allocation160_spill] sm:$0xff] %v4599_v23  ;;  %2439 = vperm.xlu0 %3071, %v4272_v2   ;;  %v4610_v29 = vpop.permute.xlu1 %1422  ;;  %v322_v42 = vsel %vm7914_vm2, %v7913_v21, %v7912_v63  ;;  %v4630_v19 = vpop.permute.xlu0 %1816  ;;  %vm7917_vm2 = vmmov %vm7916_vm12  ;;  %vm7922_vm12 = vnez %v7858_v37 }
 0x223   : > { %7910 = vst [vmem:[#allocation161_spill] sm:$0xff] %v4610_v29  ;;  %7915 = vst [vmem:[#allocation162_spill] sm:$0xff] %v4630_v19  ;;  %v424_v16 = vsel %vm7917_vm2, %v3704_v47, %v3627_v18  ;;  %v4657_v18 = vmul.f32 %v3656_v27, %v440_v7  ;;  %vm7923_vm2 = vcmp.lt.s32.totalorder %v4369_v33, 50  ;;  %v7925_v7 = vmov 32  }
 0x224   : > { %1857 = vrot.lane.b32.xlu1 %v4229_v1, %s3329_s13  ;;  %v469_v47 = vsel %vm7923_vm2, %v3667_v32, %v3710_v50  ;;  %vm7924_vm6 = vmmov %vm7923_vm2  ;;  %v4676_v19 = vmul.f32 %v3656_v27, %v441_v46  ;;  %v7926_v29 = vstv %s3653_s9  ;;  %v438_v27 = vsel %vm4413_vm4, %v424_v16, 0.0  ;;  %s3356_s9 = smov 81  }
 0x225   : > { %v471_v11 = vsel %vm7924_vm6, %v3710_v50, %v3667_v32  ;;  %vm1017_vm15 = vmand %vm4408_vm1, %vm4396_vm14  ;;  %3046 = vset.pattern.permute.xlu1 %v7925_v7  ;;  %v4681_v15 = vmul.f32 %v7926_v29, %v3665_v31  ;;  %vm7927_vm6 = vcmp.ge.s32.totalorder %v4405_v39, 0  ;;  %v439_v46 = vsel %vm7911_vm8, %v422_v13, 0.0 }
 0x226   : > { %v332_v32 = vsel %vm7927_vm6, %v322_v42, 0.0  ;;  %2364 = vrot.lane.b32.xlu0 %v4224_v38, %s3354_s28  ;;  %v4689_v14 = vpop.permute.xlu1 %1450  ;;  %v470_v29 = vsel %vm7923_vm2, %v3683_v41, %v3716_v51  ;;  %v7534_v39 = vmov 45   ;;  %v4700_v42 = vpop.permute.xlu0 %1842  ;;  %vm7930_vm4 = vmand %vm7922_vm12, %vm4351_vm13  ;;  %v485_v13 = vsel %vm4510_vm0, %v471_v11, 0.0 }
 0x227   : > { %7928 = vst [vmem:[#allocation163_spill] sm:$0xff] %v4689_v14  ;;  %3072 = vset.pattern.permute.xlu0 %v7534_v39  ;;  %7929 = vst [vmem:[#allocation164_spill] sm:$0xff] %v4700_v42  ;;  %v1871_v43 = vsel %vm7930_vm4, 1, %v7860_v9  ;;  %v486_v16 = vsel %vm4514_vm9, %v469_v47, 0.0  ;;  %v7932_v7 = vrot.slane %v4450_v4, %v4330_v49  ;;  %v7935_v50 = vrot.slane %v4450_v4, %v4348_v45  ;;  %v7987_v39 = vld [vmem:[#allocation18_spill] sm:$0xff] }
 0x228   : > { %vm7931_vm8 = vmmov %vm7923_vm2  ;;  %1861 = vrot.lane.b32.xlu1 %v4224_v38, %s3329_s13  ;;  %v7939_v4 = vrot.slane %v3665_v31, 1  ;;  %v497_v11 = vmul.f32 %v3718_v52, %v485_v13  ;;  %v7941_v14 = vstv %s3662_s30  ;;  %v453_v23 = vmul.f32 %v3645_v24, %v439_v46  ;;  %s7960_s30 = smov 110   ;;  %s3358_s13 = smov 80  }
 0x229   : > { %v472_v30 = vsel %vm7931_vm8, %v3716_v51, %v3683_v41  ;;  %vm4719_vm6 = vcmp.eq.s32.totalorder %v7932_v7, 1  ;;  %vm4726_vm2 = vcmp.eq.s32.totalorder %v7935_v50, 1  ;;  %v4737_v41 = vsel %vm1017_vm15, 1, %v7860_v9  ;;  %v8034_v7 = vld [vmem:[#allocation32_spill] sm:$0xff] }
 0x22a   : > { %v7938_v51 = vrot.slane %v3670_v35, 1  ;;  %vm7940_vm8 = vcmp.lt.s32.totalorder %v3648_v25, 7  ;;  %v498_v50 = vmul.f32 %v3718_v52, %v486_v16  ;;  %v4755_v44 = vmul.f32 %v7941_v14, %v332_v32  ;;  %2480 = vperm.xlu0 %3072, %v4333_v40   ;;  %v4759_v35 = vpop.permute.xlu1 %1461 }
 0x22b   : > { %7942 = vst [vmem:[#allocation165_spill] sm:$0xff] %v4759_v35  ;;  %v1875_v25 = vrot.slane %v1871_v43, %v4330_v49  ;;  %v1879_v31 = vrot.slane %v1871_v43, %v4348_v45  ;;  %v452_v13 = vmul.f32 %v3645_v24, %v438_v27  ;;  %v487_v52 = vsel %vm4510_vm0, %v472_v30, 0.0 }
 0x22c   : > { %v4747_v47 = vsel %vm7940_vm8, %v7939_v4, %v7938_v51  ;;  %v488_v16 = vsel %vm4514_vm9, %v470_v29, 0.0  ;;  %v7943_v14 = vrot.slane %v4478_v28, %v4330_v49  ;;  %v1860_v51 = vpop.permute.xlu0 %1859  ;;  %vm7946_vm8 = vcmp.lt.s32.totalorder %v4369_v33, 49  ;;  %1887 = vperm.xlu1 %3046, %v4333_v40  }
 0x22d   : > { %v514_v24 = vsel %vm7946_vm8, %v3723_v53, %v3732_v57  ;;  %vm7947_vm0 = vmmov %vm7946_vm8  ;;  %vm4788_vm9 = vcmp.eq.s32.totalorder %v7948_v55, 1  ;;  %v4795_v43 = vadd.f32 %v497_v11, %v452_v13  ;;  %v4797_v30 = vadd.f32 %v498_v50, %v453_v23 }
 0x22e   : > { %vm4771_vm15 = vcmp.eq.s32.totalorder %v7943_v14, 1  ;;  %v516_v12 = vsel %vm7947_vm0, %v3732_v57, %v3723_v53  ;;  %v499_v4 = vmul.f32 %v3725_v54, %v487_v52  ;;  %v517_v53 = vsel %vm7947_vm0, %v3738_v58, %v3730_v56  ;;  %2407 = vrot.lane.b32.xlu0 %v4241_v10, %s3356_s9  ;;  %v4808_v28 = vpop.permute.xlu1 %1465 }
 0x22f   : > { %v1049_v57 = vadd.s32 4294967295, %v4248_v48  ;;  %7951 = vst [vmem:[#allocation166_spill] sm:$0xff] %v4808_v28  ;;  %vm4810_vm4 = vcmp.eq.s32.totalorder %v1875_v25, 1  ;;  %v7952_v23 = vmov 0  ;;  %vm4814_vm10 = vcmp.eq.s32.totalorder %v1879_v31, 1  ;;  %v8136_v28 = vld [vmem:[#allocation48_spill] sm:$0xff] }
 0x230   : > { %v7953_v23 = vsel %vm4810_vm4, 4294967295, %v7952_v23  ;;  %v7955_v11 = vmov 0  ;;  %v500_v50 = vmul.f32 %v3725_v54, %v488_v16  ;;  %v515_v13 = vsel %vm7947_vm0, %v3730_v56, %v3738_v58  ;;  %v1864_v14 = vpop.permute.xlu0 %1863  ;;  %1902 = vrot.lane.b32.xlu1 %v4229_v1, %s7960_s30 }
 0x231   : > { %7954 = vst [vmem:[#allocation167_spill] sm:$0xff] %v7953_v23  ;;  %v7956_v11 = vsel %vm4814_vm10, 4294967295, %v7955_v11  ;;  %v530_v52 = vsel %vm4640_vm3, %v516_v12, 0.0  ;;  %v531_v25 = vsel %vm4644_vm5, %v514_v24, 0.0  ;;  %v7544_v55 = vmov 46   ;;  %v8036_v23 = vld [vmem:[#allocation36_spill] sm:$0xff] }
 0x232   : > { %7957 = vst [vmem:[#allocation168_spill] sm:$0xff] %v7956_v11  ;;  %3075 = vset.pattern.permute.xlu0 %v7544_v55  ;;  %vm7958_vm8 = vcmp.lt.s32.totalorder %v4369_v33, 48  ;;  %vm7961_vm0 = vcmp.lt.s32.totalorder %v4369_v33, 111  ;;  %v542_v16 = vmul.f32 %v3740_v59, %v530_v52  ;;  %v532_v24 = vsel %vm4640_vm3, %v517_v53, 0.0  ;;  %v4856_v63 = vpop.permute.xlu1 %1491  ;;  %v7965_v53 = vld [vmem:[#allocation15_spill] sm:$0xff]  ;;  %v7966_v52 = vld [vmem:[#allocation16_spill] sm:$0xff] }
 0x233   : > { %v560_v54 = vsel %vm7958_vm8, %v3749_v62, %v3756_v3  ;;  %vm7959_vm13 = vmmov %vm7958_vm8  ;;  %v1867_v58 = vsel %vm7961_vm0, %v1860_v51, %v1864_v14  ;;  %v533_v55 = vsel %vm4644_vm5, %v515_v13, 0.0  ;;  %2411 = vrot.lane.b32.xlu0 %v4261_v0, %s3356_s9  ;;  %7964 = vst [vmem:[#allocation169_spill] sm:$0xff] %v4856_v63  ;;  %v7968_v13 = vld [vmem:[#allocation20_spill] sm:$0xff]  ;;  %vm7970_vm5 = vcmp.lt.s32.totalorder %v4369_v33, 47 }
 0x234   : > { %v562_v56 = vsel %vm7959_vm13, %v3756_v3, %v3749_v62  ;;  %vm7962_vm12 = vmmov %vm7961_vm0  ;;  %v1884_v12 = vsel %vm4810_vm4, %v1867_v58, 0.0  ;;  %v7963_v3 = vmov 33   ;;  %v578_v21 = vsel %vm4726_vm2, %v560_v54, 0.0  ;;  %v1892_v29 = vpop.permute.xlu0 %1891  ;;  %1904 = vrot.lane.b32.xlu1 %v4241_v10, %s7960_s30 }
 0x235   : > { %v1869_v31 = vsel %vm7962_vm12, %v1864_v14, %v1860_v51  ;;  %3049 = vset.pattern.permute.xlu1 %v7963_v3  ;;  %v544_v51 = vmul.f32 %v3747_v61, %v532_v24  ;;  %vm1051_vm12 = vcmp.lt.s32.totalorder %v1049_v57, 16  ;;  %vm7967_vm3 = vmmov %vm7958_vm8  ;;  %v577_v58 = vsel %vm4719_vm6, %v562_v56, 0.0  ;;  %v7971_v3 = vld [vmem:[#allocation150_spill] sm:$0xff] }
 0x236   : > { %v1885_v62 = vsel %vm4814_vm10, %v1869_v31, 0.0  ;;  %v561_v14 = vsel %vm7967_vm3, %v7966_v52, %v7965_v53  ;;  %v7969_v31 = vld [vmem:[#allocation19_spill] sm:$0xff]  ;;  %vm7972_vm0 = vnez %v7971_v3  ;;  %v559_v46 = vsel %vm7967_vm3, %v7965_v53, %v7966_v52  ;;  %vm7973_vm13 = vmmov %vm7970_vm5 }
 0x237   : > { %v606_v24 = vsel %vm7970_vm5, %v7969_v31, %v7968_v13  ;;  %v604_v54 = vsel %vm7973_vm13, %v7968_v13, %v7969_v31  ;;  %v7974_v56 = vrot.slane %v4486_v26, %v4330_v49  ;;  %v7977_v11 = vrot.slane %v4486_v26, %v4348_v45  ;;  %vm7986_vm10 = vmand %vm4408_vm1, %vm7972_vm0  ;;  %2529 = vperm.xlu0 %3075, %v4272_v2  }
 0x238   : > { %v4898_v53 = vmul.f32 %v1892_v29, %v1884_v12  ;;  %v4900_v52 = vmul.f32 %v1892_v29, %v1885_v62  ;;  %v503_v13 = vadd.f32 %v499_v4, %v4657_v18  ;;  %v504_v31 = vadd.f32 %v500_v50, %v4676_v19  ;;  %v4942_v50 = vpop.permute.xlu0 %1906  ;;  %1908 = vrot.lane.b32.xlu1 %v4261_v0, %s7960_s30  ;;  %v7991_v62 = vld [vmem:[#allocation21_spill] sm:$0xff]  ;;  %s8365_s30 = smov 95  }
 0x239   : > { %vm4885_vm5 = vcmp.eq.s32.totalorder %v7974_v56, 1  ;;  %vm4892_vm8 = vcmp.eq.s32.totalorder %v7977_v11, 1  ;;  %v543_v56 = vmul.f32 %v3740_v59, %v531_v25  ;;  %v545_v63 = vmul.f32 %v3747_v61, %v533_v55  ;;  %v7985_v11 = vld [vmem:[#allocation17_spill] sm:$0xff]  ;;  %7989 = vst [vmem:[#allocation19_spill] sm:$0xff] %v4942_v50  ;;  %v8031_v50 = vld [vmem:[#allocation35_spill] sm:$0xff] }
 0x23a   : > { %7980 = vst [vmem:[#allocation15_spill] sm:$0xff] %v4898_v53  ;;  %7981 = vst [vmem:[#allocation16_spill] sm:$0xff] %v4900_v52  ;;  %vm7982_vm13 = vcmp.ge.s32.totalorder %v1049_v57, 0  ;;  %v589_v35 = vmul.f32 %v7985_v11, %v577_v58  ;;  %v575_v29 = vsel %vm4719_vm6, %v561_v14, 0.0  ;;  %v620_v18 = vsel %vm4771_vm15, %v606_v24, 0.0  ;;  %v4940_v57 = vpop.permute.xlu1 %1523  ;;  %v8137_v53 = vld [vmem:[#allocation56_spill] sm:$0xff] }
 0x23b   : > { %vm4908_vm3 = vmand %vm7982_vm13, %vm1051_vm12  ;;  %v4923_v59 = vsel %vm7986_vm10, 1, %v7860_v9  ;;  %v590_v61 = vmul.f32 %v7985_v11, %v578_v21  ;;  %v576_v19 = vsel %vm4726_vm2, %v559_v46, 0.0  ;;  %v587_v4 = vmul.f32 %v7987_v39, %v575_v29  ;;  %7988 = vst [vmem:[#allocation20_spill] sm:$0xff] %v4940_v57  ;;  %2454 = vrot.lane.b32.xlu0 %v4224_v38, %s3358_s13  ;;  %v7993_v11 = vld [vmem:[#allocation22_spill] sm:$0xff]  ;;  %v7994_v29 = vld [vmem:[#allocation24_spill] sm:$0xff] }
 0x23c   : > { %vm1111_vm12 = vmand %vm4908_vm3, %vm4291_vm11  ;;  %v621_v17 = vsel %vm4788_vm9, %v604_v54, 0.0  ;;  %v546_v25 = vadd.f32 %v542_v16, %v4795_v43  ;;  %v548_v55 = vadd.f32 %v544_v51, %v503_v13  ;;  %v588_v42 = vmul.f32 %v7987_v39, %v576_v19  ;;  %v4985_v13 = vpop.permute.xlu0 %1932  ;;  %v7997_v19 = vld [vmem:[#allocation23_spill] sm:$0xff]  ;;  %1936 = vperm.xlu1 %3049, %v4272_v2  }
 0x23d   : > { %vm1201_vm10 = vmand %vm4908_vm3, %vm4317_vm7  ;;  %vm7990_vm1 = vnez %v7858_v37  ;;  %v547_v46 = vadd.f32 %v543_v56, %v4797_v30  ;;  %v549_v12 = vadd.f32 %v545_v63, %v504_v31  ;;  %v632_v14 = vmul.f32 %v7991_v62, %v620_v18  ;;  %7992 = vst [vmem:[#allocation17_spill] sm:$0xff] %v4985_v13  ;;  %v8030_v13 = vld [vmem:[#allocation29_spill] sm:$0xff] }
 0x23e   : > { %vm1960_vm6 = vmand %vm7990_vm1, %vm4396_vm14  ;;  %v4956_v43 = vadd.f32 %v589_v35, %v548_v55  ;;  %v633_v16 = vmul.f32 %v7991_v62, %v621_v17  ;;  %v4967_v30 = vsel %vm1111_vm12, 1, %v7860_v9  ;;  %v591_v35 = vadd.f32 %v587_v4, %v546_v25  ;;  %v4982_v24 = vpop.permute.xlu1 %1527  ;;  %v8017_v55 = vld [vmem:[#allocation27_spill] sm:$0xff]  ;;  %v8059_v62 = vld [vmem:[#allocation41_spill] sm:$0xff] }
 0x23f   : > { %v4971_v63 = vadd.f32 %v590_v61, %v549_v12  ;;  %v4980_v21 = vsel %vm1201_vm10, 1, %v7860_v9  ;;  %v7550_v54 = vmov 47   ;;  %v1961_v31 = vsel %vm1960_vm6, 1, %v7860_v9  ;;  %v7996_v61 = vld [vmem:[#allocation25_spill] sm:$0xff] }
 0x240   : > { %3076 = vset.pattern.permute.xlu0 %v7550_v54  ;;  %v592_v56 = vadd.f32 %v588_v42, %v547_v46  ;;  %vm7995_vm13 = vcmp.lt.s32.totalorder %v4369_v33, 47  ;;  %vm7998_vm12 = vcmp.lt.s32.totalorder %v4369_v33, 46  ;;  %v5007_v17 = vadd.f32 %v632_v14, %v591_v35  ;;  %1947 = vrot.lane.b32.xlu1 %v4229_v1, %s3334_s22 }
 0x241   : > { %v607_v18 = vsel %vm7995_vm13, %v7994_v29, %v7993_v11  ;;  %v650_v39 = vsel %vm7998_vm12, %v7997_v19, %v7996_v61  ;;  %vm7999_vm10 = vmmov %vm7998_vm12  ;;  %v8002_v12 = vrot.slane %v4498_v34, %v4330_v49  ;;  %v8005_v14 = vrot.slane %v4498_v34, %v4348_v45  ;;  %2570 = vperm.xlu0 %3076, %v4333_v40  }
 0x242   : > { %v652_v4 = vsel %vm7999_vm10, %v7996_v61, %v7997_v19  ;;  %vm8000_vm6 = vmmov %vm7995_vm13  ;;  %vm8001_vm13 = vnez %v7842_v8  ;;  %v5021_v46 = vadd.f32 %v633_v16, %v592_v56  ;;  %v1965_v16 = vrot.slane %v1961_v31, %v4330_v49 }
 0x243   : > { %v605_v25 = vsel %vm8000_vm6, %v7993_v11, %v7994_v29  ;;  %vm1066_vm12 = vmand %vm4908_vm3, %vm8001_vm13  ;;  %vm5026_vm10 = vcmp.eq.s32.totalorder %v8002_v12, 1  ;;  %vm5033_vm6 = vcmp.eq.s32.totalorder %v8005_v14, 1  ;;  %v1969_v56 = vrot.slane %v1961_v31, %v4348_v45  ;;  %v5050_v12 = vpop.permute.xlu1 %1540  ;;  %v1950_v14 = vpop.permute.xlu0 %1949  ;;  %v8008_v31 = vld [vmem:[#allocation26_spill] sm:$0xff] }
 0x244   : > { %v622_v29 = vsel %vm4771_vm15, %v607_v18, 0.0  ;;  %v667_v34 = vsel %vm4885_vm5, %v652_v4, 0.0  ;;  %v668_v61 = vsel %vm4892_vm8, %v650_v39, 0.0  ;;  %v623_v54 = vsel %vm4788_vm9, %v605_v25, 0.0  ;;  %1951 = vrot.lane.b32.xlu1 %v4224_v38, %s3334_s22  ;;  %s8072_s22 = smov 99  }
 0x245   : > { %v634_v11 = vmul.f32 %v8008_v31, %v622_v29  ;;  %v8009_v32 = vrot.slane %v4538_v6, %v4330_v49  ;;  %v8010_v18 = vmov 0  ;;  %v5068_v39 = vsel %vm1066_vm12, 1, %v7860_v9  ;;  %2497 = vrot.lane.b32.xlu0 %v4241_v10, %s3360_s16 }
 0x246   : > { %v635_v27 = vmul.f32 %v8008_v31, %v623_v54  ;;  %v8012_v4 = vrot.slane %v4538_v6, %v4348_v45  ;;  %v8013_v25 = vmov 0  ;;  %v8015_v29 = vmov 34  }
 0x247   : > { %vm5058_vm15 = vcmp.eq.s32.totalorder %v8009_v32, 1  ;;  %3050 = vset.pattern.permute.xlu1 %v8015_v29  ;;  %v351_v32 = vadd.f32 %v4681_v15, %v4755_v44  ;;  %v8016_v19 = vstv %s3805_s11  ;;  %v5088_v51 = vmul.f32 %v8017_v55, %v667_v34  ;;  %v8024_v44 = vld [vmem:[#allocation30_spill] sm:$0xff]  ;;  %v8025_v15 = vld [vmem:[#allocation28_spill] sm:$0xff]  ;;  %s3362_s11 = smov 78  }
 0x248   : > { %v8011_v18 = vsel %vm5058_vm15, 4294967295, %v8010_v18  ;;  %vm5076_vm9 = vcmp.eq.s32.totalorder %v8012_v4, 1  ;;  %v370_v42 = vmul.f32 %v8016_v19, %v4747_v47  ;;  %v5091_v54 = vmul.f32 %v8017_v55, %v668_v61  ;;  %v1954_v61 = vpop.permute.xlu0 %1953  ;;  %1977 = vperm.xlu1 %3050, %v4333_v40  }
 0x249   : > { %v8014_v25 = vsel %vm5076_vm9, 4294967295, %v8013_v25  ;;  %vm5095_vm12 = vcmp.eq.s32.totalorder %v1965_v16, 1  ;;  %v8018_v6 = vmov 0  ;;  %vm5099_vm2 = vcmp.eq.s32.totalorder %v1969_v56, 1  ;;  %v5115_v56 = vpop.permute.xlu1 %1544  ;;  %2501 = vrot.lane.b32.xlu0 %v4261_v0, %s3360_s16 }
 0x24a   : > { %v8019_v6 = vsel %vm5095_vm12, 4294967295, %v8018_v6  ;;  %v8021_v31 = vmov 0  ;;  %vm8026_vm4 = vcmp.lt.s32.totalorder %v4369_v33, 46  ;;  %v7553_v19 = vmov 48  }
 0x24b   : > { %8020 = vst [vmem:[#allocation18_spill] sm:$0xff] %v8019_v6  ;;  %v8022_v31 = vsel %vm5099_vm2, 4294967295, %v8021_v31  ;;  %v649_v47 = vsel %vm8026_vm4, %v8025_v15, %v8024_v44  ;;  %vm8027_vm1 = vmmov %vm8026_vm4  ;;  %3079 = vset.pattern.permute.xlu0 %v7553_v19  ;;  %v638_v4 = vadd.f32 %v634_v11, %v4956_v43  ;;  %vm8028_vm4 = vcmp.lt.s32.totalorder %v4369_v33, 109 }
 0x24c   : > { %8023 = vst [vmem:[#allocation21_spill] sm:$0xff] %v8022_v31  ;;  %v651_v55 = vsel %vm8027_vm1, %v8024_v44, %v8025_v15  ;;  %v1957_v29 = vsel %vm8028_vm4, %v1950_v14, %v1954_v61  ;;  %vm8029_vm1 = vmmov %vm8028_vm4  ;;  %v1992_v15 = vadd.s32 2, %v4248_v48  ;;  %v639_v34 = vadd.f32 %v635_v27, %v4971_v63  ;;  %v8035_v27 = vld [vmem:[#allocation33_spill] sm:$0xff]  ;;  %1996 = vrot.lane.b32.xlu1 %v4229_v1, %s8072_s22 }
 0x24d   : > { %v1959_v44 = vsel %vm8029_vm1, %v1954_v61, %v1950_v14  ;;  %v1974_v16 = vsel %vm5095_vm12, %v1957_v29, 0.0  ;;  %v372_v43 = vadd.f32 %v370_v42, %v351_v32  ;;  %v665_v11 = vsel %vm4885_vm5, %v651_v55, 0.0  ;;  %v8039_v55 = vld [vmem:[#allocation37_spill] sm:$0xff]  ;;  %v1982_v29 = vpop.permute.xlu0 %1981  ;;  %2619 = vperm.xlu0 %3079, %v4272_v2  }
 0x24e   : > { %v1975_v19 = vsel %vm5099_vm2, %v1959_v44, 0.0  ;;  %v666_v58 = vsel %vm4892_vm8, %v649_v47, 0.0  ;;  %vm8032_vm4 = vcmp.lt.s32.totalorder %v4369_v33, 45  ;;  %v677_v42 = vmul.f32 %v8034_v7, %v665_v11  ;;  %v8038_v47 = vld [vmem:[#allocation39_spill] sm:$0xff] }
 0x24f   : > { %v694_v14 = vsel %vm8032_vm4, %v8031_v50, %v8030_v13  ;;  %vm8033_vm1 = vmmov %vm8032_vm4  ;;  %vm8037_vm8 = vcmp.lt.s32.totalorder %v4369_v33, 35  ;;  %v5167_v44 = vmul.f32 %v1982_v29, %v1974_v16  ;;  %v5169_v11 = vmul.f32 %v1982_v29, %v1975_v19  ;;  %v8057_v29 = vld [vmem:[#allocation143_spill] sm:$0xff] }
 0x250   : > { %v696_v63 = vsel %vm8033_vm1, %v8030_v13, %v8031_v50  ;;  %v746_v32 = vsel %vm8037_vm8, %v8036_v23, %v8035_v27  ;;  %vm8040_vm5 = vmmov %vm8033_vm1  ;;  %v5160_v13 = vpop.permute.xlu1 %1572  ;;  %v711_v31 = vsel %vm5033_vm6, %v694_v14, 0.0  ;;  %v8045_v40 = vrot.slane %v4558_v22, %v4330_v49  ;;  %1998 = vrot.lane.b32.xlu1 %v4241_v10, %s8072_s22 }
 0x251   : > { %v695_v61 = vsel %vm8040_vm5, %v8039_v55, %v8038_v47  ;;  %vm8041_vm4 = vmmov %vm8033_vm1  ;;  %8042 = vst [vmem:[#allocation22_spill] sm:$0xff] %v5167_v44  ;;  %v8046_v16 = vmov 0  ;;  %v8050_v19 = vmov 0  ;;  %vm8058_vm12 = vnez %v8057_v29  ;;  %2544 = vrot.lane.b32.xlu0 %v4224_v38, %s3362_s11  ;;  %v8120_v44 = vld [vmem:[#allocation67_spill] sm:$0xff] }
 0x252   : > { %v697_v50 = vsel %vm8041_vm4, %v8038_v47, %v8039_v55  ;;  %8043 = vst [vmem:[#allocation24_spill] sm:$0xff] %v5169_v11  ;;  %v678_v47 = vmul.f32 %v8034_v7, %v666_v58  ;;  %v710_v55 = vsel %vm5026_vm10, %v696_v63, 0.0  ;;  %vm8044_vm4 = vmmov %vm8037_vm8  ;;  %vm5183_vm1 = vcmp.eq.s32.totalorder %v8045_v40, 1  ;;  %v8053_v7 = vld [vmem:[#allocation157_spill] sm:$0xff]  ;;  %3080 = vset.pattern.permute.xlu0 %v7860_v9  ;;  %v8111_v11 = vld [vmem:[#allocation43_spill] sm:$0xff] }
 0x253   : > { %v744_v6 = vsel %vm8044_vm4, %v8035_v27, %v8036_v23  ;;  %v8047_v16 = vsel %vm5183_vm1, 4294967295, %v8046_v16  ;;  %v8049_v58 = vrot.slane %v4558_v22, %v4348_v45  ;;  %v712_v14 = vsel %vm5026_vm10, %v697_v50, 0.0 }
 0x254   : > { %8048 = vst [vmem:[#allocation25_spill] sm:$0xff] %v8047_v16  ;;  %v713_v63 = vsel %vm5033_vm6, %v695_v61, 0.0  ;;  %v8054_v27 = vrot.slane %v8053_v7, %v4330_v49  ;;  %v8055_v23 = vmov 0  ;;  %v761_v22 = vsel %vm5058_vm15, %v746_v32, 0.0  ;;  %vm8063_vm6 = vmand %vm4908_vm3, %vm7972_vm0  ;;  %v5231_v32 = vpop.permute.xlu1 %1583  ;;  %2002 = vrot.lane.b32.xlu1 %v4261_v0, %s8072_s22 }
 0x255   : > { %vm5190_vm5 = vcmp.eq.s32.totalorder %v8049_v58, 1  ;;  %v724_v35 = vmul.f32 %v8059_v62, %v712_v14  ;;  %v725_v61 = vmul.f32 %v8059_v62, %v713_v63  ;;  %v8060_v50 = vrot.slane %v8053_v7, %v4348_v45  ;;  %8064 = vst [vmem:[#allocation26_spill] sm:$0xff] %v5231_v32  ;;  %v5233_v14 = vpop.permute.xlu0 %2000 }
 0x256   : > { %v8051_v19 = vsel %vm5190_vm5, 4294967295, %v8050_v19  ;;  %vm5201_vm4 = vcmp.eq.s32.totalorder %v8054_v27, 1  ;;  %v8061_v40 = vmov 0  ;;  %v5229_v58 = vsel %vm8063_vm6, 1, %v7860_v9  ;;  %8065 = vst [vmem:[#allocation27_spill] sm:$0xff] %v5233_v14  ;;  %v8071_v27 = vld [vmem:[#allocation31_spill] sm:$0xff]  ;;  %vm8073_vm6 = vmand %vm4908_vm3, %vm8058_vm12 }
 0x257   : > { %8052 = vst [vmem:[#allocation23_spill] sm:$0xff] %v8051_v19  ;;  %v8056_v23 = vsel %vm5201_vm4, 4294967295, %v8055_v23  ;;  %vm5219_vm10 = vcmp.eq.s32.totalorder %v8060_v50, 1  ;;  %vm8066_vm2 = vcmp.lt.s32.totalorder %v1992_v15, 16  ;;  %vm8067_vm14 = vcmp.ge.s32.totalorder %v1992_v15, 0  ;;  %v8138_v19 = vld [vmem:[#allocation54_spill] sm:$0xff] }
 0x258   : > { %v8062_v40 = vsel %vm5219_vm10, 4294967295, %v8061_v40  ;;  %vm5237_vm8 = vmand %vm8067_vm14, %vm8066_vm2  ;;  %v8068_v63 = vmov 0  ;;  %v683_v7 = vadd.f32 %v5088_v51, %v638_v4  ;;  %v722_v62 = vmul.f32 %v8071_v27, %v710_v55 }
 0x259   : > { %v8069_v63 = vsel %vm5237_vm8, 4294967295, %v8068_v63  ;;  %v723_v50 = vmul.f32 %v8071_v27, %v711_v31  ;;  %v762_v57 = vsel %vm5076_vm9, %v744_v6, 0.0  ;;  %vm2054_vm14 = vmand %vm5237_vm8, %vm4291_vm11  ;;  %v684_v15 = vadd.f32 %v5091_v54, %v639_v34 }
 0x25a   : > { %8070 = vst [vmem:[#allocation30_spill] sm:$0xff] %v8069_v63  ;;  %v681_v51 = vadd.f32 %v677_v42, %v5007_v17  ;;  %v5262_v6 = vsel %vm8073_vm6, 1, %v7860_v9  ;;  %vm8074_vm0 = vcmp.lt.s32.totalorder %v4248_v48, 16  ;;  %vm8075_vm7 = vcmp.ge.s32.totalorder %v4248_v48, 0  ;;  %v8080_v42 = vld [vmem:[#allocation38_spill] sm:$0xff] }
 0x25b   : > { %vm5268_vm9 = vmand %vm8075_vm7, %vm8074_vm0  ;;  %v8078_v54 = vmov 35   ;;  %v8079_v17 = vstv %s3815_s14  ;;  %v682_v4 = vadd.f32 %v678_v47, %v5021_v46  ;;  %v773_v55 = vmul.f32 %v8080_v42, %v761_v22  ;;  %s3363_s14 = smov 77  }
 0x25c   : > { %3053 = vset.pattern.permute.xlu1 %v8078_v54  ;;  %v5275_v34 = vadd.f32 %v8079_v17, %v372_v43  ;;  %v774_v48 = vmul.f32 %v8080_v42, %v762_v57  ;;  %v728_v54 = vadd.f32 %v724_v35, %v683_v7  ;;  %v729_v32 = vadd.f32 %v725_v61, %v684_v15  ;;  %v5286_v43 = vpop.permute.xlu1 %1587  ;;  %v5288_v17 = vpop.permute.xlu0 %2026  ;;  %v8085_v57 = vld [vmem:[#allocation51_spill] sm:$0xff]  ;;  %v8086_v35 = vld [vmem:[#allocation53_spill] sm:$0xff]  ;;  %v8088_v7 = vld [vmem:[#allocation160_spill] sm:$0xff] }
 0x25d   : > { %8081 = vst [vmem:[#allocation28_spill] sm:$0xff] %v5286_v43  ;;  %8082 = vst [vmem:[#allocation29_spill] sm:$0xff] %v5288_v17  ;;  %v2055_v46 = vsel %vm2054_vm14, 1, %v7860_v9  ;;  %v5297_v47 = vadd.f32 %v722_v62, %v681_v51  ;;  %v5299_v22 = vadd.f32 %v723_v50, %v682_v4  ;;  %vm8087_vm7 = vcmp.lt.s32.totalorder %v4369_v33, 34  ;;  %v8110_v43 = vld [vmem:[#allocation45_spill] sm:$0xff]  ;;  %2585 = vrot.lane.b32.xlu0 %v4229_v1, %s3363_s14 }
 0x25e   : > { %v791_v61 = vsel %vm8087_vm7, %v8086_v35, %v8085_v57  ;;  %v8089_v15 = vrot.slane %v8088_v7, %v4330_v49  ;;  %v8090_v42 = vmov 0  ;;  %v8093_v14 = vrot.slane %v8088_v7, %v4348_v45  ;;  %v8102_v7 = vld [vmem:[#allocation44_spill] sm:$0xff]  ;;  %vm8105_vm8 = vmmov %vm8087_vm7  ;;  %2030 = vperm.xlu1 %3053, %v4272_v2  }
 0x25f   : > { %8083 = vst [vmem:[#allocation35_spill] sm:$0xff] %v5297_v47  ;;  %8084 = vst [vmem:[#allocation32_spill] sm:$0xff] %v5299_v22  ;;  %v8094_v62 = vmov 0  ;;  %v8097_v50 = vrot.slane %v4628_v20, %v4330_v49  ;;  %v8098_v51 = vmov 0  ;;  %vm8103_vm2 = vcmp.lt.s32.totalorder %v4369_v33, 33 }
 0x260   : > { %vm5308_vm0 = vcmp.eq.s32.totalorder %v8089_v15, 1  ;;  %vm5315_vm6 = vcmp.eq.s32.totalorder %v8093_v14, 1  ;;  %v8101_v14 = vld [vmem:[#allocation46_spill] sm:$0xff]  ;;  %vm8104_vm11 = vmmov %vm8103_vm2  ;;  %v789_v27 = vsel %vm8105_vm8, %v8085_v57, %v8086_v35  ;;  %v8106_v4 = vrot.slane %v4628_v20, %v4348_v45 }
 0x261   : > { %v8091_v42 = vsel %vm5308_vm0, 4294967295, %v8090_v42  ;;  %v8095_v62 = vsel %vm5315_vm6, 4294967295, %v8094_v62  ;;  %vm5322_vm14 = vcmp.eq.s32.totalorder %v8097_v50, 1  ;;  %v834_v15 = vsel %vm8103_vm2, %v8102_v7, %v8101_v14  ;;  %2589 = vrot.lane.b32.xlu0 %v4224_v38, %s3363_s14 }
 0x262   : > { %8092 = vst [vmem:[#allocation33_spill] sm:$0xff] %v8091_v42  ;;  %8096 = vst [vmem:[#allocation36_spill] sm:$0xff] %v8095_v62  ;;  %v8099_v51 = vsel %vm5322_vm14, 4294967295, %v8098_v51  ;;  %v836_v50 = vsel %vm8104_vm11, %v8101_v14, %v8102_v7  ;;  %vm5349_vm7 = vcmp.eq.s32.totalorder %v8106_v4, 1  ;;  %v8107_v10 = vmov 0  ;;  %v5692_v42 = vld [vmem:[#allocation7] sm:$0xff] }
 0x263   : > { %8100 = vst [vmem:[#allocation39_spill] sm:$0xff] %v8099_v51  ;;  %v8108_v10 = vsel %vm5349_vm7, 4294967295, %v8107_v10  ;;  %vm8112_vm2 = vcmp.lt.s32.totalorder %v4369_v33, 35  ;;  %v2059_v20 = vrot.slane %v2055_v46, %v4330_v49  ;;  %v2063_v35 = vrot.slane %v2055_v46, %v4348_v45 }
 0x264   : > { %8109 = vst [vmem:[#allocation37_spill] sm:$0xff] %v8108_v10  ;;  %v5359_v14 = vsel %vm8112_vm2, %v8111_v11, %v8110_v43  ;;  %vm8114_vm11 = vmmov %vm8112_vm2  ;;  %v806_v4 = vsel %vm5201_vm4, %v791_v61, 0.0  ;;  %v777_v7 = vadd.f32 %v773_v55, %v728_v54  ;;  %v778_v17 = vadd.f32 %v774_v48, %v729_v32  ;;  %v8117_v48 = vld [vmem:[#allocation55_spill] sm:$0xff] }
 0x265   : > { %8113 = vst [vmem:[#allocation157_spill] sm:$0xff] %v5359_v14  ;;  %v5365_v57 = vsel %vm8114_vm11, %v8110_v43, %v8111_v11  ;;  %vm8115_vm11 = vmand %vm5268_vm9, %vm8001_vm13  ;;  %v5383_v11 = vpop.permute.xlu1 %1613  ;;  %v2044_v43 = vpop.permute.xlu0 %2043  ;;  %v851_v46 = vsel %vm5183_vm1, %v836_v50, 0.0  ;;  %v852_v32 = vsel %vm5190_vm5, %v834_v15, 0.0  ;;  %v807_v55 = vsel %vm5219_vm10, %v789_v27, 0.0  ;;  %v8119_v15 = vld [vmem:[#allocation65_spill] sm:$0xff]  ;;  %2632 = vperm.xlu0 %3080, %v5275_v34  }
 0x266   : > { %v5381_v1 = vsel %vm8115_vm11, 1, %v7860_v9  ;;  %8116 = vst [vmem:[#allocation41_spill] sm:$0xff] %v5383_v11  ;;  %v818_v54 = vmul.f32 %v8117_v48, %v806_v4  ;;  %v819_v50 = vmul.f32 %v8117_v48, %v807_v55  ;;  %vm8121_vm2 = vcmp.lt.s32.totalorder %v4369_v33, 32 }
 0x267   : > { %v881_v27 = vsel %vm8121_vm2, %v8120_v44, %v8119_v15  ;;  %v8122_v0 = vrot.slane %v4737_v41, %v4330_v49  ;;  %v8123_v4 = vmov 0  ;;  %v8126_v61 = vrot.slane %v4923_v59, %v4330_v49 }
 0x268   : > { %v8127_v11 = vmov 0  ;;  %vm5424_vm2 = vcmp.eq.s32.totalorder %v2059_v20, 1  ;;  %v8130_v48 = vmov 0  ;;  %vm5428_vm8 = vcmp.eq.s32.totalorder %v2063_v35, 1 }
 0x269   : > { %vm5409_vm5 = vcmp.eq.s32.totalorder %v8122_v0, 1  ;;  %vm5416_vm1 = vcmp.eq.s32.totalorder %v8126_v61, 1  ;;  %v8131_v48 = vsel %vm5424_vm2, 4294967295, %v8130_v48  ;;  %v8133_v0 = vmov 0  ;;  %v2048_v16 = vpop.permute.xlu0 %2047 }
 0x26a   : > { %v8124_v4 = vsel %vm5409_vm5, 4294967295, %v8123_v4  ;;  %v8128_v11 = vsel %vm5416_vm1, 4294967295, %v8127_v11  ;;  %8132 = vst [vmem:[#allocation51_spill] sm:$0xff] %v8131_v48  ;;  %v8134_v0 = vsel %vm5428_vm8, 4294967295, %v8133_v0  ;;  %v863_v52 = vmul.f32 %v8136_v28, %v851_v46 }
 0x26b   : > { %8125 = vst [vmem:[#allocation31_spill] sm:$0xff] %v8124_v4  ;;  %8129 = vst [vmem:[#allocation38_spill] sm:$0xff] %v8128_v11  ;;  %v864_v61 = vmul.f32 %v8136_v28, %v852_v32  ;;  %vm8139_vm11 = vcmp.lt.s32.totalorder %v4369_v33, 31  ;;  %vm8140_vm10 = vcmp.lt.s32.totalorder %v4369_v33, 32  ;;  %v8141_v20 = vrot.slane %v4737_v41, %v4348_v45  ;;  %v5456_v32 = vpop.permute.xlu1 %1628  ;;  %v8223_v11 = vld [vmem:[#allocation74_spill] sm:$0xff] }
 0x26c   : > { %8135 = vst [vmem:[#allocation53_spill] sm:$0xff] %v8134_v0  ;;  %v924_v55 = vsel %vm8139_vm11, %v8138_v19, %v8137_v53  ;;  %v879_v38 = vsel %vm8140_vm10, %v8119_v15, %v8120_v44  ;;  %v8142_v35 = vmov 0  ;;  %v8145_v28 = vrot.slane %v4923_v59, %v4348_v45  ;;  %8149 = vst [vmem:[#allocation44_spill] sm:$0xff] %v5456_v32 }
 0x26d   : > { %vm5445_vm4 = vcmp.eq.s32.totalorder %v8141_v20, 1  ;;  %v8146_v46 = vmov 0  ;;  %v822_v22 = vadd.f32 %v818_v54, %v777_v7  ;;  %vm8150_vm10 = vmmov %vm8139_vm11  ;;  %vm8151_vm11 = vcmp.lt.s32.totalorder %v4369_v33, 98  ;;  %v8154_v7 = vld [vmem:[#allocation49_spill] sm:$0xff] }
 0x26e   : > { %v8143_v35 = vsel %vm5445_vm4, 4294967295, %v8142_v35  ;;  %vm5452_vm15 = vcmp.eq.s32.totalorder %v8145_v28, 1  ;;  %v926_v41 = vsel %vm8150_vm10, %v8137_v53, %v8138_v19  ;;  %v2051_v44 = vsel %vm8151_vm11, %v2044_v43, %v2048_v16  ;;  %vm8152_vm13 = vmmov %vm8151_vm11  ;;  %v8153_v19 = vld [vmem:[#allocation40_spill] sm:$0xff] }
 0x26f   : > { %8144 = vst [vmem:[#allocation160_spill] sm:$0xff] %v8143_v35  ;;  %v8147_v46 = vsel %vm5452_vm15, 4294967295, %v8146_v46  ;;  %v2053_v59 = vsel %vm8152_vm13, %v2048_v16, %v2044_v43  ;;  %v823_v15 = vadd.f32 %v819_v50, %v778_v17  ;;  %v896_v20 = vsel %vm5322_vm14, %v881_v27, 0.0  ;;  %v8156_v43 = vld [vmem:[#allocation69_spill] sm:$0xff]  ;;  %v8157_v27 = vld [vmem:[#allocation147_spill] sm:$0xff]  ;;  %v2076_v50 = vpop.permute.xlu0 %2075 }
 0x270   : > { %8148 = vst [vmem:[#allocation46_spill] sm:$0xff] %v8147_v46  ;;  %v2068_v2 = vsel %vm5424_vm2, %v2051_v44, 0.0  ;;  %v2069_v53 = vsel %vm5428_vm8, %v2053_v59, 0.0  ;;  %vm8155_vm13 = vcmp.lt.s32.totalorder %v4369_v33, 34  ;;  %v897_v17 = vsel %vm5349_vm7, %v879_v38, 0.0  ;;  %v8222_v46 = vld [vmem:[#allocation76_spill] sm:$0xff] }
 0x271   : > { %v5482_v16 = vsel %vm8155_vm13, %v8154_v7, %v8153_v19  ;;  %v908_v54 = vmul.f32 %v8156_v43, %v896_v20  ;;  %vm8158_vm11 = vnez %v8157_v27  ;;  %v5499_v38 = vsel %vm8155_vm13, %v8153_v19, %v8154_v7  ;;  %v5506_v20 = vpop.permute.xlu1 %1630  ;;  %v8168_v7 = vld [vmem:[#allocation81_spill] sm:$0xff] }
 0x272   : > { %v941_v28 = vsel %vm5308_vm0, %v926_v41, 0.0  ;;  %v942_v44 = vsel %vm5315_vm6, %v924_v55, 0.0  ;;  %v909_v59 = vmul.f32 %v8156_v43, %v897_v17  ;;  %v867_v0 = vadd.f32 %v863_v52, %v822_v22  ;;  %v8167_v55 = vld [vmem:[#allocation79_spill] sm:$0xff]  ;;  %v5531_v52 = vld [vmem:[%s3537_s10] sm:$0xff]  ;;  %vm8183_vm2 = vmand %vm4908_vm3, %vm8158_vm11 }
 0x273   : > { %v8159_v34 = vrot.slane %v4967_v30, %v4330_v49  ;;  %v8160_v48 = vmov 0  ;;  %v8163_v19 = vrot.slane %v4967_v30, %v4348_v45  ;;  %v8164_v41 = vmov 0  ;;  %2041 = vrot.lane.b32.xlu1 %v5531_v52, %s8170_s17 }
 0x274   : > { %vm8169_vm4 = vcmp.lt.s32.totalorder %v4369_v33, 30  ;;  %v5535_v30 = vmul.f32 %v2076_v50, %v2068_v2  ;;  %v5537_v22 = vmul.f32 %v2076_v50, %v2069_v53  ;;  %v868_v43 = vadd.f32 %v864_v61, %v823_v15 }
 0x275   : > { %vm5511_vm10 = vcmp.eq.s32.totalorder %v8159_v34, 1  ;;  %vm5518_vm13 = vcmp.eq.s32.totalorder %v8163_v19, 1  ;;  %v971_v17 = vsel %vm8169_vm4, %v8168_v7, %v8167_v55  ;;  %vm8173_vm8 = vmmov %vm8169_vm4  ;;  %v8174_v19 = vrot.slane %v5068_v39, %v4330_v49 }
 0x276   : > { %v8161_v48 = vsel %vm5511_vm10, 4294967295, %v8160_v48  ;;  %v8165_v41 = vsel %vm5518_vm13, 4294967295, %v8164_v41  ;;  %8171 = vst [vmem:[#allocation55_spill] sm:$0xff] %v5535_v30  ;;  %8172 = vst [vmem:[#allocation65_spill] sm:$0xff] %v5537_v22  ;;  %v969_v34 = vsel %vm8173_vm8, %v8167_v55, %v8168_v7  ;;  %v8175_v32 = vmov 0  ;;  %v8186_v55 = vld [vmem:[#allocation64_spill] sm:$0xff] }
 0x277   : > { %8162 = vst [vmem:[#allocation45_spill] sm:$0xff] %v8161_v48  ;;  %8166 = vst [vmem:[#allocation43_spill] sm:$0xff] %v8165_v41  ;;  %vm5546_vm4 = vcmp.eq.s32.totalorder %v8174_v19, 1  ;;  %v8178_v62 = vrot.slane %v5068_v39, %v4348_v45  ;;  %v8179_v2 = vmov 0  ;;  %v5571_v15 = vsel %vm8183_vm2, 1, %v7860_v9  ;;  %v8187_v7 = vld [vmem:[#allocation66_spill] sm:$0xff] }
 0x278   : > { %v8176_v32 = vsel %vm5546_vm4, 4294967295, %v8175_v32  ;;  %vm8182_vm8 = vmand %vm5268_vm9, %vm8058_vm12  ;;  %v8184_v39 = vmov 36   ;;  %v912_v22 = vadd.f32 %v908_v54, %v867_v0  ;;  %v913_v29 = vadd.f32 %v909_v59, %v868_v43  ;;  %v5596_v0 = vpop.permute.xlu0 %2090 }
 0x279   : > { %8177 = vst [vmem:[#allocation67_spill] sm:$0xff] %v8176_v32  ;;  %vm5553_vm5 = vcmp.eq.s32.totalorder %v8178_v62, 1  ;;  %v5563_v61 = vsel %vm8182_vm8, 1, %v7860_v9  ;;  %3054 = vset.pattern.permute.xlu1 %v8184_v39  ;;  %v8185_v62 = vld [vmem:[#allocation58_spill] sm:$0xff]  ;;  %vm8188_vm8 = vcmp.lt.s32.totalorder %v4369_v33, 29  ;;  %v986_v39 = vsel %vm5416_vm1, %v971_v17, 0.0  ;;  %vm8190_vm2 = vmand %vm5268_vm9, %vm8158_vm11 }
 0x27a   : > { %v8180_v2 = vsel %vm5553_vm5, 4294967295, %v8179_v2  ;;  %v953_v53 = vmul.f32 %v8185_v62, %v941_v28  ;;  %v954_v50 = vmul.f32 %v8185_v62, %v942_v44  ;;  %v1016_v19 = vsel %vm8188_vm8, %v8187_v7, %v8186_v55  ;;  %vm8189_vm12 = vmmov %vm8188_vm8  ;;  %v5594_v44 = vpop.permute.xlu1 %1634  ;;  %8191 = vst [vmem:[#allocation56_spill] sm:$0xff] %v5596_v0  ;;  %v8192_v62 = vld [vmem:[#allocation83_spill] sm:$0xff] }
 0x27b   : > { %8181 = vst [vmem:[#allocation48_spill] sm:$0xff] %v8180_v2  ;;  %v1014_v30 = vsel %vm8189_vm12, %v8186_v55, %v8187_v7  ;;  %v5592_v28 = vsel %vm8190_vm2, 1, %v7860_v9  ;;  %v987_v54 = vsel %vm5452_vm15, %v969_v34, 0.0  ;;  %v998_v59 = vmul.f32 %v8192_v62, %v986_v39  ;;  %v5608_v55 = vld [vmem:[%s3537_s10 + $0x8] sm:$0xff] }
 0x27c   : > { %2045 = vrot.lane.b32.xlu1 %v5608_v55, %s8170_s17  ;;  %vm8193_vm2 = vnez %v7854_v60  ;;  %vm8194_vm11 = vnez %v8069_v63  ;;  %vm8195_vm12 = vnez %v8124_v4  ;;  %v999_v7 = vmul.f32 %v8192_v62, %v987_v54  ;;  %v8208_v54 = vld [vmem:[#allocation93_spill] sm:$0xff]  ;;  %v5675_v4 = vpop.permute.xlu0 %2116 }
 0x27d   : > { %v1031_v34 = vsel %vm8195_vm12, %v1016_v19, 0.0  ;;  %v1251_v39 = vrot.slane %v5571_v15, %v4330_v49  ;;  %v1255_v43 = vrot.slane %v5571_v15, %v4348_v45  ;;  %vm8196_vm8 = vnez %v7971_v3  ;;  %8219 = vst [vmem:[#allocation79_spill] sm:$0xff] %v5675_v4 }
 0x27e   : > { %vm8197_vm6 = vnez %v8143_v35  ;;  %v957_v27 = vadd.f32 %v953_v53, %v912_v22  ;;  %vm8198_vm15 = vnez %v7873_v5  ;;  %v958_v15 = vadd.f32 %v954_v50, %v913_v29  ;;  %v8207_v53 = vld [vmem:[#allocation95_spill] sm:$0xff]  ;;  %v5673_v35 = vpop.permute.xlu1 %1662 }
 0x27f   : > { %v1032_v17 = vsel %vm8197_vm6, %v1014_v30, 0.0  ;;  %v8199_v62 = vrot.slane %v4980_v21, %v4330_v49  ;;  %v8200_v0 = vmov 0  ;;  %v8203_v30 = vrot.slane %v4980_v21, %v4348_v45 }
 0x280   : > { %v8204_v22 = vmov 0  ;;  %vm8209_vm0 = vcmp.lt.s32.totalorder %v4369_v33, 19  ;;  %v8211_v50 = vrot.slane %v5262_v6, %v4330_v49  ;;  %v8215_v21 = vrot.slane %v5262_v6, %v4348_v45  ;;  %2071 = vperm.xlu1 %3054, %v5692_v42   ;;  %v2134_v2 = vpop.permute.xlu0 %2133 }
 0x281   : > { %vm5640_vm1 = vcmp.eq.s32.totalorder %v8199_v62, 1  ;;  %vm5647_vm6 = vcmp.eq.s32.totalorder %v8203_v30, 1  ;;  %v1063_v19 = vsel %vm8209_vm0, %v8208_v54, %v8207_v53  ;;  %vm8210_vm12 = vmmov %vm8209_vm0  ;;  %v8212_v62 = vmov 0 }
 0x282   : > { %v8201_v0 = vsel %vm5640_vm1, 4294967295, %v8200_v0  ;;  %v8205_v22 = vsel %vm5647_vm6, 4294967295, %v8204_v22  ;;  %v1065_v29 = vsel %vm8210_vm12, %v8207_v53, %v8208_v54  ;;  %vm5662_vm7 = vcmp.eq.s32.totalorder %v8211_v50, 1  ;;  %vm8220_vm0 = vmand %vm8194_vm11, %vm8193_vm2  ;;  %v8221_v53 = vld [vmem:[#allocation68_spill] sm:$0xff] }
 0x283   : > { %8202 = vst [vmem:[#allocation54_spill] sm:$0xff] %v8201_v0  ;;  %8206 = vst [vmem:[#allocation40_spill] sm:$0xff] %v8205_v22  ;;  %v8213_v62 = vsel %vm5662_vm7, 4294967295, %v8212_v62  ;;  %vm5669_vm14 = vcmp.eq.s32.totalorder %v8215_v21, 1  ;;  %v8216_v30 = vmov 0  ;;  %v2145_v54 = vsel %vm8220_vm0, 1, %v7860_v9 }
 0x284   : > { %8214 = vst [vmem:[#allocation49_spill] sm:$0xff] %v8213_v62  ;;  %v8217_v30 = vsel %vm5669_vm14, 4294967295, %v8216_v30  ;;  %v1043_v50 = vmul.f32 %v8221_v53, %v1031_v34  ;;  %vm8224_vm12 = vcmp.lt.s32.totalorder %v4369_v33, 18  ;;  %v1002_v4 = vadd.f32 %v998_v59, %v957_v27  ;;  %2086 = vrot.lane.b32.xlu1 %v5531_v52, %s8238_s12 }
 0x285   : > { %8218 = vst [vmem:[#allocation69_spill] sm:$0xff] %v8217_v30  ;;  %v1108_v6 = vsel %vm8224_vm12, %v8223_v11, %v8222_v46  ;;  %vm8225_vm6 = vmmov %vm8224_vm12  ;;  %v1044_v10 = vmul.f32 %v8221_v53, %v1032_v17  ;;  %v1003_v51 = vadd.f32 %v999_v7, %v958_v15  ;;  %v1081_v27 = vsel %vm5553_vm5, %v1063_v19, 0.0  ;;  %v8228_v15 = vld [vmem:[#allocation97_spill] sm:$0xff] }
 0x286   : > { %v1110_v21 = vsel %vm8225_vm6, %v8222_v46, %v8223_v11  ;;  %vm8226_vm12 = vmand %vm5268_vm9, %vm8196_vm8  ;;  %v1080_v46 = vsel %vm5546_vm4, %v1065_v29, 0.0  ;;  %v2149_v59 = vrot.slane %v2145_v54, %v4330_v49  ;;  %v2153_v17 = vrot.slane %v2145_v54, %v4348_v45  ;;  %v5726_v29 = vpop.permute.xlu1 %1677 }
 0x287   : > { %v5703_v34 = vsel %vm8226_vm12, 1, %v7860_v9  ;;  %vm8227_vm6 = vmand %vm4908_vm3, %vm8198_vm15  ;;  %v1125_v26 = vsel %vm5511_vm10, %v1110_v21, 0.0  ;;  %v1126_v7 = vsel %vm5518_vm13, %v1108_v6, 0.0  ;;  %v1092_v53 = vmul.f32 %v8228_v15, %v1080_v46  ;;  %8229 = vst [vmem:[#allocation81_spill] sm:$0xff] %v5726_v29  ;;  %v8239_v46 = vld [vmem:[#allocation109_spill] sm:$0xff] }
 0x288   : > { %v5711_v11 = vsel %vm8227_vm6, 1, %v7860_v9  ;;  %v1093_v32 = vmul.f32 %v8228_v15, %v1081_v27  ;;  %v1047_v19 = vadd.f32 %v1043_v50, %v1002_v4  ;;  %v8230_v47 = vrot.slane %v5229_v58, %v4330_v49  ;;  %v8240_v27 = vld [vmem:[#allocation107_spill] sm:$0xff] }
 0x289   : > { %v8231_v14 = vmov 0  ;;  %v8234_v54 = vrot.slane %v5229_v58, %v4348_v45  ;;  %v8235_v6 = vmov 0  ;;  %v1341_v50 = vrot.slane %v5711_v11, %v4330_v49 }
 0x28a   : > { %vm5731_vm3 = vcmp.eq.s32.totalorder %v8230_v47, 1  ;;  %v1048_v47 = vadd.f32 %v1044_v10, %v1003_v51  ;;  %vm8241_vm6 = vcmp.lt.s32.totalorder %v4369_v33, 17  ;;  %vm5758_vm13 = vcmp.eq.s32.totalorder %v1251_v39, 1  ;;  %v8250_v10 = vld [vmem:[#allocation78_spill] sm:$0xff] }
 0x28b   : > { %v8232_v14 = vsel %vm5731_vm3, 4294967295, %v8231_v14  ;;  %vm5738_vm12 = vcmp.eq.s32.totalorder %v8234_v54, 1  ;;  %v1153_v58 = vsel %vm8241_vm6, %v8240_v27, %v8239_v46  ;;  %vm8242_vm0 = vmmov %vm8241_vm6  ;;  %v8243_v54 = vmov 0 }
 0x28c   : > { %8233 = vst [vmem:[#allocation58_spill] sm:$0xff] %v8232_v14  ;;  %v8236_v6 = vsel %vm5738_vm12, 4294967295, %v8235_v6  ;;  %v1155_v15 = vsel %vm8242_vm0, %v8239_v46, %v8240_v27  ;;  %v8244_v54 = vsel %vm5758_vm13, 4294967295, %v8243_v54  ;;  %vm5762_vm10 = vcmp.eq.s32.totalorder %v1255_v43, 1  ;;  %v8257_v43 = vld [vmem:[#allocation86_spill] sm:$0xff]  ;;  %v8258_v46 = vld [vmem:[#allocation84_spill] sm:$0xff] }
 0x28d   : > { %8237 = vst [vmem:[#allocation64_spill] sm:$0xff] %v8236_v6  ;;  %8245 = vst [vmem:[#allocation66_spill] sm:$0xff] %v8244_v54  ;;  %v8246_v4 = vmov 0  ;;  %v8249_v51 = vmov 37   ;;  %v1137_v21 = vmul.f32 %v8250_v10, %v1125_v26  ;;  %v1138_v29 = vmul.f32 %v8250_v10, %v1126_v7  ;;  %v8315_v6 = vld [vmem:[#allocation104_spill] sm:$0xff]  ;;  %v8316_v14 = vld [vmem:[#allocation106_spill] sm:$0xff] }
 0x28e   : > { %v8247_v4 = vsel %vm5762_vm10, 4294967295, %v8246_v4  ;;  %3057 = vset.pattern.permute.xlu1 %v8249_v51  ;;  %vm5770_vm6 = vcmp.eq.s32.totalorder %v2149_v59, 1  ;;  %v8251_v41 = vmov 0  ;;  %vm5774_vm0 = vcmp.eq.s32.totalorder %v2153_v17, 1  ;;  %v5791_v59 = vpop.permute.xlu1 %1681  ;;  %v2138_v17 = vpop.permute.xlu0 %2137 }
 0x28f   : > { %8248 = vst [vmem:[#allocation83_spill] sm:$0xff] %v8247_v4  ;;  %v8252_v41 = vsel %vm5770_vm6, 4294967295, %v8251_v41  ;;  %v8254_v39 = vmov 0  ;;  %vm8259_vm4 = vcmp.lt.s32.totalorder %v4369_v33, 16  ;;  %v1096_v51 = vadd.f32 %v1092_v53, %v1047_v19  ;;  %8262 = vst [vmem:[#allocation68_spill] sm:$0xff] %v5791_v59  ;;  %v5799_v53 = vld [vmem:[%s3537_s10 + $0x10] sm:$0xff] }
 0x290   : > { %8253 = vst [vmem:[#allocation95_spill] sm:$0xff] %v8252_v41  ;;  %v8255_v39 = vsel %vm5774_vm0, 4294967295, %v8254_v39  ;;  %v1198_v27 = vsel %vm8259_vm4, %v8258_v46, %v8257_v43  ;;  %vm8260_vm5 = vmmov %vm8259_vm4  ;;  %v1097_v7 = vadd.f32 %v1093_v32, %v1048_v47  ;;  %vm8261_vm11 = vnez %v7845_v36  ;;  %2088 = vrot.lane.b32.xlu1 %v5799_v53, %s8238_s12  ;;  %v8265_v47 = vld [vmem:[#allocation111_spill] sm:$0xff] }
 0x291   : > { %8256 = vst [vmem:[#allocation93_spill] sm:$0xff] %v8255_v39  ;;  %v1200_v26 = vsel %vm8260_vm5, %v8257_v43, %v8258_v46  ;;  %vm1429_vm8 = vmand %vm5268_vm9, %vm8261_vm11  ;;  %v1170_v10 = vsel %vm5662_vm7, %v1155_v15, 0.0  ;;  %v1171_v48 = vsel %vm5669_vm14, %v1153_v58, 0.0  ;;  %vm8263_vm4 = vcmp.lt.s32.totalorder %v4369_v33, 96 }
 0x292   : > { %v2141_v32 = vsel %vm8263_vm4, %v2134_v2, %v2138_v17  ;;  %vm8264_vm15 = vmmov %vm8263_vm4  ;;  %v1182_v43 = vmul.f32 %v8265_v47, %v1170_v10  ;;  %v1183_v15 = vmul.f32 %v8265_v47, %v1171_v48  ;;  %v1215_v59 = vsel %vm5640_vm1, %v1200_v26, 0.0  ;;  %v8275_v47 = vld [vmem:[#allocation123_spill] sm:$0xff]  ;;  %v5849_v41 = vpop.permute.xlu1 %1707 }
 0x293   : > { %v2143_v19 = vsel %vm8264_vm15, %v2138_v17, %v2134_v2  ;;  %v2158_v58 = vsel %vm5770_vm6, %v2141_v32, 0.0  ;;  %vm8266_vm5 = vnez %v8205_v22  ;;  %v8267_v2 = vrot.slane %v5381_v1, %v4330_v49  ;;  %8279 = vst [vmem:[#allocation97_spill] sm:$0xff] %v5849_v41  ;;  %v2166_v22 = vpop.permute.xlu0 %2165 }
 0x294   : > { %v2159_v46 = vsel %vm5774_vm0, %v2143_v19, 0.0  ;;  %v1216_v30 = vsel %vm8266_vm5, %v1198_v27, 0.0  ;;  %v8268_v17 = vmov 0  ;;  %v1345_v48 = vrot.slane %v5711_v11, %v4348_v45 }
 0x295   : > { %vm5820_vm15 = vcmp.eq.s32.totalorder %v8267_v2, 1  ;;  %v5832_v26 = vsel %vm1429_vm8, 1, %v7860_v9  ;;  %v8271_v27 = vrot.slane %v5381_v1, %v4348_v45  ;;  %v8272_v10 = vmov 0  ;;  %v8276_v2 = vld [vmem:[#allocation121_spill] sm:$0xff]  ;;  %v8280_v1 = vld [vmem:[#allocation96_spill] sm:$0xff] }
 0x296   : > { %v8269_v17 = vsel %vm5820_vm15, 4294967295, %v8268_v17  ;;  %v1141_v32 = vadd.f32 %v1137_v21, %v1096_v51  ;;  %v1142_v19 = vadd.f32 %v1138_v29, %v1097_v7  ;;  %vm8277_vm0 = vcmp.lt.s32.totalorder %v4369_v33, 15  ;;  %v5864_v21 = vld [vmem:[%s3537_s10 + $0x18] sm:$0xff] }
 0x297   : > { %8270 = vst [vmem:[#allocation76_spill] sm:$0xff] %v8269_v17  ;;  %vm5837_vm4 = vcmp.eq.s32.totalorder %v8271_v27, 1  ;;  %v1243_v11 = vsel %vm8277_vm0, %v8276_v2, %v8275_v47  ;;  %vm8278_vm6 = vmmov %vm8277_vm0  ;;  %v8281_v27 = vld [vmem:[#allocation94_spill] sm:$0xff]  ;;  %vm8282_vm8 = vcmp.lt.s32.totalorder %v4369_v33, 14  ;;  %vm8284_vm0 = vnez %v7842_v8  ;;  %2092 = vrot.lane.b32.xlu1 %v5864_v21, %s8238_s12 }
 0x298   : > { %v8273_v10 = vsel %vm5837_vm4, 4294967295, %v8272_v10  ;;  %v1245_v39 = vsel %vm8278_vm6, %v8275_v47, %v8276_v2  ;;  %v1288_v0 = vsel %vm8282_vm8, %v8281_v27, %v8280_v1  ;;  %vm8283_vm5 = vmmov %vm8282_vm8  ;;  %vm8285_vm1 = vnez %v7858_v37  ;;  %v8288_v47 = vld [vmem:[#allocation88_spill] sm:$0xff] }
 0x299   : > { %8274 = vst [vmem:[#allocation74_spill] sm:$0xff] %v8273_v10  ;;  %v1290_v29 = vsel %vm8283_vm5, %v8280_v1, %v8281_v27  ;;  %v5868_v51 = vmul.f32 %v2166_v22, %v2158_v58  ;;  %v5870_v7 = vmul.f32 %v2166_v22, %v2159_v46  ;;  %v1227_v2 = vmul.f32 %v8288_v47, %v1215_v59  ;;  %v8329_v10 = vld [vmem:[#allocation108_spill] sm:$0xff] }
 0x29a   : > { %v1228_v41 = vmul.f32 %v8288_v47, %v1216_v30  ;;  %v1186_v62 = vadd.f32 %v1182_v43, %v1141_v32  ;;  %v1187_v1 = vadd.f32 %v1183_v15, %v1142_v19  ;;  %v1260_v27 = vsel %vm5758_vm13, %v1245_v39, 0.0  ;;  %v8295_v15 = vld [vmem:[#allocation125_spill] sm:$0xff]  ;;  %v5897_v32 = vpop.permute.xlu1 %1722 }
 0x29b   : > { %8286 = vst [vmem:[#allocation109_spill] sm:$0xff] %v5868_v51  ;;  %8287 = vst [vmem:[#allocation107_spill] sm:$0xff] %v5870_v7  ;;  %v1261_v22 = vsel %vm5762_vm10, %v1243_v11, 0.0  ;;  %vm5883_vm8 = vcmp.eq.s32.totalorder %v1341_v50, 1  ;;  %v8289_v58 = vmov 0  ;;  %vm5887_vm14 = vcmp.eq.s32.totalorder %v1345_v48, 1  ;;  %v5899_v50 = vpop.permute.xlu0 %2180 }
 0x29c   : > { %v8290_v58 = vsel %vm5883_vm8, 4294967295, %v8289_v58  ;;  %v8292_v30 = vmov 0  ;;  %v1305_v59 = vsel %vm5731_vm3, %v1290_v29, 0.0  ;;  %v1306_v43 = vsel %vm5738_vm12, %v1288_v0, 0.0  ;;  %8296 = vst [vmem:[#allocation84_spill] sm:$0xff] %v5897_v32  ;;  %8297 = vst [vmem:[#allocation111_spill] sm:$0xff] %v5899_v50 }
 0x29d   : > { %8291 = vst [vmem:[#allocation78_spill] sm:$0xff] %v8290_v58  ;;  %v8293_v30 = vsel %vm5887_vm14, 4294967295, %v8292_v30  ;;  %v1272_v46 = vmul.f32 %v8295_v15, %v1260_v27  ;;  %v1273_v39 = vmul.f32 %v8295_v15, %v1261_v22  ;;  %v8298_v48 = vrot.slane %v5563_v61, %v4330_v49  ;;  %vm8306_vm12 = vmand %vm8285_vm1, %vm8284_vm0  ;;  %v5935_v22 = vld [vmem:[#allocation7 + $0x8] sm:$0xff] }
 0x29e   : > { %8294 = vst [vmem:[#allocation86_spill] sm:$0xff] %v8293_v30  ;;  %v8299_v19 = vmov 0  ;;  %v8302_v11 = vrot.slane %v5563_v61, %v4348_v45  ;;  %v8303_v0 = vmov 0  ;;  %v5921_v29 = vsel %vm8306_vm12, 1, %v7860_v9  ;;  %vm8307_vm3 = vmand %vm5268_vm9, %vm8193_vm2  ;;  %2120 = vperm.xlu1 %3057, %v5935_v22   ;;  %v8314_v51 = vld [vmem:[#allocation98_spill] sm:$0xff] }
 0x29f   : > { %vm5904_vm6 = vcmp.eq.s32.totalorder %v8298_v48, 1  ;;  %v1434_v47 = vrot.slane %v5832_v26, %v4330_v49  ;;  %v1438_v27 = vrot.slane %v5832_v26, %v4348_v45  ;;  %v5933_v61 = vsel %vm8307_vm3, 1, %v7860_v9  ;;  %v8310_v26 = vld [vmem:[#allocation137_spill] sm:$0xff]  ;;  %v8331_v58 = vld [vmem:[#allocation114_spill] sm:$0xff] }
 0x2a0   : > { %v8300_v19 = vsel %vm5904_vm6, 4294967295, %v8299_v19  ;;  %vm5911_vm5 = vcmp.eq.s32.totalorder %v8302_v11, 1  ;;  %vm8308_vm12 = vnez %v7971_v3  ;;  %vm8309_vm0 = vnez %v8069_v63  ;;  %v8311_v11 = vld [vmem:[#allocation135_spill] sm:$0xff]  ;;  %v5961_v63 = vpop.permute.xlu1 %1724 }
 0x2a1   : > { %8301 = vst [vmem:[#allocation123_spill] sm:$0xff] %v8300_v19  ;;  %v8304_v0 = vsel %vm5911_vm5, 4294967295, %v8303_v0  ;;  %vm2234_vm10 = vmand %vm8309_vm0, %vm8308_vm12  ;;  %v1231_v15 = vadd.f32 %v1227_v2, %v1186_v62  ;;  %v1232_v48 = vadd.f32 %v1228_v41, %v1187_v1  ;;  %vm8312_vm13 = vcmp.lt.s32.totalorder %v4369_v33, 13  ;;  %v8359_v19 = vld [vmem:[#allocation128_spill] sm:$0xff] }
 0x2a2   : > { %8305 = vst [vmem:[#allocation121_spill] sm:$0xff] %v8304_v0  ;;  %v1333_v50 = vsel %vm8312_vm13, %v8311_v11, %v8310_v26  ;;  %vm8313_vm3 = vmmov %vm8312_vm13  ;;  %v1317_v32 = vmul.f32 %v8314_v51, %v1305_v59  ;;  %v1318_v8 = vmul.f32 %v8314_v51, %v1306_v43  ;;  %vm8317_vm0 = vcmp.lt.s32.totalorder %v4369_v33, 3  ;;  %2131 = vrot.lane.b32.xlu1 %v5531_v52, %s8322_s18 }
 0x2a3   : > { %v1335_v7 = vsel %vm8313_vm3, %v8310_v26, %v8311_v11  ;;  %v1383_v62 = vsel %vm8317_vm0, %v8316_v14, %v8315_v6  ;;  %vm7658_vm12 = vcmp.lt.s32.totalorder %v4369_v33, 2  ;;  %vm8318_vm13 = vmmov %vm8317_vm0  ;;  %v1276_v2 = vadd.f32 %v1272_v46, %v1231_v15  ;;  %v5963_v26 = vpop.permute.xlu0 %2206  ;;  %v8323_v46 = vld [vmem:[#allocation141_spill] sm:$0xff] }
 0x2a4   : > { %v1381_v41 = vsel %vm8318_vm13, %v8315_v6, %v8316_v14  ;;  %v1277_v1 = vadd.f32 %v1273_v39, %v1232_v48  ;;  %8319 = vst [vmem:[#allocation96_spill] sm:$0xff] %v5963_v26  ;;  %v2235_v51 = vsel %vm2234_vm10, 1, %v7860_v9  ;;  %v1350_v59 = vsel %vm5883_vm8, %v1335_v7, 0.0 }
 0x2a5   : > { %v1351_v43 = vsel %vm5887_vm14, %v1333_v50, 0.0  ;;  %vm5971_vm0 = vcmp.eq.s32.totalorder %v1434_v47, 1  ;;  %v8320_v11 = vmov 0  ;;  %v1511_v14 = vrot.slane %v5933_v61, %v4330_v49 }
 0x2a6   : > { %v8321_v11 = vsel %vm5971_vm0, 4294967295, %v8320_v11  ;;  %v1398_v6 = vsel %vm5820_vm15, %v1383_v62, 0.0  ;;  %v1362_v39 = vmul.f32 %v8323_v46, %v1350_v59  ;;  %v1363_v7 = vmul.f32 %v8323_v46, %v1351_v43  ;;  %v8328_v46 = vld [vmem:[#allocation156_spill] sm:$0xff]  ;;  %2135 = vrot.lane.b32.xlu1 %v5608_v55, %s8322_s18 }
 0x2a7   : > { %vm5983_vm10 = vcmp.eq.s32.totalorder %v1438_v27, 1  ;;  %v8324_v15 = vmov 0  ;;  %v8326_v50 = vmov 38   ;;  %v1399_v47 = vsel %vm5837_vm4, %v1381_v41, 0.0  ;;  %v8327_v27 = vld [vmem:[#allocation161_spill] sm:$0xff] }
 0x2a8   : > { %v8325_v15 = vsel %vm5983_vm10, 4294967295, %v8324_v15  ;;  %3058 = vset.pattern.permute.xlu1 %v8326_v50  ;;  %v1515_v48 = vrot.slane %v5933_v61, %v4348_v45  ;;  %v2239_v26 = vrot.slane %v2235_v51, %v4330_v49  ;;  %v2243_v62 = vrot.slane %v2235_v51, %v4348_v45  ;;  %v6003_v50 = vpop.permute.xlu1 %1728  ;;  %v2224_v61 = vpop.permute.xlu0 %2223  ;;  %v8330_v51 = vld [vmem:[#allocation116_spill] sm:$0xff] }
 0x2a9   : > { %v1321_v59 = vadd.f32 %v1317_v32, %v1276_v2  ;;  %v1322_v43 = vadd.f32 %v1318_v8, %v1277_v1  ;;  %v1426_v17 = vsel %vm7658_vm12, %v8328_v46, %v8327_v27  ;;  %v1428_v41 = vsel %vm7658_vm12, %v8327_v27, %v8328_v46 }
 0x2aa   : > { %v1410_v30 = vmul.f32 %v8329_v10, %v1398_v6  ;;  %vm8332_vm13 = vcmp.lt.s32.totalorder %v4369_v33, 1  ;;  %v8334_v2 = vrot.slane %v5703_v34, %v4330_v49  ;;  %v8337_v6 = vrot.slane %v5703_v34, %v4348_v45  ;;  %2161 = vperm.xlu1 %3058, %v5692_v42  }
 0x2ab   : > { %v1471_v8 = vsel %vm8332_vm13, %v8331_v58, %v8330_v51  ;;  %vm8333_vm3 = vmmov %vm8332_vm13  ;;  %vm6028_vm13 = vcmp.eq.s32.totalorder %v1511_v14, 1  ;;  %v8340_v46 = vmov 0  ;;  %v8343_v34 = vrot.slane %v5592_v28, %v4330_v49 }
 0x2ac   : > { %v1473_v32 = vsel %vm8333_vm3, %v8330_v51, %v8331_v58  ;;  %vm6017_vm4 = vcmp.eq.s32.totalorder %v8334_v2, 1  ;;  %vm6024_vm12 = vcmp.eq.s32.totalorder %v8337_v6, 1  ;;  %v8341_v46 = vsel %vm6028_vm13, 4294967295, %v8340_v46 }
 0x2ad   : > { %8342 = vst [vmem:[#allocation94_spill] sm:$0xff] %v8341_v46  ;;  %v1411_v58 = vmul.f32 %v8329_v10, %v1399_v47  ;;  %v1366_v51 = vadd.f32 %v1362_v39, %v1321_v59  ;;  %v1367_v2 = vadd.f32 %v1363_v7, %v1322_v43  ;;  %vm6039_vm15 = vcmp.eq.s32.totalorder %v8343_v34, 1  ;;  %v8352_v47 = vld [vmem:[#allocation163_spill] sm:$0xff] }
 0x2ae   : > { %v1443_v14 = vsel %vm5971_vm0, %v1428_v41, 0.0  ;;  %v1444_v4 = vsel %vm5983_vm10, %v1426_v17, 0.0  ;;  %vm6047_vm14 = vcmp.eq.s32.totalorder %v2239_v26, 1  ;;  %v8346_v54 = vmov 0  ;;  %v6065_v17 = vpop.permute.xlu1 %1756  ;;  %v2228_v26 = vpop.permute.xlu0 %2227  ;;  %2176 = vrot.lane.b32.xlu1 %v5531_v52, %s8365_s30 }
 0x2af   : > { %v8347_v54 = vsel %vm6047_vm14, 4294967295, %v8346_v54  ;;  %vm6051_vm8 = vcmp.eq.s32.totalorder %v2243_v62, 1  ;;  %v8349_v10 = vmov 0  ;;  %v1488_v39 = vsel %vm5904_vm6, %v1473_v32, 0.0 }
 0x2b0   : > { %8348 = vst [vmem:[#allocation88_spill] sm:$0xff] %v8347_v54  ;;  %v8350_v10 = vsel %vm6051_vm8, 4294967295, %v8349_v10  ;;  %v1489_v7 = vsel %vm5911_vm5, %v1471_v8, 0.0  ;;  %v1455_v59 = vmul.f32 %v8352_v47, %v1443_v14  ;;  %v1456_v43 = vmul.f32 %v8352_v47, %v1444_v4  ;;  %v8358_v14 = vld [vmem:[#allocation118_spill] sm:$0xff] }
 0x2b1   : > { %8351 = vst [vmem:[#allocation125_spill] sm:$0xff] %v8350_v10  ;;  %vm8353_vm3 = vnez %v7873_v5  ;;  %vm6067_vm0 = vcmp.eq.s32.totalorder %v1515_v48, 1  ;;  %v1520_v41 = vsel %vm6028_vm13, %v5799_v53, 0.0  ;;  %vm8356_vm5 = vcmp.lt.s32.totalorder %v4369_v33, 94 }
 0x2b2   : > { %vm1641_vm10 = vmand %vm5268_vm9, %vm8353_vm3  ;;  %v2231_v4 = vsel %vm8356_vm5, %v2224_v61, %v2228_v26  ;;  %v1414_v8 = vadd.f32 %v1410_v30, %v1366_v51  ;;  %v1415_v32 = vadd.f32 %v1411_v58, %v1367_v2  ;;  %v1500_v47 = vmul.f32 %v8358_v14, %v1488_v39  ;;  %v6097_v39 = vpop.permute.xlu1 %1767  ;;  %2178 = vrot.lane.b32.xlu1 %v5799_v53, %s8365_s30 }
 0x2b3   : > { %vm8357_vm6 = vmmov %vm8356_vm5  ;;  %v2248_v48 = vsel %vm6047_vm14, %v2231_v4, 0.0  ;;  %v1501_v5 = vmul.f32 %v8358_v14, %v1489_v7  ;;  %v1521_v46 = vsel %vm6067_vm0, %v5864_v21, 0.0  ;;  %v1642_v0 = vsel %vm1641_vm10, 1, %v7860_v9  ;;  %v2256_v7 = vpop.permute.xlu0 %2255 }
 0x2b4   : > { %v2233_v31 = vsel %vm8357_vm6, %v2228_v26, %v2224_v61  ;;  %v8360_v61 = vld [vmem:[#allocation126_spill] sm:$0xff]  ;;  %vm8361_vm9 = vcmp.lt.s32.totalorder %v4369_v33, 126  ;;  %v1459_v51 = vadd.f32 %v1455_v59, %v1414_v8  ;;  %v1460_v2 = vadd.f32 %v1456_v43, %v1415_v32 }
 0x2b5   : > { %v2249_v34 = vsel %vm6051_vm8, %v2233_v31, 0.0  ;;  %v1593_v30 = vsel %vm8361_vm9, %v8360_v61, %v8359_v19  ;;  %vm8362_vm6 = vmmov %vm8361_vm9  ;;  %vm8363_vm5 = vcmp.lt.s32.totalorder %v4369_v33, 127  ;;  %v6109_v31 = vmul.f32 %v2256_v7, %v2248_v48  ;;  %v8559_v43 = vld [vmem:[#allocation26_spill] sm:$0xff] }
 0x2b6   : > { %v1595_v58 = vsel %vm8362_vm6, %v8359_v19, %v8360_v61  ;;  %v1548_v26 = vsel %vm8363_vm5, %v5050_v12, %v5115_v56  ;;  %vm8364_vm10 = vmmov %vm8363_vm5  ;;  %v6111_v19 = vmul.f32 %v2256_v7, %v2249_v34  ;;  %v8367_v59 = vrot.slane %v5592_v28, %v4348_v45  ;;  %2182 = vrot.lane.b32.xlu1 %v5864_v21, %s8365_s30 }
 0x2b7   : > { %v1550_v4 = vsel %vm8364_vm10, %v5115_v56, %v5050_v12  ;;  %v1695_v8 = vrot.slane %v5921_v29, %v4330_v49  ;;  %v1699_v12 = vrot.slane %v5921_v29, %v4348_v45  ;;  %v8370_v56 = vmov 39   ;;  %vm1735_vm5 = vmand %vm8285_vm1, %vm8261_vm11 }
 0x2b8   : > { %8366 = vst [vmem:[#allocation137_spill] sm:$0xff] %v6111_v19  ;;  %vm6116_vm9 = vcmp.eq.s32.totalorder %v8367_v59, 1  ;;  %3061 = vset.pattern.permute.xlu1 %v8370_v56  ;;  %v1532_v32 = vmul.f32 %v4982_v24, %v1520_v41  ;;  %v1533_v48 = vmul.f32 %v4982_v24, %v1521_v46  ;;  %v1646_v28 = vrot.slane %v1642_v0, %v4330_v49  ;;  %v6142_v46 = vpop.permute.xlu1 %1771  ;;  %v8531_v19 = vld [vmem:[#allocation76_spill] sm:$0xff] }
 0x2b9   : > { %v1650_v34 = vrot.slane %v1642_v0, %v4348_v45  ;;  %v1610_v14 = vsel %vm6017_vm4, %v1593_v30, 0.0  ;;  %v1611_v29 = vsel %vm6024_vm12, %v1595_v58, 0.0  ;;  %v1565_v41 = vsel %vm6039_vm15, %v1548_v26, 0.0  ;;  %v8375_v26 = vld [vmem:[#allocation130_spill] sm:$0xff]  ;;  %v8576_v56 = vld [vmem:[#allocation84_spill] sm:$0xff] }
 0x2ba   : > { %v1566_v24 = vsel %vm6116_vm9, %v1550_v4, 0.0  ;;  %v1504_v0 = vadd.f32 %v1500_v47, %v1459_v51  ;;  %v1505_v61 = vadd.f32 %v1501_v5, %v1460_v2  ;;  %v1577_v7 = vmul.f32 %v5160_v13, %v1565_v41  ;;  %v8381_v41 = vld [vmem:[#allocation136_spill] sm:$0xff]  ;;  %2210 = vperm.xlu1 %3061, %v5935_v22  }
 0x2bb   : > { %v1578_v59 = vmul.f32 %v5160_v13, %v1566_v24  ;;  %vm6148_vm10 = vcmp.eq.s32.totalorder %v1695_v8, 1  ;;  %v8371_v30 = vmov 0  ;;  %vm6152_vm6 = vcmp.eq.s32.totalorder %v1699_v12, 1  ;;  %v8575_v12 = vld [vmem:[#allocation146_spill] sm:$0xff] }
 0x2bc   : > { %v8372_v30 = vsel %vm6148_vm10, 4294967295, %v8371_v30  ;;  %v8373_v58 = vmov 0  ;;  %vm7676_vm11 = vcmp.lt.s32.totalorder %v4369_v33, 125  ;;  %v1736_v47 = vsel %vm1735_vm5, 1, %v7860_v9 }
 0x2bd   : > { %v8374_v58 = vsel %vm6152_vm6, 4294967295, %v8373_v58  ;;  %v1536_v5 = vadd.f32 %v1532_v32, %v1504_v0  ;;  %v1537_v51 = vadd.f32 %v1533_v48, %v1505_v61  ;;  %v1638_v13 = vsel %vm7676_vm11, %v5506_v20, %v5594_v44  ;;  %v6176_v32 = vpop.permute.xlu1 %1797  ;;  %v8380_v48 = vld [vmem:[#allocation138_spill] sm:$0xff] }
 0x2be   : > { %v1640_v2 = vsel %vm7676_vm11, %v5594_v44, %v5506_v20  ;;  %v1622_v4 = vmul.f32 %v8375_v26, %v1610_v14  ;;  %v1623_v8 = vmul.f32 %v8375_v26, %v1611_v29  ;;  %vm6168_vm8 = vcmp.eq.s32.totalorder %v1646_v28, 1  ;;  %v8386_v26 = vld [vmem:[#allocation47_spill] sm:$0xff]  ;;  %2221 = vrot.lane.b32.xlu1 %v5531_v52, %s3346_s15 }
 0x2bf   : > { %vm6172_vm5 = vcmp.eq.s32.totalorder %v1650_v34, 1  ;;  %vm8382_vm14 = vcmp.lt.s32.totalorder %v4369_v33, 115  ;;  %v1581_v44 = vadd.f32 %v1577_v7, %v1536_v5  ;;  %v1582_v28 = vadd.f32 %v1578_v59, %v1537_v51 }
 0x2c0   : > { %v1687_v24 = vsel %vm8382_vm14, %v8381_v41, %v8380_v48  ;;  %vm8383_vm11 = vmmov %vm8382_vm14  ;;  %v1655_v34 = vsel %vm6168_vm8, %v1638_v13, 0.0  ;;  %v1656_v14 = vsel %vm6172_vm5, %v1640_v2, 0.0  ;;  %v1740_v29 = vrot.slane %v1736_v47, %v4330_v49 }
 0x2c1   : > { %v1689_v20 = vsel %vm8383_vm11, %v8380_v48, %v8381_v41  ;;  %v1744_v0 = vrot.slane %v1736_v47, %v4348_v45  ;;  %vm8384_vm14 = vnez %v8011_v18  ;;  %vm8387_vm11 = vnez %v8056_v23 }
 0x2c2   : > { %v8385_v61 = vsel %vm8384_vm14, %v5365_v57, 0.0  ;;  %v804_v59 = vsel %vm8387_vm11, %v5499_v38, 0.0  ;;  %v1667_v5 = vmul.f32 %v5673_v35, %v1655_v34  ;;  %v1668_v51 = vmul.f32 %v5673_v35, %v1656_v14  ;;  %v6212_v57 = vpop.permute.xlu1 %1812  ;;  %2225 = vrot.lane.b32.xlu1 %v5608_v55, %s3346_s15 }
 0x2c3   : > { %v771_v7 = vmul.f32 %v8386_v26, %v8385_v61  ;;  %vm8388_vm3 = vnez %v8062_v40  ;;  %v1704_v47 = vsel %vm6148_vm10, %v1687_v24, 0.0  ;;  %v1705_v18 = vsel %vm6152_vm6, %v1689_v20, 0.0  ;;  %v8398_v61 = vld [vmem:[#allocation35_spill] sm:$0xff] }
 0x2c4   : > { %v805_v13 = vsel %vm8388_vm3, %v5482_v16, 0.0  ;;  %vm7678_vm14 = vcmp.lt.s32.totalorder %v4369_v33, 114  ;;  %v1626_v23 = vadd.f32 %v1622_v4, %v1581_v44  ;;  %v1627_v38 = vadd.f32 %v1623_v8, %v1582_v28  ;;  %vm1825_vm3 = vmand %vm8285_vm1, %vm8193_vm2  ;;  %v8390_v16 = vld [vmem:[#allocation157_spill] sm:$0xff]  ;;  %v8392_v8 = vld [vmem:[#allocation42_spill] sm:$0xff] }
 0x2c5   : > { %v1732_v35 = vsel %vm7678_vm14, %v5961_v63, %v6003_v50  ;;  %v1734_v40 = vsel %vm7678_vm14, %v6003_v50, %v5961_v63  ;;  %vm8389_vm11 = vnez %v8014_v25  ;;  %v816_v48 = vmul.f32 %v8392_v8, %v804_v59  ;;  %v8397_v50 = vld [vmem:[#allocation142_spill] sm:$0xff]  ;;  %v8399_v59 = vld [vmem:[#allocation57_spill] sm:$0xff] }
 0x2c6   : > { %v8391_v2 = vsel %vm8389_vm11, %v8390_v16, 0.0  ;;  %vm6233_vm6 = vcmp.eq.s32.totalorder %v1740_v29, 1  ;;  %v8393_v41 = vmov 0  ;;  %vm6237_vm14 = vcmp.eq.s32.totalorder %v1744_v0, 1  ;;  %v1815_v0 = vpop.permute.xlu1 %1814  ;;  %v8400_v16 = vld [vmem:[#allocation59_spill] sm:$0xff] }
 0x2c7   : > { %v772_v4 = vmul.f32 %v8386_v26, %v8391_v2  ;;  %v8394_v41 = vsel %vm6233_vm6, 4294967295, %v8393_v41  ;;  %v8395_v63 = vmov 0  ;;  %v1716_v24 = vmul.f32 %v8397_v50, %v1704_v47 }
 0x2c8   : > { %v8396_v63 = vsel %vm6237_vm14, 4294967295, %v8395_v63  ;;  %v1717_v20 = vmul.f32 %v8397_v50, %v1705_v18  ;;  %v1671_v44 = vadd.f32 %v1667_v5, %v1626_v23  ;;  %v1672_v25 = vadd.f32 %v1668_v51, %v1627_v38  ;;  %v8405_v38 = vld [vmem:[#allocation63_spill] sm:$0xff] }
 0x2c9   : > { %v817_v28 = vmul.f32 %v8392_v8, %v805_v13  ;;  %v1749_v34 = vsel %vm6233_vm6, %v1732_v35, 0.0  ;;  %v1750_v14 = vsel %vm6237_vm14, %v1734_v40, 0.0  ;;  %v1826_v29 = vsel %vm1825_vm3, 1, %v7860_v9  ;;  %v8402_v13 = vld [vmem:[#allocation32_spill] sm:$0xff] }
 0x2ca   : > { %v775_v26 = vadd.f32 %v771_v7, %v8398_v61  ;;  %vm8401_vm11 = vcmp.lt.s32.totalorder %v4369_v33, 33  ;;  %v1761_v5 = vmul.f32 %v6065_v17, %v1749_v34  ;;  %v1762_v51 = vmul.f32 %v6065_v17, %v1750_v14  ;;  %v8404_v7 = vld [vmem:[#allocation50_spill] sm:$0xff]  ;;  %v8409_v34 = vld [vmem:[#allocation25_spill] sm:$0xff] }
 0x2cb   : > { %v835_v47 = vsel %vm8401_vm11, %v8400_v16, %v8399_v59  ;;  %v776_v18 = vadd.f32 %v772_v4, %v8402_v13  ;;  %vm8403_vm3 = vmmov %vm8401_vm11  ;;  %vm8406_vm2 = vcmp.lt.s32.totalorder %v4369_v33, 32  ;;  %v8408_v40 = vmov 40  }
 0x2cc   : > { %v833_v23 = vsel %vm8403_vm3, %v8399_v59, %v8400_v16  ;;  %v878_v35 = vsel %vm8406_vm2, %v8405_v38, %v8404_v7  ;;  %vm8407_vm11 = vmmov %vm8406_vm2  ;;  %3062 = vset.pattern.permute.xlu1 %v8408_v40  ;;  %v1720_v2 = vadd.f32 %v1716_v24, %v1671_v44  ;;  %v1721_v8 = vadd.f32 %v1717_v20, %v1672_v25  ;;  %v1819_v16 = vpop.permute.xlu1 %1818  ;;  %v8411_v20 = vld [vmem:[#allocation23_spill] sm:$0xff]  ;;  %v8413_v25 = vld [vmem:[#allocation61_spill] sm:$0xff] }
 0x2cd   : > { %v880_v17 = vsel %vm8407_vm11, %v8404_v7, %v8405_v38  ;;  %v1830_v4 = vrot.slane %v1826_v29, %v4330_v49  ;;  %v1834_v50 = vrot.slane %v1826_v29, %v4348_v45  ;;  %vm8410_vm3 = vnez %v8409_v34  ;;  %v8427_v40 = vld [vmem:[#allocation60_spill] sm:$0xff]  ;;  %2251 = vperm.xlu1 %3062, %v5692_v42  }
 0x2ce   : > { %v849_v14 = vsel %vm8410_vm3, %v835_v47, 0.0  ;;  %v820_v61 = vadd.f32 %v816_v48, %v775_v26  ;;  %v821_v59 = vadd.f32 %v817_v28, %v776_v18  ;;  %vm7683_vm2 = vcmp.lt.s32.totalorder %v4369_v33, 112  ;;  %v8414_v28 = vld [vmem:[#allocation39_spill] sm:$0xff]  ;;  %v8416_v26 = vld [vmem:[#allocation37_spill] sm:$0xff] }
 0x2cf   : > { %v1765_v13 = vadd.f32 %v1761_v5, %v1720_v2  ;;  %v1766_v60 = vadd.f32 %v1762_v51, %v1721_v8  ;;  %v1822_v7 = vsel %vm7683_vm2, %v1815_v0, %v1819_v16  ;;  %v1824_v24 = vsel %vm7683_vm2, %v1819_v16, %v1815_v0  ;;  %v8418_v5 = vld [vmem:[#allocation73_spill] sm:$0xff]  ;;  %v8419_v51 = vld [vmem:[#allocation71_spill] sm:$0xff] }
 0x2d0   : > { %vm8412_vm11 = vnez %v8411_v20  ;;  %v861_v48 = vmul.f32 %v8413_v25, %v849_v14  ;;  %vm8415_vm3 = vnez %v8414_v28  ;;  %vm8417_vm14 = vnez %v8416_v26  ;;  %v1847_v34 = vpop.permute.xlu1 %1846  ;;  %v8429_v14 = vld [vmem:[#allocation158_spill] sm:$0xff] }
 0x2d1   : > { %v850_v44 = vsel %vm8412_vm11, %v833_v23, 0.0  ;;  %v894_v29 = vsel %vm8415_vm3, %v880_v17, 0.0  ;;  %v895_v47 = vsel %vm8417_vm14, %v878_v35, 0.0  ;;  %vm8420_vm6 = vcmp.lt.s32.totalorder %v4369_v33, 31  ;;  %v8426_v17 = vld [vmem:[#allocation77_spill] sm:$0xff]  ;;  %2266 = vrot.lane.b32.xlu1 %v5531_v52, %s3348_s19 }
 0x2d2   : > { %v923_v18 = vsel %vm8420_vm6, %v8419_v51, %v8418_v5  ;;  %vm8421_vm2 = vmmov %vm8420_vm6  ;;  %vm6298_vm10 = vcmp.eq.s32.totalorder %v1830_v4, 1  ;;  %vm6302_vm11 = vcmp.eq.s32.totalorder %v1834_v50, 1  ;;  %v862_v35 = vmul.f32 %v8413_v25, %v850_v44  ;;  %v8430_v50 = vld [vmem:[#allocation159_spill] sm:$0xff]  ;;  %v8431_v44 = vld [vmem:[#allocation52_spill] sm:$0xff] }
 0x2d3   : > { %v925_v0 = vsel %vm8421_vm2, %v8418_v5, %v8419_v51  ;;  %vm8428_vm14 = vcmp.lt.s32.totalorder %v4369_v33, 30  ;;  %v1839_v8 = vsel %vm6298_vm10, %v1822_v7, 0.0  ;;  %v1840_v4 = vsel %vm6302_vm11, %v1824_v24, 0.0  ;;  %v8432_v51 = vld [vmem:[#allocation33_spill] sm:$0xff]  ;;  %v8434_v7 = vld [vmem:[#allocation36_spill] sm:$0xff] }
 0x2d4   : > { %v970_v2 = vsel %vm8428_vm14, %v8427_v40, %v8426_v17  ;;  %v1810_v16 = vadd.f32 %v8429_v14, %v1765_v13  ;;  %v1811_v20 = vadd.f32 %v8430_v50, %v1766_v60  ;;  %v1851_v28 = vmul.f32 %v1847_v34, %v1839_v8  ;;  %vm8436_vm3 = vmmov %vm8428_vm14  ;;  %v8437_v60 = vld [vmem:[#allocation38_spill] sm:$0xff]  ;;  %v8439_v14 = vld [vmem:[#allocation75_spill] sm:$0xff] }
 0x2d5   : > { %v1852_v26 = vmul.f32 %v1847_v34, %v1840_v4  ;;  %v906_v25 = vmul.f32 %v8431_v44, %v894_v29  ;;  %v907_v5 = vmul.f32 %v8431_v44, %v895_v47  ;;  %vm8433_vm6 = vnez %v8432_v51  ;;  %v8440_v44 = vld [vmem:[#allocation85_spill] sm:$0xff]  ;;  %2268 = vrot.lane.b32.xlu1 %v5799_v53, %s3348_s19 }
 0x2d6   : > { %v939_v36 = vsel %vm8433_vm6, %v925_v0, 0.0  ;;  %vm8435_vm2 = vnez %v8434_v7  ;;  %v968_v13 = vsel %vm8436_vm3, %v8426_v17, %v8427_v40  ;;  %vm8438_vm14 = vnez %v8437_v60  ;;  %v6332_v0 = vpop.permute.xlu1 %1857  ;;  %v8443_v7 = vld [vmem:[#allocation91_spill] sm:$0xff]  ;;  %v8444_v17 = vld [vmem:[#allocation70_spill] sm:$0xff] }
 0x2d7   : > { %v940_v10 = vsel %vm8435_vm2, %v923_v18, 0.0  ;;  %v984_v24 = vsel %vm8438_vm14, %v970_v2, 0.0  ;;  %v1855_v8 = vadd.f32 %v1851_v28, %v1810_v16  ;;  %v1856_v4 = vadd.f32 %v1852_v26, %v1811_v20  ;;  %v8441_v18 = vld [vmem:[#allocation87_spill] sm:$0xff]  ;;  %v8450_v16 = vld [vmem:[#allocation62_spill] sm:$0xff] }
 0x2d8   : > { %v865_v34 = vadd.f32 %v861_v48, %v820_v61  ;;  %v866_v29 = vadd.f32 %v862_v35, %v821_v59  ;;  %v951_v47 = vmul.f32 %v8439_v14, %v939_v36  ;;  %v952_v50 = vmul.f32 %v8439_v14, %v940_v10  ;;  %v8446_v61 = vld [vmem:[#allocation15_spill] sm:$0xff]  ;;  %v8447_v36 = vld [vmem:[#allocation16_spill] sm:$0xff]  ;;  %v8448_v35 = vld [vmem:[#allocation46_spill] sm:$0xff] }
 0x2d9   : > { %vm8442_vm6 = vcmp.lt.s32.totalorder %v4369_v33, 29  ;;  %vm8445_vm2 = vcmp.lt.s32.totalorder %v4369_v33, 19  ;;  %v6345_v59 = vadd.f32 %v8446_v61, %v1855_v8  ;;  %v6348_v10 = vadd.f32 %v8447_v36, %v1856_v4  ;;  %v8453_v8 = vld [vmem:[#allocation31_spill] sm:$0xff]  ;;  %2272 = vrot.lane.b32.xlu1 %v5864_v21, %s3348_s19  ;;  %s8704_s19 = sshll.u32 %s3531_s21, 5 }
 0x2da   : > { %v1015_v51 = vsel %vm8442_vm6, %v8441_v18, %v8440_v44  ;;  %v1064_v40 = vsel %vm8445_vm2, %v8444_v17, %v8443_v7  ;;  %v910_v48 = vadd.f32 %v906_v25, %v865_v34  ;;  %vm8449_vm3 = vnez %v8448_v35  ;;  %vm8452_vm14 = vmmov %vm8442_vm6  ;;  %v6366_v4 = vpop.permute.xlu1 %1861 }
 0x2db   : > { %v985_v2 = vsel %vm8449_vm3, %v968_v13, 0.0  ;;  %v996_v20 = vmul.f32 %v8450_v16, %v984_v24  ;;  %v8451_v28 = vmov 41   ;;  %v911_v26 = vadd.f32 %v907_v5, %v866_v29  ;;  %v8455_v13 = vld [vmem:[#allocation67_spill] sm:$0xff]  ;;  %v8457_v29 = vld [vmem:[#allocation89_spill] sm:$0xff] }
 0x2dc   : > { %3065 = vset.pattern.permute.xlu1 %v8451_v28  ;;  %v1013_v60 = vsel %vm8452_vm14, %v8440_v44, %v8441_v18  ;;  %v955_v14 = vadd.f32 %v951_v47, %v910_v48  ;;  %vm8454_vm6 = vnez %v8453_v8  ;;  %v1062_v25 = vsel %vm8445_vm2, %v8443_v7, %v8444_v17  ;;  %v8458_v47 = vld [vmem:[#allocation160_spill] sm:$0xff]  ;;  %v8461_v48 = vld [vmem:[#allocation101_spill] sm:$0xff] }
 0x2dd   : > { %v1029_v61 = vsel %vm8454_vm6, %v1015_v51, 0.0  ;;  %vm8456_vm3 = vnez %v8455_v13  ;;  %v956_v5 = vadd.f32 %v952_v50, %v911_v26  ;;  %v997_v34 = vmul.f32 %v8450_v16, %v985_v2  ;;  %v8460_v51 = vld [vmem:[#allocation99_spill] sm:$0xff]  ;;  %v8463_v17 = vld [vmem:[#allocation105_spill] sm:$0xff]  ;;  %v8466_v2 = vld [vmem:[#allocation48_spill] sm:$0xff]  ;;  %2300 = vperm.xlu1 %3065, %v5935_v22  }
 0x2de   : > { %v1078_v24 = vsel %vm8456_vm3, %v1064_v40, 0.0  ;;  %v1041_v36 = vmul.f32 %v8457_v29, %v1029_v61  ;;  %vm8459_vm14 = vnez %v8458_v47  ;;  %v1000_v18 = vadd.f32 %v996_v20, %v955_v14  ;;  %v8464_v40 = vld [vmem:[#allocation80_spill] sm:$0xff]  ;;  %v6394_v14 = vpop.permute.xlu1 %1887  ;;  %v8471_v13 = vld [vmem:[#allocation45_spill] sm:$0xff] }
 0x2df   : > { %v1030_v44 = vsel %vm8459_vm14, %v1013_v60, 0.0  ;;  %vm8462_vm6 = vcmp.lt.s32.totalorder %v4369_v33, 18  ;;  %vm8465_vm2 = vcmp.lt.s32.totalorder %v4369_v33, 17  ;;  %vm8467_vm3 = vnez %v8466_v2  ;;  %v8468_v28 = vld [vmem:[#allocation72_spill] sm:$0xff]  ;;  %v8478_v2 = vld [vmem:[#allocation115_spill] sm:$0xff] }
 0x2e0   : > { %v1109_v7 = vsel %vm8462_vm6, %v8461_v48, %v8460_v51  ;;  %v1154_v50 = vsel %vm8465_vm2, %v8464_v40, %v8463_v17  ;;  %v1042_v35 = vmul.f32 %v8457_v29, %v1030_v44  ;;  %v1079_v16 = vsel %vm8467_vm3, %v1062_v25, 0.0  ;;  %vm8469_vm14 = vmmov %vm8462_vm6  ;;  %v8474_v44 = vld [vmem:[#allocation43_spill] sm:$0xff] }
 0x2e1   : > { %v1090_v26 = vmul.f32 %v8468_v28, %v1078_v24  ;;  %v1107_v20 = vsel %vm8469_vm14, %v8460_v51, %v8461_v48  ;;  %vm8470_vm6 = vmmov %vm8465_vm2  ;;  %v1001_v8 = vadd.f32 %v997_v34, %v956_v5  ;;  %v1045_v61 = vadd.f32 %v1041_v36, %v1000_v18  ;;  %v8476_v48 = vld [vmem:[#allocation103_spill] sm:$0xff]  ;;  %2315 = vrot.lane.b32.xlu1 %v5531_v52, %s3352_s8 }
 0x2e2   : > { %v1152_v60 = vsel %vm8470_vm6, %v8463_v17, %v8464_v40  ;;  %vm8472_vm2 = vnez %v8471_v13  ;;  %v1168_v24 = vsel %vm5662_vm7, %v1154_v50, 0.0  ;;  %v1091_v47 = vmul.f32 %v8468_v28, %v1079_v16  ;;  %v8477_v40 = vld [vmem:[#allocation113_spill] sm:$0xff]  ;;  %v8482_v13 = vld [vmem:[#allocation82_spill] sm:$0xff] }
 0x2e3   : > { %v1123_v29 = vsel %vm8472_vm2, %v1109_v7, 0.0  ;;  %vm8475_vm3 = vnez %v8474_v44  ;;  %vm8479_vm14 = vcmp.lt.s32.totalorder %v4369_v33, 16  ;;  %v1046_v34 = vadd.f32 %v1042_v35, %v1001_v8  ;;  %v8480_v7 = vld [vmem:[#allocation69_spill] sm:$0xff]  ;;  %v8484_v28 = vld [vmem:[#allocation90_spill] sm:$0xff] }
 0x2e4   : > { %v1124_v51 = vsel %vm8475_vm3, %v1107_v20, 0.0  ;;  %v1135_v17 = vmul.f32 %v8476_v48, %v1123_v29  ;;  %v1199_v5 = vsel %vm8479_vm14, %v8478_v2, %v8477_v40  ;;  %v1094_v36 = vadd.f32 %v1090_v26, %v1045_v61  ;;  %vm8483_vm6 = vmmov %vm8479_vm14  ;;  %v8485_v20 = vld [vmem:[#allocation119_spill] sm:$0xff]  ;;  %v6426_v26 = vpop.permute.xlu1 %1902 }
 0x2e5   : > { %v1136_v18 = vmul.f32 %v8476_v48, %v1124_v51  ;;  %vm8481_vm7 = vnez %v8480_v7  ;;  %v1180_v25 = vmul.f32 %v8482_v13, %v1168_v24  ;;  %v1197_v16 = vsel %vm8483_vm6, %v8477_v40, %v8478_v2  ;;  %v8491_v51 = vld [vmem:[#allocation117_spill] sm:$0xff]  ;;  %v8492_v40 = vld [vmem:[#allocation40_spill] sm:$0xff]  ;;  %v8494_v7 = vld [vmem:[#allocation66_spill] sm:$0xff] }
 0x2e6   : > { %v1169_v50 = vsel %vm8481_vm7, %v1152_v60, 0.0  ;;  %vm8486_vm2 = vcmp.lt.s32.totalorder %v4369_v33, 15  ;;  %v8488_v60 = vld [vmem:[#allocation54_spill] sm:$0xff]  ;;  %vm8490_vm7 = vnez %v7971_v3  ;;  %v1095_v61 = vadd.f32 %v1091_v47, %v1046_v34  ;;  %v8498_v34 = vld [vmem:[#allocation129_spill] sm:$0xff] }
 0x2e7   : > { %v1242_v29 = vsel %vm8486_vm2, %v8485_v20, %v8484_v28  ;;  %vm8487_vm3 = vmmov %vm8486_vm2  ;;  %vm8489_vm14 = vnez %v8488_v60  ;;  %v1139_v24 = vadd.f32 %v1135_v17, %v1094_v36  ;;  %v1181_v44 = vmul.f32 %v8482_v13, %v1169_v50  ;;  %v8499_v36 = vld [vmem:[#allocation127_spill] sm:$0xff] }
 0x2e8   : > { %v1244_v35 = vsel %vm8487_vm3, %v8484_v28, %v8485_v20  ;;  %v1213_v8 = vsel %vm8489_vm14, %v1199_v5, 0.0  ;;  %vm1915_vm6 = vmand %vm8285_vm1, %vm8490_vm7  ;;  %vm8493_vm2 = vnez %v8492_v40  ;;  %vm8495_vm3 = vnez %v8494_v7  ;;  %v8496_v5 = vld [vmem:[#allocation83_spill] sm:$0xff]  ;;  %v1905_v17 = vpop.permute.xlu1 %1904  ;;  %v8508_v7 = vld [vmem:[#allocation58_spill] sm:$0xff] }
 0x2e9   : > { %v1225_v48 = vmul.f32 %v8491_v51, %v1213_v8  ;;  %v1214_v2 = vsel %vm8493_vm2, %v1197_v16, 0.0  ;;  %v1258_v28 = vsel %vm8495_vm3, %v1244_v35, 0.0  ;;  %vm8497_vm14 = vnez %v8496_v5  ;;  %v8502_v16 = vld [vmem:[#allocation92_spill] sm:$0xff] }
 0x2ea   : > { %v1259_v20 = vsel %vm8497_vm14, %v1242_v29, 0.0  ;;  %v1140_v60 = vadd.f32 %v1136_v18, %v1095_v61  ;;  %v1184_v37 = vadd.f32 %v1180_v25, %v1139_v24  ;;  %v1226_v3 = vmul.f32 %v8491_v51, %v1214_v2  ;;  %v8504_v61 = vld [vmem:[#allocation100_spill] sm:$0xff]  ;;  %v8505_v24 = vld [vmem:[#allocation133_spill] sm:$0xff] }
 0x2eb   : > { %v1916_v47 = vsel %vm1915_vm6, 1, %v7860_v9  ;;  %vm8500_vm1 = vcmp.lt.s32.totalorder %v4369_v33, 14  ;;  %v1270_v29 = vmul.f32 %v8502_v16, %v1258_v28  ;;  %v1271_v35 = vmul.f32 %v8502_v16, %v1259_v20  ;;  %v8510_v5 = vld [vmem:[#allocation64_spill] sm:$0xff] }
 0x2ec   : > { %v1287_v50 = vsel %vm8500_vm1, %v8499_v36, %v8498_v34  ;;  %vm8501_vm2 = vmmov %vm8500_vm1  ;;  %v1185_v18 = vadd.f32 %v1181_v44, %v1140_v60  ;;  %v1229_v25 = vadd.f32 %v1225_v48, %v1184_v37  ;;  %v8503_v8 = vmov 42   ;;  %v1909_v60 = vpop.permute.xlu1 %1908  ;;  %v8512_v37 = vld [vmem:[#allocation131_spill] sm:$0xff] }
 0x2ed   : > { %v1289_v13 = vsel %vm8501_vm2, %v8498_v34, %v8499_v36  ;;  %3067 = vset.pattern.permute.xlu1 %v8503_v8  ;;  %vm8506_vm6 = vcmp.lt.s32.totalorder %v4369_v33, 13  ;;  %v1920_v2 = vrot.slane %v1916_v47, %v4330_v49  ;;  %v1924_v44 = vrot.slane %v1916_v47, %v4348_v45  ;;  %v8515_v8 = vld [vmem:[#allocation86_spill] sm:$0xff] }
 0x2ee   : > { %v1332_v51 = vsel %vm8506_vm6, %v8505_v24, %v8504_v61  ;;  %vm8507_vm3 = vmmov %vm8506_vm6  ;;  %v1230_v48 = vadd.f32 %v1226_v3, %v1185_v18  ;;  %vm8509_vm14 = vnez %v8508_v7  ;;  %vm8511_vm1 = vnez %v8510_v5  ;;  %2349 = vperm.xlu1 %3067, %v5935_v22   ;;  %v8513_v18 = vld [vmem:[#allocation78_spill] sm:$0xff]  ;;  %v8518_v7 = vld [vmem:[#allocation145_spill] sm:$0xff] }
 0x2ef   : > { %v1334_v40 = vsel %vm8507_vm3, %v8504_v61, %v8505_v24  ;;  %v1303_v28 = vsel %vm8509_vm14, %v1289_v13, 0.0  ;;  %v1304_v20 = vsel %vm8511_vm1, %v1287_v50, 0.0  ;;  %vm7688_vm2 = vcmp.lt.s32.totalorder %v4369_v33, 110  ;;  %v8517_v24 = vld [vmem:[#allocation148_spill] sm:$0xff] }
 0x2f0   : > { %v1315_v34 = vmul.f32 %v8512_v37, %v1303_v28  ;;  %v1316_v36 = vmul.f32 %v8512_v37, %v1304_v20  ;;  %v1912_v16 = vsel %vm7688_vm2, %v1905_v17, %v1909_v60  ;;  %v1914_v47 = vsel %vm7688_vm2, %v1909_v60, %v1905_v17 }
 0x2f1   : > { %v1274_v3 = vadd.f32 %v1270_v29, %v1229_v25  ;;  %v1275_v13 = vadd.f32 %v1271_v35, %v1230_v48  ;;  %vm8514_vm6 = vnez %v8513_v18  ;;  %vm8516_vm3 = vnez %v8515_v8  ;;  %v8525_v29 = vld [vmem:[#allocation110_spill] sm:$0xff]  ;;  %v8526_v35 = vld [vmem:[#allocation153_spill] sm:$0xff] }
 0x2f2   : > { %v1348_v50 = vsel %vm8514_vm6, %v1334_v40, 0.0  ;;  %v1349_v61 = vsel %vm8516_vm3, %v1332_v51, 0.0  ;;  %vm8519_vm14 = vcmp.lt.s32.totalorder %v4369_v33, 3  ;;  %vm6492_vm2 = vcmp.eq.s32.totalorder %v1920_v2, 1 }
 0x2f3   : > { %v1380_v28 = vsel %vm8519_vm14, %v8518_v7, %v8517_v24  ;;  %vm8520_vm1 = vmmov %vm8519_vm14  ;;  %vm6496_vm7 = vcmp.eq.s32.totalorder %v1924_v44, 1  ;;  %vm8527_vm6 = vcmp.lt.s32.totalorder %v4369_v33, 2  ;;  %v1929_v2 = vsel %vm6492_vm2, %v1912_v16, 0.0  ;;  %v1937_v44 = vpop.permute.xlu1 %1936 }
 0x2f4   : > { %v1382_v17 = vsel %vm8520_vm1, %v8517_v24, %v8518_v7  ;;  %v1425_v51 = vsel %vm8527_vm6, %v8526_v35, %v8525_v29  ;;  %vm8528_vm3 = vmmov %vm8527_vm6  ;;  %v1930_v48 = vsel %vm6496_vm7, %v1914_v47, 0.0  ;;  %v1319_v20 = vadd.f32 %v1315_v34, %v1274_v3  ;;  %v8530_v24 = vld [vmem:[#allocation102_spill] sm:$0xff] }
 0x2f5   : > { %v1427_v40 = vsel %vm8528_vm3, %v8525_v29, %v8526_v35  ;;  %v1320_v60 = vadd.f32 %v1316_v36, %v1275_v13  ;;  %v1941_v37 = vmul.f32 %v1937_v44, %v1929_v2  ;;  %v1942_v18 = vmul.f32 %v1937_v44, %v1930_v48  ;;  %v8533_v35 = vld [vmem:[#allocation74_spill] sm:$0xff]  ;;  %v8537_v13 = vld [vmem:[#allocation152_spill] sm:$0xff] }
 0x2f6   : > { %v8529_v8 = vmov 43   ;;  %v1360_v7 = vmul.f32 %v8530_v24, %v1348_v50  ;;  %v1361_v54 = vmul.f32 %v8530_v24, %v1349_v61  ;;  %vm8532_vm14 = vnez %v8531_v19  ;;  %v8538_v61 = vld [vmem:[#allocation166_spill] sm:$0xff]  ;;  %v8547_v44 = vld [vmem:[#allocation24_spill] sm:$0xff] }
 0x2f7   : > { %3068 = vset.pattern.permute.xlu1 %v8529_v8  ;;  %v1396_v29 = vsel %vm8532_vm14, %v1382_v17, 0.0  ;;  %vm8534_vm1 = vnez %v8533_v35  ;;  %vm8535_vm6 = vnez %v8321_v11  ;;  %vm8536_vm3 = vnez %v8325_v15  ;;  %v8539_v17 = vld [vmem:[#allocation165_spill] sm:$0xff]  ;;  %v6536_v15 = vpop.permute.xlu1 %1947  ;;  %v8546_v2 = vld [vmem:[#allocation22_spill] sm:$0xff]  ;;  %v8548_v24 = vld [vmem:[#allocation112_spill] sm:$0xff] }
 0x2f8   : > { %v1397_v16 = vsel %vm8534_vm1, %v1380_v28, 0.0  ;;  %2390 = vperm.xlu1 %3068, %v5692_v42   ;;  %v1441_v34 = vsel %vm8535_vm6, %v1427_v40, 0.0  ;;  %v1442_v36 = vsel %vm8536_vm3, %v1425_v51, 0.0  ;;  %v1945_v47 = vadd.f32 %v1941_v37, %v6345_v59  ;;  %v8542_v51 = vld [vmem:[#allocation122_spill] sm:$0xff]  ;;  %v8543_v59 = vld [vmem:[#allocation120_spill] sm:$0xff] }
 0x2f9   : > { %v1946_v3 = vadd.f32 %v1942_v18, %v6348_v10  ;;  %v1408_v50 = vmul.f32 %v8537_v13, %v1396_v29  ;;  %v1409_v19 = vmul.f32 %v8537_v13, %v1397_v16  ;;  %vm8540_vm14 = vcmp.lt.s32.totalorder %v4369_v33, 1  ;;  %v8549_v16 = vld [vmem:[#allocation123_spill] sm:$0xff] }
 0x2fa   : > { %v1470_v28 = vsel %vm8540_vm14, %v8539_v17, %v8538_v61  ;;  %vm8541_vm1 = vmmov %vm8540_vm14  ;;  %vm8544_vm6 = vcmp.lt.s32.totalorder %v4369_v33, 127  ;;  %v6547_v48 = vadd.f32 %v8546_v2, %v1945_v47  ;;  %v1364_v18 = vadd.f32 %v1360_v7, %v1319_v20 }
 0x2fb   : > { %v1472_v11 = vsel %vm8541_vm1, %v8538_v61, %v8539_v17  ;;  %v1547_v10 = vsel %vm8544_vm6, %v8543_v59, %v8542_v51  ;;  %vm8545_vm3 = vmmov %vm8544_vm6  ;;  %v6550_v37 = vadd.f32 %v8547_v44, %v1946_v3  ;;  %v1365_v8 = vadd.f32 %v1361_v54, %v1320_v60  ;;  %v8551_v61 = vld [vmem:[#allocation121_spill] sm:$0xff]  ;;  %v8556_v44 = vld [vmem:[#allocation20_spill] sm:$0xff] }
 0x2fc   : > { %v1549_v40 = vsel %vm8545_vm3, %v8542_v51, %v8543_v59  ;;  %v1453_v29 = vmul.f32 %v8548_v24, %v1441_v34  ;;  %v1454_v35 = vmul.f32 %v8548_v24, %v1442_v36  ;;  %2317 = vrot.lane.b32.xlu1 %v5799_v53, %s3352_s8  ;;  %vm8550_vm14 = vnez %v8549_v16  ;;  %v8555_v36 = vld [vmem:[#allocation169_spill] sm:$0xff] }
 0x2fd   : > { %v1486_v13 = vsel %vm8550_vm14, %v1472_v11, 0.0  ;;  %vm8552_vm1 = vnez %v8551_v61  ;;  %v1519_v47 = vsel %vm6067_vm0, %v5608_v55, 0.0  ;;  %v1518_v54 = vsel %vm6028_vm13, %v5531_v52, 0.0  ;;  %v6569_v11 = vpop.permute.xlu1 %1951 }
 0x2fe   : > { %v1487_v17 = vsel %vm8552_vm1, %v1470_v28, 0.0  ;;  %v8554_v60 = vmov 44   ;;  %v1412_v7 = vadd.f32 %v1408_v50, %v1364_v18  ;;  %v1413_v34 = vadd.f32 %v1409_v19, %v1365_v8  ;;  %v8557_v8 = vld [vmem:[#allocation124_spill] sm:$0xff] }
 0x2ff   : > { %3070 = vset.pattern.permute.xlu1 %v8554_v60  ;;  %v1498_v3 = vmul.f32 %v8555_v36, %v1486_v13  ;;  %v1499_v51 = vmul.f32 %v8555_v36, %v1487_v17  ;;  %v1563_v28 = vsel %vm6039_vm15, %v1547_v10, 0.0  ;;  %v1564_v62 = vsel %vm6116_vm9, %v1549_v40, 0.0  ;;  %v8558_v10 = vld [vmem:[#allocation28_spill] sm:$0xff] }
 0x300   : > { %v1457_v59 = vadd.f32 %v1453_v29, %v1412_v7  ;;  %v1458_v2 = vadd.f32 %v1454_v35, %v1413_v34  ;;  %v1530_v52 = vmul.f32 %v8556_v44, %v1518_v54  ;;  %v1531_v24 = vmul.f32 %v8556_v44, %v1519_v47  ;;  %2319 = vrot.lane.b32.xlu1 %v5608_v55, %s3352_s8  ;;  %v8562_v35 = vld [vmem:[#allocation139_spill] sm:$0xff]  ;;  %v8564_v55 = vld [vmem:[#allocation30_spill] sm:$0xff]  ;;  %v8566_v17 = vld [vmem:[#allocation132_spill] sm:$0xff]  ;;  %s299_s8 = scalar_lea.vmem [#allocation10], %s8704_s19 }
 0x301   : > { %v6579_v18 = vpop.permute.xlu1 %1977  ;;  %v1575_v16 = vmul.f32 %v8557_v8, %v1563_v28  ;;  %v1576_v6 = vmul.f32 %v8557_v8, %v1564_v62  ;;  %vm8560_vm15 = vcmp.lt.s32.totalorder %v4369_v33, 126  ;;  %vm8563_vm13 = vnez %v8562_v35  ;;  %v8567_v47 = vld [vmem:[#allocation44_spill] sm:$0xff]  ;;  %v8572_v44 = vld [vmem:[#allocation81_spill] sm:$0xff] }
 0x302   : > { %v1502_v50 = vadd.f32 %v1498_v3, %v1457_v59  ;;  %v1503_v19 = vadd.f32 %v1499_v51, %v1458_v2  ;;  %v1592_v40 = vsel %vm8560_vm15, %v8559_v43, %v8558_v10  ;;  %vm8561_vm0 = vmmov %vm8560_vm15  ;;  %vm8565_vm9 = vnez %v8564_v55  ;;  %v8570_v3 = vld [vmem:[#allocation41_spill] sm:$0xff]  ;;  %v8571_v2 = vld [vmem:[#allocation68_spill] sm:$0xff] }
 0x303   : > { %v1594_v29 = vsel %vm8561_vm0, %v8558_v10, %v8559_v43  ;;  %vm2009_vm6 = vmand %vm8565_vm9, %vm8563_vm13  ;;  %vm8568_vm3 = vcmp.lt.s32.totalorder %v4369_v33, 125  ;;  %v1608_v60 = vsel %vm6017_vm4, %v1592_v40, 0.0  ;;  %vm8573_vm4 = vcmp.lt.s32.totalorder %v4369_v33, 115  ;;  %v8580_v10 = vld [vmem:[#allocation134_spill] sm:$0xff] }
 0x304   : > { %v1534_v13 = vadd.f32 %v1530_v52, %v1502_v50  ;;  %v1535_v61 = vadd.f32 %v1531_v24, %v1503_v19  ;;  %v1637_v20 = vsel %vm8568_vm3, %v8567_v47, %v8566_v17  ;;  %vm8569_vm14 = vmmov %vm8568_vm3  ;;  %2435 = vperm.xlu1 %3070, %v5692_v42   ;;  %v1609_v7 = vsel %vm6024_vm12, %v1594_v29, 0.0  ;;  %v6626_v24 = vld [vmem:[%s3537_s10] sm:$0xff] }
 0x305   : > { %v1639_v54 = vsel %vm8569_vm14, %v8566_v17, %v8567_v47  ;;  %v6608_v34 = vpop.permute.xlu1 %1996  ;;  %v2010_v36 = vsel %vm2009_vm6, 1, %v7860_v9  ;;  %v1620_v51 = vmul.f32 %v8570_v3, %v1608_v60  ;;  %v1621_v28 = vmul.f32 %v8570_v3, %v1609_v7  ;;  %vm8574_vm12 = vmmov %vm8573_vm4  ;;  %v8625_v3 = vld [vmem:[#allocation51_spill] sm:$0xff] }
 0x306   : > { %v1653_v62 = vsel %vm6168_vm8, %v1637_v20, 0.0  ;;  %v1654_v42 = vsel %vm6172_vm5, %v1639_v54, 0.0  ;;  %v1579_v59 = vadd.f32 %v1575_v16, %v1534_v13  ;;  %v1580_v1 = vadd.f32 %v1576_v6, %v1535_v61  ;;  %v8583_v20 = vld [vmem:[#allocation97_spill] sm:$0xff] }
 0x307   : > { %v1686_v27 = vsel %vm8573_vm4, %v8572_v44, %v8571_v2  ;;  %v1688_v52 = vsel %vm8574_vm12, %v8571_v2, %v8572_v44  ;;  %vm8577_vm8 = vcmp.lt.s32.totalorder %v4369_v33, 114  ;;  %v2014_v8 = vrot.slane %v2010_v36, %v4330_v49 }
 0x308   : > { %2360 = vrot.lane.b32.xlu1 %v6626_v24, %s3354_s28  ;;  %v1731_v50 = vsel %vm8577_vm8, %v8576_v56, %v8575_v12  ;;  %vm8578_vm5 = vmmov %vm8577_vm8  ;;  %v2018_v16 = vrot.slane %v2010_v36, %v4348_v45  ;;  %v8579_v6 = vmov 45   ;;  %v1665_v43 = vmul.f32 %v8580_v10, %v1653_v62  ;;  %v8595_v62 = vld [vmem:[#allocation149_spill] sm:$0xff] }
 0x309   : > { %v1733_v19 = vsel %vm8578_vm5, %v8575_v12, %v8576_v56  ;;  %3073 = vset.pattern.permute.xlu1 %v8579_v6  ;;  %v1666_v40 = vmul.f32 %v8580_v10, %v1654_v42  ;;  %vm2004_vm1 = vcmp.lt.s32.totalorder %v4369_v33, 99  ;;  %v1999_v29 = vpop.permute.xlu1 %1998  ;;  %v1624_v13 = vadd.f32 %v1620_v51, %v1579_v59  ;;  %v8592_v51 = vld [vmem:[#allocation162_spill] sm:$0xff]  ;;  %v8598_v56 = vld [vmem:[#allocation155_spill] sm:$0xff] }
 0x30a   : > { %v1625_v61 = vadd.f32 %v1621_v28, %v1580_v1  ;;  %vm8581_vm15 = vnez %v8372_v30  ;;  %vm8582_vm0 = vnez %v8374_v58  ;;  %vm8584_vm6 = vnez %v8394_v41  ;;  %v8627_v41 = vld [vmem:[#allocation53_spill] sm:$0xff] }
 0x30b   : > { %v1702_v17 = vsel %vm8581_vm15, %v1686_v27, 0.0  ;;  %v1703_v47 = vsel %vm8582_vm0, %v1688_v52, 0.0  ;;  %v1747_v7 = vsel %vm8584_vm6, %v1731_v50, 0.0  ;;  %vm8585_vm3 = vnez %v8396_v63  ;;  %v8596_v52 = vld [vmem:[#allocation154_spill] sm:$0xff] }
 0x30c   : > { %v1714_v54 = vmul.f32 %v8583_v20, %v1702_v17  ;;  %v1715_v60 = vmul.f32 %v8583_v20, %v1703_v47  ;;  %v1748_v36 = vsel %vm8585_vm3, %v1733_v19, 0.0  ;;  %2362 = vrot.lane.b32.xlu1 %v5799_v53, %s3354_s28  ;;  %vm8586_vm14 = vcmp.lt.s32.totalorder %v4369_v33, 113  ;;  %v8603_v47 = vld [vmem:[#allocation19_spill] sm:$0xff] }
 0x30d   : > { %v1776_v30 = vsel %vm8586_vm14, %v6097_v39, %v6142_v46  ;;  %vm8587_vm4 = vmmov %vm8586_vm14  ;;  %vm6664_vm12 = vcmp.eq.s32.totalorder %v2014_v8, 1  ;;  %vm6668_vm8 = vcmp.eq.s32.totalorder %v2018_v16, 1  ;;  %v1669_v63 = vadd.f32 %v1665_v43, %v1624_v13  ;;  %v8602_v13 = vld [vmem:[#allocation164_spill] sm:$0xff]  ;;  %v8606_v20 = vld [vmem:[#allocation167_spill] sm:$0xff] }
 0x30e   : > { %v1778_v58 = vsel %vm8587_vm4, %v6142_v46, %v6097_v39  ;;  %v1670_v53 = vadd.f32 %v1666_v40, %v1625_v61  ;;  %vm8593_vm5 = vcmp.lt.s32.totalorder %v4369_v33, 112  ;;  %v2003_v46 = vpop.permute.xlu1 %2002  ;;  %v1759_v42 = vmul.f32 %v8595_v62, %v1747_v7 }
 0x30f   : > { %v1821_v28 = vsel %vm8593_vm5, %v6212_v57, %v8592_v51  ;;  %vm8594_vm15 = vmmov %vm8593_vm5  ;;  %v1760_v59 = vmul.f32 %v8595_v62, %v1748_v36  ;;  %v2006_v1 = vsel %vm2004_vm1, %v1999_v29, %v2003_v46  ;;  %v2008_v2 = vsel %vm2004_vm1, %v2003_v46, %v1999_v29  ;;  %v8613_v46 = vld [vmem:[#allocation65_spill] sm:$0xff] }
 0x310   : > { %v1823_v39 = vsel %vm8594_vm15, %v8592_v51, %v6212_v57  ;;  %v1718_v44 = vadd.f32 %v1714_v54, %v1669_v63  ;;  %v1719_v27 = vadd.f32 %v1715_v60, %v1670_v53  ;;  %vm8597_vm0 = vnez %v8596_v52  ;;  %2366 = vrot.lane.b32.xlu1 %v5864_v21, %s3354_s28  ;;  %v8608_v60 = vld [vmem:[#allocation168_spill] sm:$0xff]  ;;  %s2814_s28 = sshll.u32 %s3425_s5, 9  ;;  %s2681_s5 = scalar_lea.sflag [#allocation5], %s3531_s21 }
 0x311   : > { %v1792_v12 = vsel %vm8597_vm0, %v1776_v30, 0.0  ;;  %vm8599_vm6 = vnez %v8598_v56  ;;  %v1837_v8 = vsel %vm6298_vm10, %v1821_v28, 0.0  ;;  %v1838_v16 = vsel %vm6302_vm11, %v1823_v39, 0.0  ;;  %v8610_v39 = vld [vmem:[#allocation143_spill] sm:$0xff]  ;;  %s7269_s22 = scalar_lea.hbm %s7322_s6, %s2814_s28 }
 0x312   : > { %v1793_v50 = vsel %vm8599_vm6, %v1778_v58, 0.0  ;;  %v1804_v57 = vmul.f32 %v6176_v32, %v1792_v12  ;;  %vm8600_vm3 = vcmp.lt.s32.totalorder %v4369_v33, 111  ;;  %v2023_v10 = vsel %vm6664_vm12, %v2006_v1, 0.0  ;;  %v2031_v23 = vpop.permute.xlu1 %2030 }
 0x313   : > { %v1805_v19 = vmul.f32 %v6176_v32, %v1793_v50  ;;  %v1866_v6 = vsel %vm8600_vm3, %v6332_v0, %v6366_v4  ;;  %vm8601_vm14 = vmmov %vm8600_vm3  ;;  %v2024_v32 = vsel %vm6668_vm8, %v2008_v2, 0.0  ;;  %v1763_v43 = vadd.f32 %v1759_v42, %v1718_v44 }
 0x314   : > { %v1868_v21 = vsel %vm8601_vm14, %v6366_v4, %v6332_v0  ;;  %v1764_v38 = vadd.f32 %v1760_v59, %v1719_v27  ;;  %v2035_v40 = vmul.f32 %v2031_v23, %v2023_v10  ;;  %v2036_v29 = vmul.f32 %v2031_v23, %v2024_v32  ;;  %2484 = vperm.xlu1 %3073, %v5935_v22   ;;  %v8616_v59 = vld [vmem:[#allocation27_spill] sm:$0xff]  ;;  %v8618_v27 = vld [vmem:[#allocation17_spill] sm:$0xff]  ;;  %v6778_v32 = vld [vmem:[%s3537_s10 + $0x8] sm:$0xff] }
 0x315   : > { %v1849_v61 = vmul.f32 %v8602_v13, %v1837_v8  ;;  %v1850_v17 = vmul.f32 %v8602_v13, %v1838_v16  ;;  %vm8604_vm10 = vcmp.lt.s32.totalorder %v4369_v33, 110  ;;  %vm8607_vm4 = vnez %v8606_v20  ;;  %v8621_v8 = vld [vmem:[#allocation18_spill] sm:$0xff]  ;;  %v8623_v16 = vld [vmem:[#allocation21_spill] sm:$0xff] }
 0x316   : > { %v1911_v0 = vsel %vm8604_vm10, %v6426_v26, %v8603_v47  ;;  %vm8605_vm11 = vmmov %vm8604_vm10  ;;  %v1882_v54 = vsel %vm8607_vm4, %v1866_v6, 0.0  ;;  %vm8609_vm5 = vnez %v8608_v60  ;;  %v2039_v36 = vadd.f32 %v2035_v40, %v6547_v48  ;;  %v2042_v28 = vpop.permute.xlu1 %2041  ;;  %v8612_v48 = vld [vmem:[#allocation55_spill] sm:$0xff] }
 0x317   : > { %v1913_v4 = vsel %vm8605_vm11, %v8603_v47, %v6426_v26  ;;  %v1883_v7 = vsel %vm8609_vm5, %v1868_v21, 0.0  ;;  %v2040_v30 = vadd.f32 %v2036_v29, %v6550_v37  ;;  %v1808_v58 = vadd.f32 %v1804_v57, %v1763_v43 }
 0x318   : > { %v1809_v63 = vadd.f32 %v1805_v19, %v1764_v38  ;;  %v1894_v53 = vmul.f32 %v6394_v14, %v1882_v54  ;;  %v1895_v51 = vmul.f32 %v6394_v14, %v1883_v7  ;;  %v1927_v22 = vsel %vm6492_vm2, %v1911_v0, 0.0  ;;  %2405 = vrot.lane.b32.xlu1 %v6626_v24, %s3356_s9  ;;  %v8629_v0 = vld [vmem:[#allocation29_spill] sm:$0xff] }
 0x319   : > { %v1928_v26 = vsel %vm6496_vm7, %v1913_v4, 0.0  ;;  %vm8611_vm15 = vnez %v8610_v39  ;;  %v6738_v37 = vadd.f32 %v8612_v48, %v2039_v36  ;;  %v6741_v62 = vadd.f32 %v8613_v46, %v2040_v30 }
 0x31a   : > { %vm2099_vm0 = vmand %vm8565_vm9, %vm8611_vm15  ;;  %v1853_v42 = vadd.f32 %v1849_v61, %v1808_v58  ;;  %v1854_v14 = vadd.f32 %v1850_v17, %v1809_v63  ;;  %vm8614_vm7 = vcmp.lt.s32.totalorder %v4369_v33, 109  ;;  %v2005_v1 = vsel %vm2004_vm1, %v6608_v34, %v8616_v59  ;;  %v2046_v56 = vpop.permute.xlu1 %2045 }
 0x31b   : > { %v1956_v5 = vsel %vm8614_vm7, %v6536_v15, %v6569_v11  ;;  %vm8615_vm2 = vmmov %vm8614_vm7  ;;  %v2007_v2 = vsel %vm2004_vm1, %v8616_v59, %v6608_v34  ;;  %v8617_v44 = vmov 46   ;;  %v1939_v52 = vmul.f32 %v8618_v27, %v1927_v22 }
 0x31c   : > { %v1958_v25 = vsel %vm8615_vm2, %v6569_v11, %v6536_v15  ;;  %3074 = vset.pattern.permute.xlu1 %v8617_v44  ;;  %v1940_v12 = vmul.f32 %v8618_v27, %v1928_v26  ;;  %v2100_v15 = vsel %vm2099_vm0, 1, %v7860_v9  ;;  %v1898_v11 = vadd.f32 %v1894_v53, %v1853_v42 }
 0x31d   : > { %v1899_v50 = vadd.f32 %v1895_v51, %v1854_v14  ;;  %vm8619_vm6 = vcmp.lt.s32.totalorder %v4369_v33, 98  ;;  %vm8622_vm14 = vnez %v8621_v8  ;;  %vm8624_vm1 = vnez %v8623_v16  ;;  %2409 = vrot.lane.b32.xlu1 %v6778_v32, %s3356_s9  ;;  %v3115_v16 = vld [vmem:[#allocation7 + $0x8] sm:$0xff]  ;;  %s2694_s9 = sshll.u32 %s299_s8, 4  ;;  %s7272_s9 = int_to_ptr.vmem [resolvable:$true] %s2694_s9 }
 0x31e   : > { %v2050_v57 = vsel %vm8619_vm6, %v2042_v28, %v2046_v56  ;;  %vm8620_vm3 = vmmov %vm8619_vm6  ;;  %v1972_v34 = vsel %vm8622_vm14, %v1956_v5, 0.0  ;;  %v1973_v6 = vsel %vm8624_vm1, %v1958_v25, 0.0  ;;  %v2021_v21 = vsel %vm6664_vm12, %v2005_v1, 0.0  ;;  %v2072_v47 = vpop.permute.xlu1 %2071  ;;  %v8635_v5 = vld [vmem:[#allocation79_spill] sm:$0xff] }
 0x31f   : > { %v2052_v19 = vsel %vm8620_vm3, %v2046_v56, %v2042_v28  ;;  %v2022_v10 = vsel %vm6668_vm8, %v2007_v2, 0.0  ;;  %v1984_v23 = vmul.f32 %v6579_v18, %v1972_v34  ;;  %v1985_v43 = vmul.f32 %v6579_v18, %v1973_v6  ;;  %v3112_v18 = vld [vmem:[#allocation7] sm:$0xff]  ;;  %v8634_v28 = vld [vmem:[#allocation56_spill] sm:$0xff] }
 0x320   : > { %v2104_v38 = vrot.slane %v2100_v15, %v4330_v49  ;;  %v2108_v40 = vrot.slane %v2100_v15, %v4348_v45  ;;  %v1943_v29 = vadd.f32 %v1939_v52, %v1898_v11  ;;  %v1944_v13 = vadd.f32 %v1940_v12, %v1899_v50  ;;  %v6817_v52 = vld [vmem:[%s3537_s10 + $0x10] sm:$0xff]  ;;  %v6826_v11 = vld [vmem:[%s3537_s10 + $0x18] sm:$0xff] }
 0x321   : > { %vm8626_vm12 = vnez %v8625_v3  ;;  %vm8628_vm8 = vnez %v8627_v41  ;;  %v2033_v4 = vmul.f32 %v8629_v0, %v2021_v21  ;;  %v2034_v20 = vmul.f32 %v8629_v0, %v2022_v10  ;;  %2525 = vperm.xlu1 %3074, %v3112_v18  }
 0x322   : > { %v2066_v61 = vsel %vm8626_vm12, %v2050_v57, 0.0  ;;  %v2067_v17 = vsel %vm8628_vm8, %v2052_v19, 0.0  ;;  %vm2094_vm10 = vcmp.lt.s32.totalorder %v4369_v33, 97  ;;  %v1988_v7 = vadd.f32 %v1984_v23, %v1943_v29  ;;  %v2087_v63 = vpop.permute.xlu1 %2086  ;;  %v8637_v23 = vld [vmem:[#allocation147_spill] sm:$0xff] }
 0x323   : > { %v2078_v54 = vmul.f32 %v2072_v47, %v2066_v61  ;;  %v2079_v60 = vmul.f32 %v2072_v47, %v2067_v17  ;;  %v1989_v36 = vadd.f32 %v1985_v43, %v1944_v13  ;;  %vm6793_vm11 = vcmp.eq.s32.totalorder %v2104_v38, 1  ;;  %v8639_v43 = vld [vmem:[#allocation109_spill] sm:$0xff]  ;;  %v8644_v47 = vld [vmem:[#allocation95_spill] sm:$0xff] }
 0x324   : > { %vm6797_vm4 = vcmp.eq.s32.totalorder %v2108_v40, 1  ;;  %v2037_v53 = vadd.f32 %v2033_v4, %v1988_v7  ;;  %v2095_v22 = vsel %vm2094_vm10, %v2087_v63, %v8634_v28  ;;  %v2097_v26 = vsel %vm2094_vm10, %v8634_v28, %v2087_v63  ;;  %v8640_v40 = vld [vmem:[#allocation107_spill] sm:$0xff]  ;;  %v8646_v4 = vld [vmem:[#allocation93_spill] sm:$0xff] }
 0x325   : > { %v2038_v51 = vadd.f32 %v2034_v20, %v1989_v36  ;;  %v2111_v48 = vsel %vm6793_vm11, %v2095_v22, 0.0  ;;  %v2112_v46 = vsel %vm6797_vm4, %v2097_v26, 0.0  ;;  %2450 = vrot.lane.b32.xlu1 %v6626_v24, %s3358_s13  ;;  %v8636_v1 = vmov 47  }
 0x326   : > { %v2082_v42 = vadd.f32 %v2078_v54, %v2037_v53  ;;  %v2123_v25 = vmul.f32 %v8635_v5, %v2111_v48  ;;  %v2124_v59 = vmul.f32 %v8635_v5, %v2112_v46  ;;  %3077 = vset.pattern.permute.xlu1 %v8636_v1  ;;  %v2089_v2 = vpop.permute.xlu1 %2088  ;;  %vm8638_vm5 = vnez %v8637_v23  ;;  %v8653_v48 = vld [vmem:[#allocation96_spill] sm:$0xff] }
 0x327   : > { %v2083_v14 = vadd.f32 %v2079_v60, %v2038_v51  ;;  %vm2189_vm0 = vmand %vm8565_vm9, %vm8638_vm5  ;;  %v8641_v13 = vmov 48   ;;  %vm8642_vm7 = vcmp.lt.s32.totalorder %v4369_v33, 96  ;;  %vm8645_vm6 = vnez %v8644_v47  ;;  %v8652_v51 = vld [vmem:[#allocation111_spill] sm:$0xff] }
 0x328   : > { %v2127_v44 = vadd.f32 %v2123_v25, %v2082_v42  ;;  %vm8643_vm2 = vmmov %vm8642_vm7  ;;  %vm8647_vm3 = vnez %v8646_v4  ;;  %vm2184_vm14 = vcmp.lt.s32.totalorder %v4369_v33, 95 }
 0x329   : > { %v2128_v27 = vadd.f32 %v2124_v59, %v2083_v14  ;;  %2452 = vrot.lane.b32.xlu1 %v6817_v52, %s3358_s13 }
 0x32a   : > { %v2093_v12 = vpop.permute.xlu1 %2092 }
 0x32b   : > { %v2096_v56 = vsel %vm2094_vm10, %v2089_v2, %v2093_v12  ;;  %v2098_v15 = vsel %vm2094_vm10, %v2093_v12, %v2089_v2 }
 0x32c   : > { %v2113_v50 = vsel %vm6793_vm11, %v2096_v56, 0.0  ;;  %v2114_v57 = vsel %vm6797_vm4, %v2098_v15, 0.0  ;;  %v2271_v56 = vpop.permute.xlu0 %2270  ;;  %vm8657_vm11 = vcmp.lt.s32.totalorder %v4369_v33, 94 }
 0x32d   : > { %2456 = vrot.lane.b32.xlu1 %v6826_v11, %s3358_s13  ;;  %vm8658_vm4 = vmmov %vm8657_vm11 }
 0x32e   : > { %v2121_v19 = vpop.permute.xlu1 %2120 }
 0x32f   : > { %v2125_v8 = vmul.f32 %v2121_v19, %v2113_v50  ;;  %v2126_v34 = vmul.f32 %v2121_v19, %v2114_v57 }
 0x331   : > { %2574 = vperm.xlu1 %3077, %v3115_v16   ;;  %v2129_v6 = vadd.f32 %v2125_v8, %v6738_v37  ;;  %v2130_v21 = vadd.f32 %v2126_v34, %v6741_v62  ;;  %v2190_v37 = vsel %vm2189_vm0, 1, %v7860_v9  ;;  %v8654_v34 = vld [vmem:[#allocation151_spill] sm:$0xff] }
 0x332   : > { %v2132_v10 = vpop.permute.xlu1 %2131  ;;  %v2194_v41 = vrot.slane %v2190_v37, %v4330_v49  ;;  %v2198_v17 = vrot.slane %v2190_v37, %v4348_v45  ;;  %vm8655_vm8 = vnez %v8654_v34 }
 0x333   : > { %v2174_v38 = vadd.f32 %v8639_v43, %v2129_v6  ;;  %v2175_v29 = vadd.f32 %v8640_v40, %v2130_v21  ;;  %vm2279_vm10 = vmand %vm8565_vm9, %vm8655_vm8  ;;  %v8656_v6 = vld [vmem:[#allocation137_spill] sm:$0xff] }
 0x334   : > { %vm6859_vm1 = vcmp.eq.s32.totalorder %v2194_v41, 1  ;;  %vm6863_vm12 = vcmp.eq.s32.totalorder %v2198_v17, 1  ;;  %v2280_v40 = vsel %vm2279_vm10, 1, %v7860_v9  ;;  %vm2323_vm10 = vcmp.lt.s32.totalorder %v4369_v33, 83 }
 0x335   : > { %2495 = vrot.lane.b32.xlu1 %v6626_v24, %s3360_s16  ;;  %v2284_v55 = vrot.slane %v2280_v40, %v4330_v49 }
 0x336   : > { %3078 = vset.pattern.permute.xlu1 %v8641_v13  ;;  %v2136_v3 = vpop.permute.xlu1 %2135  ;;  %v8659_v13 = vld [vmem:[#allocation34_spill] sm:$0xff] }
 0x337   : > { %v2140_v62 = vsel %vm8642_vm7, %v2132_v10, %v2136_v3  ;;  %v2142_v61 = vsel %vm8643_vm2, %v2136_v3, %v2132_v10  ;;  %v2297_v10 = vpop.permute.xlu0 %2296  ;;  %v8660_v3 = vld [vmem:[#allocation88_spill] sm:$0xff]  ;;  %vm2274_vm7 = vcmp.lt.s32.totalorder %v4369_v33, 93  ;;  %vm6919_vm2 = vcmp.eq.s32.totalorder %v2284_v55, 1 }
 0x338   : > { %v2156_v0 = vsel %vm8645_vm6, %v2140_v62, 0.0  ;;  %v2157_v20 = vsel %vm8647_vm3, %v2142_v61, 0.0  ;;  %vm8661_vm9 = vnez %v8660_v3  ;;  %v8662_v62 = vld [vmem:[#allocation125_spill] sm:$0xff]  ;;  %v8674_v55 = vld [vmem:[#allocation140_spill] sm:$0xff] }
 0x339   : > { %2499 = vrot.lane.b32.xlu1 %v6778_v32, %s3360_s16  ;;  %vm8663_vm0 = vnez %v8662_v62 }
 0x33a   : > { %v2162_v54 = vpop.permute.xlu1 %2161 }
 0x33b   : > { %v2168_v60 = vmul.f32 %v2162_v54, %v2156_v0  ;;  %v2169_v7 = vmul.f32 %v2162_v54, %v2157_v20  ;;  %v6916_v17 = vpop.permute.xlu0 %2345 }
 0x33d   : > { %2615 = vperm.xlu1 %3078, %v3112_v18   ;;  %v2172_v36 = vadd.f32 %v2168_v60, %v2127_v44  ;;  %v2173_v30 = vadd.f32 %v2169_v7, %v2128_v27 }
 0x33e   : > { %v2177_v53 = vpop.permute.xlu1 %2176 }
 0x33f   : > { %v2185_v28 = vsel %vm2184_vm14, %v2177_v53, %v8652_v51  ;;  %v2187_v18 = vsel %vm2184_vm14, %v8652_v51, %v2177_v53  ;;  %v6935_v53 = vpop.permute.xlu0 %2394 }
 0x340   : > { %v2201_v22 = vsel %vm6859_vm1, %v2185_v28, 0.0  ;;  %v2202_v26 = vsel %vm6863_vm12, %v2187_v18, 0.0 }
 0x341   : > { %2540 = vrot.lane.b32.xlu1 %v6626_v24, %s3362_s11  ;;  %v2213_v46 = vmul.f32 %v8653_v48, %v2201_v22  ;;  %v2214_v42 = vmul.f32 %v8653_v48, %v2202_v26  ;;  %v3116_v48 = vld [vmem:[%s7318_s2] sm:$0x3] }
 0x342   : > { %3081 = vset.pattern.permute.xlu1 %v7860_v9  ;;  %v2179_v14 = vpop.permute.xlu1 %2178 }
 0x343   : > { %v2217_v5 = vadd.f32 %v2213_v46, %v2172_v36  ;;  %v2218_v25 = vadd.f32 %v2214_v42, %v2173_v30  ;;  %v2311_v46 = vadd.s32 3, %v3116_v48 }
 0x345   : > { %2542 = vrot.lane.b32.xlu1 %v6817_v52, %s3362_s11  ;;  %vm2312_vm3 = vcmp.ge.s32.totalorder %v2311_v46, 0 }
 0x346   : > { %v2183_v59 = vpop.permute.xlu1 %2182 }
 0x347   : > { %v2186_v1 = vsel %vm2184_vm14, %v2179_v14, %v2183_v59  ;;  %v2188_v2 = vsel %vm2184_vm14, %v2183_v59, %v2179_v14  ;;  %v2322_v14 = vpop.permute.xlu0 %2321  ;;  %vm2313_vm14 = vcmp.lt.s32.totalorder %v2311_v46, 16  ;;  %v8686_v46 = vld [vmem:[#allocation150_spill] sm:$0xff] }
 0x348   : > { %v2203_v44 = vsel %vm6859_vm1, %v2186_v1, 0.0  ;;  %v2204_v27 = vsel %vm6863_vm12, %v2188_v2, 0.0  ;;  %vm6950_vm1 = vmand %vm2312_vm3, %vm2313_vm14 }
 0x349   : > { %2546 = vrot.lane.b32.xlu1 %v6826_v11, %s3362_s11  ;;  %vm2328_vm12 = vmand %vm6950_vm1, %vm8563_vm13  ;;  %vm8675_vm13 = vnez %v8674_v55  ;;  %s3186_s11 = scalar_lea.vmem %s7272_s9, 512 }
 0x34a   : > { %v2211_v12 = vpop.permute.xlu1 %2210  ;;  %p3187_p1 = scmp.ne.s32.totalorder %s7272_s9, %s3186_s11 }
 0x34b   : > { %v2215_v15 = vmul.f32 %v2211_v12, %v2203_v44  ;;  %v2216_v50 = vmul.f32 %v2211_v12, %v2204_v27  ;;  %v6948_v12 = vpop.permute.xlu0 %2439 }
 0x34c   : > { %p3188_p6 = pnand %p3187_p1, %p8705_p2 }
 0x34d   : > { %2587 = vrot.lane.b32.xlu1 %v6817_v52, %s3363_s14  ;;  %v2219_v57 = vadd.f32 %v2215_v15, %v2174_v38  ;;  %v2220_v19 = vadd.f32 %v2216_v50, %v2175_v29 }
 0x34e   : > { %v2222_v8 = vpop.permute.xlu1 %2221  ;;  %p3189_p12 = pneg %p3188_p6 }
 0x34f   : > { %v2264_v16 = vadd.f32 %v6109_v31, %v2219_v57  ;;  %v2265_v21 = vadd.f32 %v8656_v6, %v2220_v19  ;;  %v2288_v31 = vrot.slane %v2280_v40, %v4348_v45  ;;  %v2329_v6 = vsel %vm2328_vm12, 1, %v7860_v9  ;;  %vm2598_vm12 = vmand %vm6950_vm1, %vm8655_vm8 }
 0x350   : > { %vm8687_vm8 = vnez %v8686_v46 }
 0x351   : > { %2591 = vrot.lane.b32.xlu1 %v6826_v11, %s3363_s14  ;;  %vm6923_vm6 = vcmp.eq.s32.totalorder %v2288_v31, 1  ;;  %s3364_s14 = smov [#allocation10]  }
 0x352   : > { %v2226_v43 = vpop.permute.xlu1 %2225  ;;  %s3190_s17 = sshll.u32 %s3364_s14, 4  ;;  %s3191_s17 = int_to_ptr.vmem [resolvable:$false] %s3190_s17 }
 0x353   : > { %v2230_v38 = vsel %vm8657_vm11, %v2222_v8, %v2226_v43  ;;  %v2232_v29 = vsel %vm8658_vm4, %v2226_v43, %v2222_v8  ;;  %v2365_v8 = vpop.permute.xlu0 %2364  ;;  %v2337_v43 = vrot.slane %v2329_v6, %v4348_v45  ;;  %s3192_s12 = scalar_lea.vmem %s3191_s17, 1024  ;;  %p3193_p7 = scmp.lt.s32.totalorder %s7272_s9, %s3191_s17 }
 0x354   : > { %v2246_v37 = vsel %vm8661_vm9, %v2230_v38, 0.0  ;;  %v2247_v61 = vsel %vm8663_vm0, %v2232_v29, 0.0  ;;  %vm2373_vm9 = vmand %vm6950_vm1, %vm8675_vm13  ;;  %vm2368_vm0 = vcmp.lt.s32.totalorder %v4369_v33, 82  ;;  %p3194_p9 = scmp.lt.s32.totalorder %s3192_s12, %s3186_s11 }
 0x355   : > { %2637 = vperm.xlu1 %3081, %v8659_v13   ;;  %vm6968_vm4 = vcmp.eq.s32.totalorder %v2337_v43, 1  ;;  %vm2553_vm13 = vmand %vm6950_vm1, %vm8687_vm8 }
 0x356   : > { %v2252_v41 = vpop.permute.xlu1 %2251  ;;  %p3195_p13 = por %p3194_p9, %p3193_p7 }
 0x357   : > { %v2258_v47 = vmul.f32 %v2252_v41, %v2246_v37  ;;  %v2259_v0 = vmul.f32 %v2252_v41, %v2247_v61  ;;  %v6961_v38 = vpop.permute.xlu0 %2480 }
 0x358   : > { %p3196_p5 = pnand %p3195_p13, %p3189_p12 }
 0x359   : > { %v2262_v4 = vadd.f32 %v2258_v47, %v2217_v5  ;;  %v2263_v20 = vadd.f32 %v2259_v0, %v2218_v25  ;;  %v2374_v47 = vsel %vm2373_vm9, 1, %v7860_v9 }
 0x35a   : > { %v2267_v7 = vpop.permute.xlu1 %2266 }
 0x35b   : > { %v2275_v36 = vsel %vm2274_vm7, %v2267_v7, %v2271_v56  ;;  %v2277_v30 = vsel %vm2274_vm7, %v2271_v56, %v2267_v7  ;;  %v6984_v61 = vpop.permute.xlu0 %2407 }
 0x35c   : > { %v2291_v58 = vsel %vm6919_vm2, %v2275_v36, 0.0  ;;  %v2292_v63 = vsel %vm6923_vm6, %v2277_v30, 0.0 }
 0x35d   : > { %v2303_v51 = vmul.f32 %v2297_v10, %v2291_v58  ;;  %v2304_v28 = vmul.f32 %v2297_v10, %v2292_v63  ;;  %v2333_v10 = vrot.slane %v2329_v6, %v4330_v49  ;;  %v2378_v58 = vrot.slane %v2374_v47, %v4330_v49 }
 0x35e   : > { %v2269_v18 = vpop.permute.xlu1 %2268  ;;  %v2382_v63 = vrot.slane %v2374_v47, %v4348_v45 }
 0x35f   : > { %v2307_v22 = vadd.f32 %v2303_v51, %v2262_v4  ;;  %v2308_v26 = vadd.f32 %v2304_v28, %v2263_v20  ;;  %vm6964_vm11 = vcmp.eq.s32.totalorder %v2333_v10, 1  ;;  %v7001_v48 = vpop.permute.xlu0 %2411 }
 0x362   : > { %v2273_v42 = vpop.permute.xlu1 %2272 }
 0x363   : > { %v2276_v5 = vsel %vm2274_vm7, %v2269_v18, %v2273_v42  ;;  %v2278_v25 = vsel %vm2274_vm7, %v2273_v42, %v2269_v18  ;;  %vm7004_vm7 = vcmp.eq.s32.totalorder %v2378_v58, 1 }
 0x364   : > { %v2293_v59 = vsel %vm6919_vm2, %v2276_v5, 0.0  ;;  %v2294_v1 = vsel %vm6923_vm6, %v2278_v25, 0.0  ;;  %vm7008_vm2 = vcmp.eq.s32.totalorder %v2382_v63, 1  ;;  %vm2418_vm6 = vmand %vm6950_vm1, %vm8611_vm15 }
 0x365   : > { %vm2508_vm15 = vmand %vm6950_vm1, %vm8638_vm5 }
 0x366   : > { %v2301_v2 = vpop.permute.xlu1 %2300 }
 0x367   : > { %v2305_v44 = vmul.f32 %v2301_v2, %v2293_v59  ;;  %v2306_v27 = vmul.f32 %v2301_v2, %v2294_v1  ;;  %v7020_v1 = vpop.permute.xlu0 %2529 }
 0x369   : > { %v2309_v15 = vadd.f32 %v2305_v44, %v2264_v16  ;;  %v2310_v50 = vadd.f32 %v2306_v27, %v2265_v21 }
 0x36a   : > { %v2316_v57 = vpop.permute.xlu1 %2315 }
 0x36e   : > { %v2350_v19 = vpop.permute.xlu1 %2349 }
 0x373   : > { %v2391_v40 = vpop.permute.xlu1 %2390 }
 0x377   : > { %v2318_v21 = vpop.permute.xlu1 %2317 }
 0x378   : > { %v2325_v29 = vsel %vm2323_vm10, %v2318_v21, %v2322_v14  ;;  %v2327_v13 = vsel %vm2323_vm10, %v2322_v14, %v2318_v21 }
 0x379   : > { %v2342_v31 = vsel %vm6964_vm11, %v2325_v29, 0.0  ;;  %v2343_v3 = vsel %vm6968_vm4, %v2327_v13, 0.0 }
 0x37a   : > { %v2354_v37 = vmul.f32 %v2350_v19, %v2342_v31  ;;  %v2355_v62 = vmul.f32 %v2350_v19, %v2343_v3  ;;  %v2455_v19 = vpop.permute.xlu0 %2454 }
 0x37b   : > { %v2320_v41 = vpop.permute.xlu1 %2319 }
 0x37c   : > { %v2358_v0 = vadd.f32 %v2354_v37, %v2309_v15  ;;  %v2359_v4 = vadd.f32 %v2355_v62, %v2310_v50  ;;  %v2324_v20 = vsel %vm2323_vm10, %v2316_v57, %v2320_v41  ;;  %v2326_v54 = vsel %vm2323_vm10, %v2320_v41, %v2316_v57  ;;  %v8680_v41 = vld [vmem:[#allocation144_spill] sm:$0xff] }
 0x37d   : > { %v2340_v60 = vsel %vm6964_vm11, %v2324_v20, 0.0  ;;  %v2341_v7 = vsel %vm6968_vm4, %v2326_v54, 0.0  ;;  %vm8681_vm3 = vnez %v8680_v41  ;;  %vm2413_vm10 = vcmp.lt.s32.totalorder %v4369_v33, 81 }
 0x37e   : > { %v2352_v36 = vmul.f32 %v6916_v17, %v2340_v60  ;;  %v2353_v30 = vmul.f32 %v6916_v17, %v2341_v7  ;;  %v7042_v21 = vpop.permute.xlu0 %2570  ;;  %vm2463_vm14 = vmand %vm6950_vm1, %vm8681_vm3  ;;  %vm2458_vm11 = vcmp.lt.s32.totalorder %v4369_v33, 80  ;;  %vm2503_vm1 = vcmp.lt.s32.totalorder %v4369_v33, 79 }
 0x37f   : > { %v6999_v51 = vpop.permute.xlu1 %2435 }
 0x380   : > { %v2356_v28 = vadd.f32 %v2352_v36, %v2307_v22  ;;  %v2357_v18 = vadd.f32 %v2353_v30, %v2308_v26  ;;  %v2509_v30 = vsel %vm2508_vm15, 1, %v7860_v9  ;;  %vm2548_vm15 = vcmp.lt.s32.totalorder %v4369_v33, 78 }
 0x381   : > { %v2517_v56 = vrot.slane %v2509_v30, %v4348_v45 }
 0x382   : > { %v7044_v55 = vpop.permute.xlu0 %2497 }
 0x383   : > { %v2361_v17 = vpop.permute.xlu1 %2360 }
 0x384   : > { %v2369_v14 = vsel %vm2368_vm0, %v2361_v17, %v2365_v8  ;;  %v2371_v22 = vsel %vm2368_vm0, %v2365_v8, %v2361_v17 }
 0x385   : > { %v2385_v26 = vsel %vm7004_vm7, %v2369_v14, 0.0  ;;  %v2386_v5 = vsel %vm7008_vm2, %v2371_v22, 0.0 }
 0x386   : > { %v2397_v25 = vmul.f32 %v2391_v40, %v2385_v26  ;;  %v2398_v59 = vmul.f32 %v2391_v40, %v2386_v5  ;;  %v7048_v3 = vpop.permute.xlu0 %2501  ;;  %v2513_v5 = vrot.slane %v2509_v30, %v4330_v49 }
 0x387   : > { %v2363_v2 = vpop.permute.xlu1 %2362 }
 0x388   : > { %v7022_v44 = vadd.f32 %v2397_v25, %v2356_v28  ;;  %v7024_v27 = vadd.f32 %v2398_v59, %v2357_v18  ;;  %v2599_v18 = vsel %vm2598_vm12, 1, %v7860_v9 }
 0x38b   : > { %v2367_v15 = vpop.permute.xlu1 %2366 }
 0x38c   : > { %v2370_v50 = vsel %vm2368_vm0, %v2363_v2, %v2367_v15  ;;  %v2372_v57 = vsel %vm2368_vm0, %v2367_v15, %v2363_v2  ;;  %v2603_v15 = vrot.slane %v2599_v18, %v4330_v49 }
 0x38d   : > { %v2387_v8 = vsel %vm7004_vm7, %v2370_v50, 0.0  ;;  %v2388_v6 = vsel %vm7008_vm2, %v2372_v57, 0.0  ;;  %v2554_v50 = vsel %vm2553_vm13, 1, %v7860_v9  ;;  %vm2593_vm7 = vcmp.lt.s32.totalorder %v4369_v33, 77 }
 0x38e   : > { %v2399_v10 = vmul.f32 %v6935_v53, %v2387_v8  ;;  %v2400_v43 = vmul.f32 %v6935_v53, %v2388_v6  ;;  %v7052_v53 = vpop.permute.xlu0 %2619  ;;  %vm7135_vm2 = vcmp.eq.s32.totalorder %v2513_v5, 1  ;;  %v2562_v41 = vrot.slane %v2554_v50, %v4348_v45 }
 0x38f   : > { %v7036_v40 = vpop.permute.xlu1 %2484  ;;  %vm7159_vm3 = vcmp.eq.s32.totalorder %v2603_v15, 1 }
 0x390   : > { %v7038_v16 = vadd.f32 %v2399_v10, %v2358_v0  ;;  %v7040_v35 = vadd.f32 %v2400_v43, %v2359_v4  ;;  %v2419_v0 = vsel %vm2418_vm6, 1, %v7860_v9  ;;  %v2464_v4 = vsel %vm2463_vm14, 1, %v7860_v9 }
 0x391   : > { %v2423_v39 = vrot.slane %v2419_v0, %v4330_v49  ;;  %v2427_v60 = vrot.slane %v2419_v0, %v4348_v45  ;;  %v2468_v7 = vrot.slane %v2464_v4, %v4330_v49  ;;  %v2472_v36 = vrot.slane %v2464_v4, %v4348_v45 }
 0x392   : > { %v7066_v20 = vpop.permute.xlu0 %2544  ;;  %v2607_v9 = vrot.slane %v2599_v18, %v4348_v45  ;;  %vm7139_vm6 = vcmp.eq.s32.totalorder %v2517_v56, 1  ;;  %vm7176_vm8 = vcmp.eq.s32.totalorder %v2562_v41, 1  ;;  %v2507_v41 = vsel %vm2503_vm1, %v7048_v3, %v7044_v55 }
 0x393   : > { %v2406_v29 = vpop.permute.xlu1 %2405  ;;  %vm7089_vm5 = vcmp.eq.s32.totalorder %v2423_v39, 1  ;;  %vm7093_vm4 = vcmp.eq.s32.totalorder %v2427_v60, 1  ;;  %vm7102_vm9 = vcmp.eq.s32.totalorder %v2468_v7, 1  ;;  %vm7106_vm0 = vcmp.eq.s32.totalorder %v2472_v36, 1 }
 0x394   : > { %v2415_v36 = vsel %vm2413_vm10, %v6984_v61, %v7001_v48  ;;  %vm7165_vm14 = vcmp.eq.s32.totalorder %v2607_v9, 1 }
 0x396   : > { %v2586_v42 = vpop.permute.xlu0 %2585 }
 0x397   : > { %v2410_v13 = vpop.permute.xlu1 %2409 }
 0x398   : > { %v2414_v23 = vsel %vm2413_vm10, %v2406_v29, %v2410_v13  ;;  %v2416_v58 = vsel %vm2413_vm10, %v2410_v13, %v2406_v29 }
 0x399   : > { %v2430_v25 = vsel %vm7089_vm5, %v2414_v23, 0.0  ;;  %v2431_v59 = vsel %vm7093_vm4, %v2416_v58, 0.0 }
 0x39a   : > { %v2442_v10 = vmul.f32 %v6999_v51, %v2430_v25  ;;  %v2443_v43 = vmul.f32 %v6999_v51, %v2431_v59  ;;  %v2590_v0 = vpop.permute.xlu0 %2589 }
 0x39b   : > { %v2596_v45 = vsel %vm2593_vm7, %v2590_v0, %v2586_v42 }
 0x39c   : > { %v7046_v31 = vpop.permute.xlu1 %2525  ;;  %v2446_v30 = vadd.f32 %v2442_v10, %v7022_v44  ;;  %v2447_v23 = vadd.f32 %v2443_v43, %v7024_v27  ;;  %v2417_v44 = vsel %vm2413_vm10, %v7001_v48, %v6984_v61  ;;  %v2432_v27 = vsel %vm7089_vm5, %v2415_v36, 0.0 }
 0x39d   : > { %v2611_v25 = vsel %vm7165_vm14, %v2596_v45, 0.0 }
 0x3a0   : > { %v2451_v37 = vpop.permute.xlu1 %2450 }
 0x3a1   : > { %v2459_v22 = vsel %vm2458_vm11, %v2451_v37, %v2455_v19  ;;  %v2461_v26 = vsel %vm2458_vm11, %v2455_v19, %v2451_v37  ;;  %v2558_v37 = vrot.slane %v2554_v50, %v4330_v49  ;;  %v2594_v49 = vsel %vm2593_vm7, %v2586_v42, %v2590_v0 }
 0x3a2   : > { %v2475_v57 = vsel %vm7102_vm9, %v2459_v22, 0.0  ;;  %v2476_v19 = vsel %vm7106_vm0, %v2461_v26, 0.0  ;;  %v2610_v28 = vsel %vm7159_vm3, %v2594_v49, 0.0 }
 0x3a3   : > { %v2487_v4 = vmul.f32 %v6961_v38, %v2475_v57  ;;  %v2488_v39 = vmul.f32 %v6961_v38, %v2476_v19  ;;  %vm7172_vm12 = vcmp.eq.s32.totalorder %v2558_v37, 1  ;;  %v2505_v57 = vsel %vm2503_vm1, %v7044_v55, %v7048_v3 }
 0x3a4   : > { %v7050_v62 = vpop.permute.xlu1 %2452  ;;  %v2522_v14 = vsel %vm7135_vm2, %v2505_v57, 0.0  ;;  %v2523_v55 = vsel %vm7139_vm6, %v2507_v41, 0.0 }
 0x3a5   : > { %v2491_v22 = vadd.f32 %v2487_v4, %v2446_v30  ;;  %v2492_v26 = vadd.f32 %v2488_v39, %v2447_v23  ;;  %v2633_v4 = vpop.permute.xlu0 %2632 }
 0x3a8   : > { %v7062_v47 = vpop.permute.xlu1 %2456 }
 0x3a9   : > { %v2462_v56 = vsel %vm2458_vm11, %v7062_v47, %v7050_v62 }
 0x3ac   : > { %v7068_v54 = vpop.permute.xlu1 %2574 }
 0x3b0   : > { %v2496_v63 = vpop.permute.xlu1 %2495 }
 0x3b4   : > { %v2500_v2 = vpop.permute.xlu1 %2499 }
 0x3b5   : > { %v2504_v8 = vsel %vm2503_vm1, %v2496_v63, %v2500_v2  ;;  %v2506_v6 = vsel %vm2503_vm1, %v2500_v2, %v2496_v63 }
 0x3b6   : > { %v2520_v51 = vsel %vm7135_vm2, %v2504_v8, 0.0  ;;  %v2521_v60 = vsel %vm7139_vm6, %v2506_v6, 0.0  ;;  %v2478_v8 = vsel %vm7106_vm0, %v2462_v56, 0.0 }
 0x3b7   : > { %v2532_v63 = vmul.f32 %v7046_v31, %v2520_v51  ;;  %v2533_v18 = vmul.f32 %v7046_v31, %v2521_v60  ;;  %v2460_v31 = vsel %vm2458_vm11, %v7050_v62, %v7062_v47  ;;  %v2490_v51 = vmul.f32 %v7036_v40, %v2478_v8 }
 0x3b8   : > { %v2616_v7 = vpop.permute.xlu1 %2615  ;;  %v2477_v19 = vsel %vm7102_vm9, %v2460_v31, 0.0 }
 0x3b9   : > { %v2536_v47 = vadd.f32 %v2532_v63, %v2491_v22  ;;  %v2537_v2 = vadd.f32 %v2533_v18, %v2492_v26  ;;  %v2622_v10 = vmul.f32 %v2616_v7, %v2610_v28  ;;  %v2623_v43 = vmul.f32 %v2616_v7, %v2611_v25 }
 0x3ba   : > { %v2489_v39 = vmul.f32 %v7036_v40, %v2477_v19  ;;  %v2534_v40 = vmul.f32 %v7020_v1, %v2522_v14 }
 0x3bc   : > { %v2541_v5 = vpop.permute.xlu1 %2540 }
 0x3bd   : > { %v2549_v61 = vsel %vm2548_vm15, %v2541_v5, %v7066_v20  ;;  %v2551_v48 = vsel %vm2548_vm15, %v7066_v20, %v2541_v5  ;;  %v2433_v20 = vsel %vm7093_vm4, %v2417_v44, 0.0  ;;  %v2535_v44 = vmul.f32 %v7020_v1, %v2523_v55 }
 0x3be   : > { %v2565_v59 = vsel %vm7172_vm12, %v2549_v61, 0.0  ;;  %v2566_v62 = vsel %vm7176_vm8, %v2551_v48, 0.0  ;;  %v2445_v34 = vmul.f32 %v6948_v12, %v2433_v20 }
 0x3bf   : > { %v2577_v15 = vmul.f32 %v7042_v21, %v2565_v59  ;;  %v2578_v50 = vmul.f32 %v7042_v21, %v2566_v62  ;;  %v2444_v21 = vmul.f32 %v6948_v12, %v2432_v27 }
 0x3c0   : > { %v2543_v6 = vpop.permute.xlu1 %2542  ;;  %v2449_v29 = vadd.f32 %v2445_v34, %v7040_v35 }
 0x3c1   : > { %v2581_v9 = vadd.f32 %v2577_v15, %v2536_v47  ;;  %v2582_v37 = vadd.f32 %v2578_v50, %v2537_v2  ;;  %v2448_v3 = vadd.f32 %v2444_v21, %v7038_v16 }
 0x3c2   : > { %v2494_v13 = vadd.f32 %v2490_v51, %v2449_v29 }
 0x3c3   : > { %v2626_v0 = vadd.f32 %v2622_v10, %v2581_v9  ;;  %v2627_v17 = vadd.f32 %v2623_v43, %v2582_v37  ;;  %v2493_v27 = vadd.f32 %v2489_v39, %v2448_v3 }
 0x3c4   : > { %v2547_v60 = vpop.permute.xlu1 %2546  ;;  %v2539_v5 = vadd.f32 %v2535_v44, %v2494_v13 }
 0x3c5   : > { %v2640_v7 = vadd.f32 %v2633_v4, %v2626_v0  ;;  %v2641_v36 = vadd.f32 %v2633_v4, %v2627_v17  ;;  %v2550_v12 = vsel %vm2548_vm15, %v2543_v6, %v2547_v60  ;;  %v2552_v49 = vsel %vm2548_vm15, %v2547_v60, %v2543_v6 }
 0x3c6   : > { %v2567_v23 = vsel %vm7172_vm12, %v2550_v12, 0.0  ;;  %v2568_v63 = vsel %vm7176_vm8, %v2552_v49, 0.0  ;;  %v2538_v42 = vadd.f32 %v2534_v40, %v2493_v27 }
 0x3c7   : > { %v2804_v45 = vmul.f32 -1.442695, %v2640_v7  ;;  %v2805_v30 = vmul.f32 -1.442695, %v2641_v36  ;;  %v2579_v16 = vmul.f32 %v7068_v54, %v2567_v23  ;;  %v2580_v35 = vmul.f32 %v7068_v54, %v2568_v63 }
 0x3c8   : > { %v2588_v18 = vpop.permute.xlu1 %2587 }
 0x3c9   : > { %3082 = vpow2.f32 %v2804_v45  ;;  %v2583_v54 = vadd.f32 %v2579_v16, %v2538_v42  ;;  %v2584_v48 = vadd.f32 %v2580_v35, %v2539_v5 }
 0x3ca   : > { %3084 = vpow2.f32 %v2805_v30 }
 0x3cc   : > { %v2592_v22 = vpop.permute.xlu1 %2591 }
 0x3cd   : > { %v2595_v26 = vsel %vm2593_vm7, %v2588_v18, %v2592_v22  ;;  %v2597_v46 = vsel %vm2593_vm7, %v2592_v22, %v2588_v18 }
 0x3ce   : > { %v2612_v1 = vsel %vm7159_vm3, %v2595_v26, 0.0  ;;  %v2613_v31 = vsel %vm7165_vm14, %v2597_v46, 0.0 }
 0x3cf   : > { %v2624_v56 = vmul.f32 %v7052_v53, %v2612_v1  ;;  %v2625_v61 = vmul.f32 %v7052_v53, %v2613_v31 }
 0x3d0   : > { %v2638_v59 = vpop.permute.xlu1 %2637 }
 0x3d1   : > { %v2628_v28 = vadd.f32 %v2624_v56, %v2583_v54  ;;  %v2629_v25 = vadd.f32 %v2625_v61, %v2584_v48 }
 0x3d3   : > { %v2642_v62 = vadd.f32 %v2638_v59, %v2628_v28  ;;  %v2643_v33 = vadd.f32 %v2638_v59, %v2629_v25 }
 0x3d5   : > { %v2806_v47 = vmul.f32 -1.442695, %v2642_v62  ;;  %v2807_v2 = vmul.f32 -1.442695, %v2643_v33 }
 0x3d6   : > { %v3083_v15 = vpop.eup %3082 }
 0x3d7   : > { %v3085_v50 = vpop.eup %3084  ;;  %v2656_v38 = vadd.f32 1.0, %v3083_v15  ;;  %3086 = vpow2.f32 %v2806_v47 }
 0x3d8   : > { %v2657_v20 = vadd.f32 1.0, %v3085_v50  ;;  %3088 = vpow2.f32 %v2807_v2 }
 0x3d9   : > { %3090 = vrcp.f32 %v2656_v38 }
 0x3da   : > { %3092 = vrcp.f32 %v2657_v20 }
 0x3e4   : > { %v3087_v58 = vpop.eup %3086 }
 0x3e5   : > { %v3089_v53 = vpop.eup %3088  ;;  %v2658_v57 = vadd.f32 1.0, %v3087_v58 }
 0x3e6   : > { %v3091_v19 = vpop.eup %3090  ;;  %v2659_v8 = vadd.f32 1.0, %v3089_v53 }
 0x3e7   : > { %v3093_v6 = vpop.eup %3092  ;;  %3094 = vrcp.f32 %v2658_v57  ;;  %v2668_v10 = vmul.f32 %v6626_v24, %v3091_v19 }
 0x3e8   : > { %3096 = vrcp.f32 %v2659_v8  ;;  %v2669_v43 = vmul.f32 %v6778_v32, %v3093_v6 }
 0x3e9   : > { %v2672_v9 = vadd.f32 %v6626_v24, %v2668_v10 }
 0x3ea   : > { %v2673_v37 = vadd.f32 %v6778_v32, %v2669_v43 }
 0x3eb   : > { %2676 = vst [vmem:[%s299_s8] sm:$0xff] %v2672_v9 }
 0x3ec   : > { %2677 = vst [vmem:[%s299_s8 + $0x8] sm:$0xff] %v2673_v37 }
 0x3f4   : > { %v3095_v21 = vpop.eup %3094 }
 0x3f5   : > { %v3097_v34 = vpop.eup %3096  ;;  %v2670_v41 = vmul.f32 %v6817_v52, %v3095_v21 }
 0x3f6   : > { %v2671_v0 = vmul.f32 %v6826_v11, %v3097_v34 }
 0x3f7   : > { %v2674_v17 = vadd.f32 %v6817_v52, %v2670_v41 }
 0x3f8   : > { %v2675_v24 = vadd.f32 %v6826_v11, %v2671_v0 }
 0x3f9   : > { %2678 = vst [vmem:[%s299_s8 + $0x10] sm:$0xff] %v2674_v17 }
 0x3fa   : > { %2679 = vst [vmem:[%s299_s8 + $0x18] sm:$0xff] %v2675_v24 }
 0x3fb   : > { %3199 = shalt.err (!%p3196_p5)
}
 0x3fc   : > { %s3200_s18 = scalar_lea.hbm %s7269_s22, 512  ;;  %s3204_s15 = scalar_lea.hbm %s7322_s6, 1024 }
 0x3fd   : > { %p3201_p0 = scmp.ne.s32.totalorder %s7269_s22, %s3200_s18  ;;  %p3205_p3 = scmp.lt.s32.totalorder %s7269_s22, %s7322_s6 }
 0x3fe   : > { %p3206_p11 = scmp.lt.s32.totalorder %s3204_s15, %s3200_s18 }
 0x3ff   : > { %p3202_p4 = pnand %p3201_p0, %p8705_p2 }
 0x400   : > { %p3207_p10 = por %p3206_p11, %p3205_p3 }
 0x401   : > { %p3203_p8 = pneg %p3202_p4 }
 0x403   : > { %p3208_p1 = pnand %p3207_p10, %p3203_p8 }
 0x405   : > { %3211 = shalt.err (!%p3208_p1)
}
 0x406   : > { %s3365_s28 = smov 256   ;;  %s8706_s13 = smov 16  }
 0x407   : > { %2825 = dma.vmem_to_hbm [thread:$0]  (%p8705_p2), %s7272_s9, 512, %s7269_s22, %s2681_s5, %s3365_s28, %s3365_s28, %s8706_s13  }
 0x408 PF: > { %s2709_s16 = sand.u32 1, %s3246_s23   ;;  %p8707_p6 = scmp.ne.s32.totalorder %s7691_s29, 0 }
 0x409   : > { %p8708_p12 = scmp.ge.s32.totalorder %s3258_s26, 2  ;;  %s2710_s11 = scalar_lea.sflag [#allocation5], %s2709_s16 }
 0x40b   : > { %p2839_p7 = pnand %p8708_p12, %p8707_p6 }
 0x40d   : > { %p2840_p9 = pneg %p2839_p7 }
 0x40f   : > { %3241 = dma.done.wait (%p2840_p9), %s2710_s11, 512  }
 0x410   : > { %3243 = vsyncadd (%p2840_p9), %s2710_s11, 4294966784  ;;  %p22_p13 = scmp.ge.s32.totalorder %s3476_s20, 4   ;;  %s8709_s23 = smov %s3250_s24 }
 0x411   : > { %s8710_s24 = smov %s3254_s25  ;;  %s8711_s25 = smov %s3492_s7 }
 0x412   : > { %s8712_s26 = smov %s3476_s20  ;;  %24 = sbr.rel (!%p22_p13) target bundleno = 9 (0x9), region = 98 }
 0x417   :  { %2715 = vsyncpa [#allocation4], 1 }
 0x418   :  { %2717 = vsyncpa [#allocation4 + $0x1], 1 }
 0x419   :  { %2718 = vsyncpa [#allocation8], 1 }
 0x41a   :  { %2719 = vsyncpa [#allocation5], 1 }
 0x41b   :  { %2721 = vsyncpa [#allocation5 + $0x1], 1 }
 0x41c   :  { %2722 = vsyncpa [#allocation6], 1 }
 0x41d   :  { %2724 = vsyncpa [#allocation6 + $0x1], 1 }

</bundles_post_ra>
